<compile_context>
chip_gen: v7x
topology: tpu7x:2x2x1
jax: 0.10.0
libtpu: 0.0.40
codegen_flags: <defaults>
</compile_context>

<pallas_src>
import functools

import jax
import jax.numpy as jnp
from jax.experimental import pallas as pl
from jax.experimental.pallas import tpu as pltpu

# Stand-in for the argparse `opt.rule_mode` in the original script.
RELU_MODE = "relu"  # one of 'relu' | 'P_relu' | 'LeakyRelu'
NEG_SLOPE = {"relu": 0.0, "P_relu": 0.25, "LeakyRelu": 0.01}[RELU_MODE]

_VMEM_LIMIT = 64 * 1024 * 1024  # explicit scoped-VMEM budget (<= physical on all gens)


# --------------------------------------------------------------------------
# Pallas kernels
# --------------------------------------------------------------------------
def _conv_relu_pool_kernel(x_ref, w_ref, b_ref, o_ref, *, neg_slope):
    # x_ref: (4, TILE_B*R, K) bf16 -- leading axis = the 4 offsets of the 2x2 pool
    # w_ref: (K, Cout) bf16   b_ref: (1, Cout) f32   o_ref: (TILE_B*R, Cout) bf16
    w = w_ref[...]
    b = b_ref[...]

    def branch(p):
        # Long-M matmul per pool offset: M = TILE_B * R (thousands of rows).
        y = jnp.dot(x_ref[p], w, preferred_element_type=jnp.float32)
        y = y + b
        if neg_slope == 0.0:
            return jnp.maximum(y, 0.0)                 # plain ReLU: no multiply
        return jnp.where(y > 0, y, neg_slope * y)      # PReLU / LeakyReLU

    # 2x2 max-pool over the 4 offsets (f32), then cast once at the store.
    acc = jnp.maximum(jnp.maximum(branch(0), branch(1)),
                      jnp.maximum(branch(2), branch(3)))
    o_ref[...] = acc.astype(o_ref.dtype)


def _linear_kernel(x_ref, w_ref, b_ref, o_ref):
    o_ref[...] = (
        jnp.dot(x_ref[...], w_ref[...], preferred_element_type=jnp.float32)
        + b_ref[...]
    ).astype(o_ref.dtype)


# --------------------------------------------------------------------------
# pallas_call wrappers
# --------------------------------------------------------------------------
def conv_relu_pool(patches, w_mat, bias, neg_slope, n_batch):
    # patches: (4, N*R, K) bf16 (rows of axis 1 are sample-major)
    # w_mat:   (K, Cout) bf16     bias: (Cout,) f32
    _, NR, K = patches.shape
    R = NR // n_batch
    Cout = w_mat.shape[1]
    # 32 samples/step keeps the bf16 input block (<= ~5 MiB for conv2) comfortably
    # double-buffered within scoped VMEM on v5e / v6e / v7x; 32 also keeps the
    # (TILE_B*R) sublane dim 16-aligned for bf16 when tiling a larger batch.
    tile_b = n_batch if n_batch <= 32 else 32
    kernel = functools.partial(_conv_relu_pool_kernel, neg_slope=neg_slope)
    return pl.pallas_call(
        kernel,
        out_shape=jax.ShapeDtypeStruct((NR, Cout), jnp.bfloat16),
        grid=(pl.cdiv(n_batch, tile_b),),
        in_specs=[
            pl.BlockSpec((4, tile_b * R, K), lambda i: (0, i, 0)),
            pl.BlockSpec((K, Cout), lambda i: (0, 0)),
            pl.BlockSpec((1, Cout), lambda i: (0, 0)),
        ],
        out_specs=pl.BlockSpec((tile_b * R, Cout), lambda i: (i, 0)),
        compiler_params=pltpu.CompilerParams(
            dimension_semantics=("parallel",),
            vmem_limit_bytes=_VMEM_LIMIT),
    )(patches, w_mat, bias.reshape(1, Cout).astype(jnp.float32))


def linear(x, w, b):
    # x: (N, F) bf16, w: (F, Cout) bf16, b: (Cout,) f32
    N, F = x.shape
    Cout = w.shape[1]
    tile_n = N if N <= 256 else 256
    return pl.pallas_call(
        _linear_kernel,
        out_shape=jax.ShapeDtypeStruct((N, Cout), jnp.float32),
        grid=(pl.cdiv(N, tile_n),),
        in_specs=[
            pl.BlockSpec((tile_n, F), lambda i: (i, 0)),
            pl.BlockSpec((F, Cout), lambda i: (0, 0)),
            pl.BlockSpec((1, Cout), lambda i: (0, 0)),
        ],
        out_specs=pl.BlockSpec((tile_n, Cout), lambda i: (i, 0)),
        compiler_params=pltpu.CompilerParams(
            dimension_semantics=("parallel",),
            vmem_limit_bytes=_VMEM_LIMIT),
    )(x, w, b.reshape(1, Cout).astype(jnp.float32))


# --------------------------------------------------------------------------
# Glue: padding / im2col / pool regrouping (pure JAX, layout plumbing only)
# --------------------------------------------------------------------------
def im2col_pooled(x_nhwc, k=5, pad=2):
    # x_nhwc: (N, H, W, Cin) -> (4, N*(H//2)*(W//2), k*k*Cin)
    # Leading axis enumerates the 2x2 pool-window offsets; axis-1 rows are
    # sample-major so the kernel can tile over samples with a single BlockSpec.
    N, H, W, Cin = x_nhwc.shape
    xp = jnp.pad(x_nhwc, ((0, 0), (pad, pad), (pad, pad), (0, 0)))
    cols = jnp.stack(
        [xp[:, a:a + H, b:b + W, :] for a in range(k) for b in range(k)],
        axis=-2,
    )  # (N, H, W, k*k, Cin)
    cols = cols.reshape(N, H, W, k * k * Cin)
    Hh, Wh = H // 2, W // 2
    cols = cols.reshape(N, Hh, 2, Wh, 2, k * k * Cin)
    cols = cols.transpose(2, 4, 0, 1, 3, 5)          # (2, 2, N, Hh, Wh, K)
    return cols.reshape(4, N * Hh * Wh, k * k * Cin)


def pt_conv_weight_to_mat(w_pt):
    # (Cout, Cin, KH, KW) -> (KH*KW*Cin, Cout), matching im2col (kh, kw, cin) order
    Cout = w_pt.shape[0]
    return jnp.transpose(w_pt, (2, 3, 1, 0)).reshape(-1, Cout)


def permute_linear_weight(wl_chw):
    # PyTorch flattens NCHW -> rows of wl are in (c, h, w) order.  Reorder rows to
    # (h, w, c) so the NHWC conv2 output flattens directly (no activation transpose).
    Cout = wl_chw.shape[1]
    return wl_chw.reshape(32, 7, 7, Cout).transpose(1, 2, 0, 3).reshape(-1, Cout)


def init_params(key):
    k1, k2, k3, k4, k5, k6 = jax.random.split(key, 6)
    params = {
        "w1": jax.random.normal(k1, (16, 1, 5, 5), jnp.float32) * 0.1,
        "b1": jax.random.normal(k2, (16,), jnp.float32) * 0.1,
        "w2": jax.random.normal(k3, (32, 16, 5, 5), jnp.float32) * 0.05,
        "b2": jax.random.normal(k4, (32,), jnp.float32) * 0.1,
        # PyTorch nn.Linear weight is (10, 1568) in (c, h, w) flatten order;
        # stored here as (1568, 10) for x @ W.
        "wl": jax.random.normal(k5, (7 * 7 * 32, 10), jnp.float32) * 0.02,
        "bl": jax.random.normal(k6, (10,), jnp.float32) * 0.1,
    }
    return params


def model_forward(x_nchw, params):
    N = x_nchw.shape[0]
    x = jnp.transpose(x_nchw, (0, 2, 3, 1)).astype(jnp.bfloat16)    # NCHW -> NHWC bf16

    # conv1(1->16, k5, p2) + relu1 + maxpool1(2)  -- fused Pallas kernel
    p1 = im2col_pooled(x)                                           # (4, N*196, 25)
    w1m = pt_conv_weight_to_mat(params["w1"]).astype(jnp.bfloat16)  # (25, 16)
    h1 = conv_relu_pool(p1, w1m, params["b1"], NEG_SLOPE, N)        # (N*196, 16) bf16
    h1 = h1.reshape(N, 14, 14, 16)

    # conv2(16->32, k5, p2) + relu2 + maxpool2(2)
    # TODO(synk): build the conv2 im2col inside the kernel from a VMEM-resident
    # h1 block (25x HBM traffic reduction) instead of materializing p2 in HBM.
    p2 = im2col_pooled(h1)                                          # (4, N*49, 400)
    w2m = pt_conv_weight_to_mat(params["w2"]).astype(jnp.bfloat16)  # (400, 32)
    h2 = conv_relu_pool(p2, w2m, params["b2"], NEG_SLOPE, N)        # (N*49, 32) bf16

    # Flatten in (h, w, c) order -- the linear weight rows were permuted once at
    # trace time, so no per-step activation transpose is needed.
    feats = h2.reshape(N, 7 * 7 * 32)                               # (N, 1568) bf16
    wl_hwc = permute_linear_weight(params["wl"]).astype(jnp.bfloat16)
    return linear(feats, wl_hwc, params["bl"])                      # (N, 10) f32


# --------------------------------------------------------------------------
# Pure-JAX reference with matching bf16-input / f32-accumulate numerics
# --------------------------------------------------------------------------
def reference_forward(x_nchw, params):
    bf16 = jnp.bfloat16

    def act(v):
        if NEG_SLOPE == 0.0:
            return jnp.maximum(v, 0.0)
        return jnp.where(v > 0, v, NEG_SLOPE * v)

    def conv(x, w, b):
        y = jax.lax.conv_general_dilated(
            x.astype(bf16), w.astype(bf16), window_strides=(1, 1),
            padding=((2, 2), (2, 2)),
            dimension_numbers=("NCHW", "OIHW", "NCHW"),
            preferred_element_type=jnp.float32)
        return y + b[None, :, None, None]

    def pool(x):
        return jax.lax.reduce_window(
            x, -jnp.inf, jax.lax.max, (1, 1, 2, 2), (1, 1, 2, 2), "VALID")

    h = pool(act(conv(x_nchw, params["w1"], params["b1"]))).astype(bf16)
    h = pool(act(conv(h, params["w2"], params["b2"]))).astype(bf16)
    feats = h.reshape(h.shape[0], -1)                  # PyTorch (c, h, w) flatten
    return jnp.dot(feats, params["wl"].astype(bf16),
                   preferred_element_type=jnp.float32) + params["bl"]


if __name__ == "__main__":
    key = jax.random.PRNGKey(0)
    kx, kp = jax.random.split(key)
    # MNIST-sized input required by the 7*7*32 linear layer: (batch=2, 1, 28, 28)
    x = jax.random.normal(kx, (2, 1, 28, 28), jnp.float32)
    params = init_params(kp)

    out = jax.block_until_ready(jax.jit(model_forward)(x, params))
    ref = jax.block_until_ready(reference_forward(x, params))

    assert out.shape == (2, 10)
    # bf16 inputs / f32 accumulation on both sides; residual diff is accumulation order.
    assert jnp.allclose(out, ref, rtol=1e-2, atol=1e-2), (out, ref)

    print("KERNEL_OK")
</pallas_src>

<mosaic_0001>
module attributes {stable_mosaic.version = 11 : i64} {
  func.func @_conv_relu_pool_kernel(%arg0: i32, %arg1: memref<4x392x25xbf16, #tpu.memory_space<vmem>>, %arg2: memref<25x16xbf16, #tpu.memory_space<vmem>>, %arg3: memref<1x16xf32, #tpu.memory_space<vmem>>, %arg4: memref<392x16xbf16, #tpu.memory_space<vmem>>) attributes {dimension_semantics = [#tpu.dimension_semantics<parallel>], iteration_bounds = array<i64: 1>, scalar_prefetch = 0 : i64, scratch_operands = 0 : i64, tpu.core_type = #tpu.core_type<tc>, window_params = [{transform_indices = @transform_0, window_bounds = array<i64: 4, 392, 25>}, {pipeline_mode = #tpu.pipeline_mode<synchronous>, transform_indices = @transform_1, window_bounds = array<i64: 25, 16>}, {pipeline_mode = #tpu.pipeline_mode<synchronous>, transform_indices = @transform_2, window_bounds = array<i64: 1, 16>}, {transform_indices = @transform_3, window_bounds = array<i64: 392, 16>}]} {
    %c0 = arith.constant 0 : index
    %c0_0 = arith.constant 0 : index
    %0 = vector.load %arg2[%c0, %c0_0] : memref<25x16xbf16, #tpu.memory_space<vmem>>, vector<25x16xbf16>
    %c0_1 = arith.constant 0 : index
    %c0_2 = arith.constant 0 : index
    %1 = vector.load %arg3[%c0_1, %c0_2] : memref<1x16xf32, #tpu.memory_space<vmem>>, vector<1x16xf32>
    %c0_3 = arith.constant 0 : index
    %c0_4 = arith.constant 0 : index
    %c0_5 = arith.constant 0 : index
    %2 = vector.load %arg1[%c0_3, %c0_4, %c0_5] : memref<4x392x25xbf16, #tpu.memory_space<vmem>>, vector<1x392x25xbf16>
    %3 = vector.shape_cast %2 : vector<1x392x25xbf16> to vector<392x25xbf16>
    %cst = arith.constant dense<0.000000e+00> : vector<392x16xf32>
    %4 = tpu.matmul %3, %0, %cst {dimension_numbers = #tpu.dot_dimension_numbers<[1], [0], [0], [1], [0, 0, 1, 1], [], []>} : vector<392x25xbf16>, vector<25x16xbf16>, vector<392x16xf32> -> vector<392x16xf32>
    %5 = vector.broadcast %1 : vector<1x16xf32> to vector<392x16xf32>
    %6 = arith.addf %4, %5 : vector<392x16xf32>
    %cst_6 = arith.constant 0.000000e+00 : f32
    %7 = vector.broadcast %cst_6 : f32 to vector<392x16xf32>
    %8 = arith.maximumf %6, %7 : vector<392x16xf32>
    %c1 = arith.constant 1 : index
    %c0_7 = arith.constant 0 : index
    %c0_8 = arith.constant 0 : index
    %9 = vector.load %arg1[%c1, %c0_7, %c0_8] : memref<4x392x25xbf16, #tpu.memory_space<vmem>>, vector<1x392x25xbf16>
    %10 = vector.shape_cast %9 : vector<1x392x25xbf16> to vector<392x25xbf16>
    %cst_9 = arith.constant dense<0.000000e+00> : vector<392x16xf32>
    %11 = tpu.matmul %10, %0, %cst_9 {dimension_numbers = #tpu.dot_dimension_numbers<[1], [0], [0], [1], [0, 0, 1, 1], [], []>} : vector<392x25xbf16>, vector<25x16xbf16>, vector<392x16xf32> -> vector<392x16xf32>
    %12 = vector.broadcast %1 : vector<1x16xf32> to vector<392x16xf32>
    %13 = arith.addf %11, %12 : vector<392x16xf32>
    %cst_10 = arith.constant 0.000000e+00 : f32
    %14 = vector.broadcast %cst_10 : f32 to vector<392x16xf32>
    %15 = arith.maximumf %13, %14 : vector<392x16xf32>
    %16 = arith.maximumf %8, %15 : vector<392x16xf32>
    %c2 = arith.constant 2 : index
    %c0_11 = arith.constant 0 : index
    %c0_12 = arith.constant 0 : index
    %17 = vector.load %arg1[%c2, %c0_11, %c0_12] : memref<4x392x25xbf16, #tpu.memory_space<vmem>>, vector<1x392x25xbf16>
    %18 = vector.shape_cast %17 : vector<1x392x25xbf16> to vector<392x25xbf16>
    %cst_13 = arith.constant dense<0.000000e+00> : vector<392x16xf32>
    %19 = tpu.matmul %18, %0, %cst_13 {dimension_numbers = #tpu.dot_dimension_numbers<[1], [0], [0], [1], [0, 0, 1, 1], [], []>} : vector<392x25xbf16>, vector<25x16xbf16>, vector<392x16xf32> -> vector<392x16xf32>
    %20 = vector.broadcast %1 : vector<1x16xf32> to vector<392x16xf32>
    %21 = arith.addf %19, %20 : vector<392x16xf32>
    %cst_14 = arith.constant 0.000000e+00 : f32
    %22 = vector.broadcast %cst_14 : f32 to vector<392x16xf32>
    %23 = arith.maximumf %21, %22 : vector<392x16xf32>
    %c3 = arith.constant 3 : index
    %c0_15 = arith.constant 0 : index
    %c0_16 = arith.constant 0 : index
    %24 = vector.load %arg1[%c3, %c0_15, %c0_16] : memref<4x392x25xbf16, #tpu.memory_space<vmem>>, vector<1x392x25xbf16>
    %25 = vector.shape_cast %24 : vector<1x392x25xbf16> to vector<392x25xbf16>
    %cst_17 = arith.constant dense<0.000000e+00> : vector<392x16xf32>
    %26 = tpu.matmul %25, %0, %cst_17 {dimension_numbers = #tpu.dot_dimension_numbers<[1], [0], [0], [1], [0, 0, 1, 1], [], []>} : vector<392x25xbf16>, vector<25x16xbf16>, vector<392x16xf32> -> vector<392x16xf32>
    %27 = vector.broadcast %1 : vector<1x16xf32> to vector<392x16xf32>
    %28 = arith.addf %26, %27 : vector<392x16xf32>
    %cst_18 = arith.constant 0.000000e+00 : f32
    %29 = vector.broadcast %cst_18 : f32 to vector<392x16xf32>
    %30 = arith.maximumf %28, %29 : vector<392x16xf32>
    %31 = arith.maximumf %23, %30 : vector<392x16xf32>
    %32 = arith.maximumf %16, %31 : vector<392x16xf32>
    %33 = arith.truncf %32 : vector<392x16xf32> to vector<392x16xbf16>
    %c0_19 = arith.constant 0 : index
    %c0_20 = arith.constant 0 : index
    %34 = vector.load %arg4[%c0_19, %c0_20] : memref<392x16xbf16, #tpu.memory_space<vmem>>, vector<392x16xbf16>
    tpu.vector_store %arg4[%c0_19, %c0_20], %33 {strides = array<i32>} : memref<392x16xbf16, #tpu.memory_space<vmem>>, vector<392x16xbf16>,
    return
  }
  func.func @transform_0(%arg0: i32) -> (i32, i32, i32) {
    %c0_i32 = arith.constant 0 : i32
    %c0_i32_0 = arith.constant 0 : i32
    %c0_i32_1 = arith.constant 0 : i32
    return %c0_i32, %arg0, %c0_i32_0 : i32, i32, i32
  }
  func.func @transform_1(%arg0: i32) -> (i32, i32) {
    %c0_i32 = arith.constant 0 : i32
    %c0_i32_0 = arith.constant 0 : i32
    %c0_i32_1 = arith.constant 0 : i32
    return %c0_i32, %c0_i32_0 : i32, i32
  }
  func.func @transform_2(%arg0: i32) -> (i32, i32) {
    %c0_i32 = arith.constant 0 : i32
    %c0_i32_0 = arith.constant 0 : i32
    %c0_i32_1 = arith.constant 0 : i32
    return %c0_i32, %c0_i32_0 : i32, i32
  }
  func.func @transform_3(%arg0: i32) -> (i32, i32) {
    %c0_i32 = arith.constant 0 : i32
    %c0_i32_0 = arith.constant 0 : i32
    return %arg0, %c0_i32 : i32, i32
  }
}

module attributes {stable_mosaic.version = 11 : i64} {
  func.func @_conv_relu_pool_kernel(%arg0: i32, %arg1: memref<4x98x400xbf16, #tpu.memory_space<vmem>>, %arg2: memref<400x32xbf16, #tpu.memory_space<vmem>>, %arg3: memref<1x32xf32, #tpu.memory_space<vmem>>, %arg4: memref<98x32xbf16, #tpu.memory_space<vmem>>) attributes {dimension_semantics = [#tpu.dimension_semantics<parallel>], iteration_bounds = array<i64: 1>, scalar_prefetch = 0 : i64, scratch_operands = 0 : i64, tpu.core_type = #tpu.core_type<tc>, window_params = [{transform_indices = @transform_0, window_bounds = array<i64: 4, 98, 400>}, {pipeline_mode = #tpu.pipeline_mode<synchronous>, transform_indices = @transform_1, window_bounds = array<i64: 400, 32>}, {pipeline_mode = #tpu.pipeline_mode<synchronous>, transform_indices = @transform_2, window_bounds = array<i64: 1, 32>}, {transform_indices = @transform_3, window_bounds = array<i64: 98, 32>}]} {
    %c0 = arith.constant 0 : index
    %c0_0 = arith.constant 0 : index
    %0 = vector.load %arg2[%c0, %c0_0] : memref<400x32xbf16, #tpu.memory_space<vmem>>, vector<400x32xbf16>
    %c0_1 = arith.constant 0 : index
    %c0_2 = arith.constant 0 : index
    %1 = vector.load %arg3[%c0_1, %c0_2] : memref<1x32xf32, #tpu.memory_space<vmem>>, vector<1x32xf32>
    %c0_3 = arith.constant 0 : index
    %c0_4 = arith.constant 0 : index
    %c0_5 = arith.constant 0 : index
    %2 = vector.load %arg1[%c0_3, %c0_4, %c0_5] : memref<4x98x400xbf16, #tpu.memory_space<vmem>>, vector<1x98x400xbf16>
    %3 = vector.shape_cast %2 : vector<1x98x400xbf16> to vector<98x400xbf16>
    %cst = arith.constant dense<0.000000e+00> : vector<98x32xf32>
    %4 = tpu.matmul %3, %0, %cst {dimension_numbers = #tpu.dot_dimension_numbers<[1], [0], [0], [1], [0, 0, 1, 1], [], []>} : vector<98x400xbf16>, vector<400x32xbf16>, vector<98x32xf32> -> vector<98x32xf32>
    %5 = vector.broadcast %1 : vector<1x32xf32> to vector<98x32xf32>
    %6 = arith.addf %4, %5 : vector<98x32xf32>
    %cst_6 = arith.constant 0.000000e+00 : f32
    %7 = vector.broadcast %cst_6 : f32 to vector<98x32xf32>
    %8 = arith.maximumf %6, %7 : vector<98x32xf32>
    %c1 = arith.constant 1 : index
    %c0_7 = arith.constant 0 : index
    %c0_8 = arith.constant 0 : index
    %9 = vector.load %arg1[%c1, %c0_7, %c0_8] : memref<4x98x400xbf16, #tpu.memory_space<vmem>>, vector<1x98x400xbf16>
    %10 = vector.shape_cast %9 : vector<1x98x400xbf16> to vector<98x400xbf16>
    %cst_9 = arith.constant dense<0.000000e+00> : vector<98x32xf32>
    %11 = tpu.matmul %10, %0, %cst_9 {dimension_numbers = #tpu.dot_dimension_numbers<[1], [0], [0], [1], [0, 0, 1, 1], [], []>} : vector<98x400xbf16>, vector<400x32xbf16>, vector<98x32xf32> -> vector<98x32xf32>
    %12 = vector.broadcast %1 : vector<1x32xf32> to vector<98x32xf32>
    %13 = arith.addf %11, %12 : vector<98x32xf32>
    %cst_10 = arith.constant 0.000000e+00 : f32
    %14 = vector.broadcast %cst_10 : f32 to vector<98x32xf32>
    %15 = arith.maximumf %13, %14 : vector<98x32xf32>
    %16 = arith.maximumf %8, %15 : vector<98x32xf32>
    %c2 = arith.constant 2 : index
    %c0_11 = arith.constant 0 : index
    %c0_12 = arith.constant 0 : index
    %17 = vector.load %arg1[%c2, %c0_11, %c0_12] : memref<4x98x400xbf16, #tpu.memory_space<vmem>>, vector<1x98x400xbf16>
    %18 = vector.shape_cast %17 : vector<1x98x400xbf16> to vector<98x400xbf16>
    %cst_13 = arith.constant dense<0.000000e+00> : vector<98x32xf32>
    %19 = tpu.matmul %18, %0, %cst_13 {dimension_numbers = #tpu.dot_dimension_numbers<[1], [0], [0], [1], [0, 0, 1, 1], [], []>} : vector<98x400xbf16>, vector<400x32xbf16>, vector<98x32xf32> -> vector<98x32xf32>
    %20 = vector.broadcast %1 : vector<1x32xf32> to vector<98x32xf32>
    %21 = arith.addf %19, %20 : vector<98x32xf32>
    %cst_14 = arith.constant 0.000000e+00 : f32
    %22 = vector.broadcast %cst_14 : f32 to vector<98x32xf32>
    %23 = arith.maximumf %21, %22 : vector<98x32xf32>
    %c3 = arith.constant 3 : index
    %c0_15 = arith.constant 0 : index
    %c0_16 = arith.constant 0 : index
    %24 = vector.load %arg1[%c3, %c0_15, %c0_16] : memref<4x98x400xbf16, #tpu.memory_space<vmem>>, vector<1x98x400xbf16>
    %25 = vector.shape_cast %24 : vector<1x98x400xbf16> to vector<98x400xbf16>
    %cst_17 = arith.constant dense<0.000000e+00> : vector<98x32xf32>
    %26 = tpu.matmul %25, %0, %cst_17 {dimension_numbers = #tpu.dot_dimension_numbers<[1], [0], [0], [1], [0, 0, 1, 1], [], []>} : vector<98x400xbf16>, vector<400x32xbf16>, vector<98x32xf32> -> vector<98x32xf32>
    %27 = vector.broadcast %1 : vector<1x32xf32> to vector<98x32xf32>
    %28 = arith.addf %26, %27 : vector<98x32xf32>
    %cst_18 = arith.constant 0.000000e+00 : f32
    %29 = vector.broadcast %cst_18 : f32 to vector<98x32xf32>
    %30 = arith.maximumf %28, %29 : vector<98x32xf32>
    %31 = arith.maximumf %23, %30 : vector<98x32xf32>
    %32 = arith.maximumf %16, %31 : vector<98x32xf32>
    %33 = arith.truncf %32 : vector<98x32xf32> to vector<98x32xbf16>
    %c0_19 = arith.constant 0 : index
    %c0_20 = arith.constant 0 : index
    %34 = vector.load %arg4[%c0_19, %c0_20] : memref<98x32xbf16, #tpu.memory_space<vmem>>, vector<98x32xbf16>
    tpu.vector_store %arg4[%c0_19, %c0_20], %33 {strides = array<i32>} : memref<98x32xbf16, #tpu.memory_space<vmem>>, vector<98x32xbf16>,
    return
  }
  func.func @transform_0(%arg0: i32) -> (i32, i32, i32) {
    %c0_i32 = arith.constant 0 : i32
    %c0_i32_0 = arith.constant 0 : i32
    %c0_i32_1 = arith.constant 0 : i32
    return %c0_i32, %arg0, %c0_i32_0 : i32, i32, i32
  }
  func.func @transform_1(%arg0: i32) -> (i32, i32) {
    %c0_i32 = arith.constant 0 : i32
    %c0_i32_0 = arith.constant 0 : i32
    %c0_i32_1 = arith.constant 0 : i32
    return %c0_i32, %c0_i32_0 : i32, i32
  }
  func.func @transform_2(%arg0: i32) -> (i32, i32) {
    %c0_i32 = arith.constant 0 : i32
    %c0_i32_0 = arith.constant 0 : i32
    %c0_i32_1 = arith.constant 0 : i32
    return %c0_i32, %c0_i32_0 : i32, i32
  }
  func.func @transform_3(%arg0: i32) -> (i32, i32) {
    %c0_i32 = arith.constant 0 : i32
    %c0_i32_0 = arith.constant 0 : i32
    return %arg0, %c0_i32 : i32, i32
  }
}

module attributes {stable_mosaic.version = 11 : i64} {
  func.func @_linear_kernel(%arg0: i32, %arg1: memref<2x1568xbf16, #tpu.memory_space<vmem>>, %arg2: memref<1568x10xbf16, #tpu.memory_space<vmem>>, %arg3: memref<1x10xf32, #tpu.memory_space<vmem>>, %arg4: memref<2x10xf32, #tpu.memory_space<vmem>>) attributes {dimension_semantics = [#tpu.dimension_semantics<parallel>], iteration_bounds = array<i64: 1>, scalar_prefetch = 0 : i64, scratch_operands = 0 : i64, tpu.core_type = #tpu.core_type<tc>, window_params = [{transform_indices = @transform_0, window_bounds = array<i64: 2, 1568>}, {pipeline_mode = #tpu.pipeline_mode<synchronous>, transform_indices = @transform_1, window_bounds = array<i64: 1568, 10>}, {pipeline_mode = #tpu.pipeline_mode<synchronous>, transform_indices = @transform_2, window_bounds = array<i64: 1, 10>}, {transform_indices = @transform_3, window_bounds = array<i64: 2, 10>}]} {
    %c0 = arith.constant 0 : index
    %c0_0 = arith.constant 0 : index
    %0 = vector.load %arg1[%c0, %c0_0] : memref<2x1568xbf16, #tpu.memory_space<vmem>>, vector<2x1568xbf16>
    %c0_1 = arith.constant 0 : index
    %c0_2 = arith.constant 0 : index
    %1 = vector.load %arg2[%c0_1, %c0_2] : memref<1568x10xbf16, #tpu.memory_space<vmem>>, vector<1568x10xbf16>
    %cst = arith.constant dense<0.000000e+00> : vector<2x10xf32>
    %2 = tpu.matmul %0, %1, %cst {dimension_numbers = #tpu.dot_dimension_numbers<[1], [0], [0], [1], [0, 0, 1, 1], [], []>} : vector<2x1568xbf16>, vector<1568x10xbf16>, vector<2x10xf32> -> vector<2x10xf32>
    %c0_3 = arith.constant 0 : index
    %c0_4 = arith.constant 0 : index
    %3 = vector.load %arg3[%c0_3, %c0_4] : memref<1x10xf32, #tpu.memory_space<vmem>>, vector<1x10xf32>
    %4 = vector.broadcast %3 : vector<1x10xf32> to vector<2x10xf32>
    %5 = arith.addf %2, %4 : vector<2x10xf32>
    %c0_5 = arith.constant 0 : index
    %c0_6 = arith.constant 0 : index
    %6 = vector.load %arg4[%c0_5, %c0_6] : memref<2x10xf32, #tpu.memory_space<vmem>>, vector<2x10xf32>
    tpu.vector_store %arg4[%c0_5, %c0_6], %5 {strides = array<i32>} : memref<2x10xf32, #tpu.memory_space<vmem>>, vector<2x10xf32>,
    return
  }
  func.func @transform_0(%arg0: i32) -> (i32, i32) {
    %c0_i32 = arith.constant 0 : i32
    %c0_i32_0 = arith.constant 0 : i32
    return %arg0, %c0_i32 : i32, i32
  }
  func.func @transform_1(%arg0: i32) -> (i32, i32) {
    %c0_i32 = arith.constant 0 : i32
    %c0_i32_0 = arith.constant 0 : i32
    %c0_i32_1 = arith.constant 0 : i32
    return %c0_i32, %c0_i32_0 : i32, i32
  }
  func.func @transform_2(%arg0: i32) -> (i32, i32) {
    %c0_i32 = arith.constant 0 : i32
    %c0_i32_0 = arith.constant 0 : i32
    %c0_i32_1 = arith.constant 0 : i32
    return %c0_i32, %c0_i32_0 : i32, i32
  }
  func.func @transform_3(%arg0: i32) -> (i32, i32) {
    %c0_i32 = arith.constant 0 : i32
    %c0_i32_0 = arith.constant 0 : i32
    return %arg0, %c0_i32 : i32, i32
  }
}

</mosaic_0001>

<bundles_post_ra>
// kernel: model_forward.3
= control target key start
LH: loop header
LB: loop body
LE: loop exit
PB: predicated region body
PF: predicated region fallthrough
CT: control target
= control target key end

     0   :  { %8 = vsyncpa [#allocation3], 0  ;;  %s4443_s0 = inlined_call_operand.hbm [shape: bf16[4,392,25], index: 0, kind: input, shape index: {}]   ;;  %s4444_s1 = inlined_call_operand.hbm [shape: bf16[25,16], index: 1, kind: input, shape index: {}]   ;;  %s4445_s2 = inlined_call_operand.hbm [shape: f32[1,16], index: 2, kind: input, shape index: {}]   ;;  %s4446_s3 = inlined_call_operand.hbm [shape: bf16[392,16], index: 3, kind: output, shape index: {}]  }
   0x1   :  { %9 = vsyncpa [#allocation6], 0 }
   0x2   :  { %10 = vsyncpa [#allocation4], 0  ;;  %s3644_s12 = smov [#allocation5]   ;;  %s3645_s14 = smov [#allocation2]  }
   0x3   :  { %s28_s13 = sshll.u32 %s3644_s12, 4  ;;  %s16_s15 = sshll.u32 %s3645_s14, 4  ;;  %s29_s13 = int_to_ptr.vmem [resolvable:$true] %s28_s13  ;;  %s3673_s15 = int_to_ptr.vmem [resolvable:$true] %s16_s15 }
   0x4   :  { %s3550_s18 = scalar_lea.hbm %s4444_s1, 256 }
   0x5   :  { %p3551_p0 = scmp.ne.s32.totalorder %s4444_s1, %s3550_s18  ;;  %p3554_p1 = scmp.lt.u32.totalorder %s3550_s18, %s4444_s1 }
   0x7   :  { %p3556_p2 = pnand %p3554_p1, %p3551_p0 }
   0x9   :  { %3559 = shalt.err (!%p3556_p2)
}
   0xa   :  { %s3560_s23 = scalar_lea.vmem %s29_s13, 256  ;;  %p3565_p4 = scmp.lt.s32.totalorder %s29_s13, %s29_s13 }
   0xb   :  { %p3561_p3 = scmp.ne.s32.totalorder %s29_s13, %s3560_s23  ;;  %p3566_p5 = scmp.lt.s32.totalorder %s3560_s23, %s3560_s23 }
   0xd   :  { %p3567_p6 = por %p3566_p5, %p3565_p4 }
   0xf   :  { %p3568_p7 = pnand %p3567_p6, %p3561_p3 }
  0x11   :  { %3571 = shalt.err (!%p3568_p7)
}
  0x12   :  { %s3646_s24 = smov 64   ;;  %s3647_s25 = smov 4  }
  0x13   :  { %34 = dma.hbm_to_vmem [thread:$0]  %s4444_s1, 256, %s29_s13, [#allocation6], %s3646_s24, %s3646_s24, %s3647_s25  }
  0x14   :  { %s3572_s30 = scalar_lea.hbm %s4443_s0, 12544 }
  0x15   :  { %p3573_p8 = scmp.ne.s32.totalorder %s4443_s0, %s3572_s30  ;;  %p3576_p9 = scmp.lt.u32.totalorder %s3572_s30, %s4443_s0 }
  0x17   :  { %p3578_p10 = pnand %p3576_p9, %p3573_p8 }
  0x19   :  { %3581 = shalt.err (!%p3578_p10)
}
  0x1a   :  { %s3582_s8 = scalar_lea.vmem %s3673_s15, 12544  ;;  %p3587_p12 = scmp.lt.s32.totalorder %s3673_s15, %s3673_s15 }
  0x1b   :  { %p3583_p11 = scmp.ne.s32.totalorder %s3673_s15, %s3582_s8  ;;  %p3588_p13 = scmp.lt.s32.totalorder %s3582_s8, %s3582_s8 }
  0x1d   :  { %p3589_p0 = por %p3588_p13, %p3587_p12 }
  0x1f   :  { %p3590_p1 = pnand %p3589_p0, %p3583_p11 }
  0x21   :  { %3593 = shalt.err (!%p3590_p1)
}
  0x22   :  { %22 = dma.hbm_to_vmem [thread:$0]  %s4443_s0, 12544, %s3673_s15, [#allocation3], %s3646_s24, %s3646_s24, %s3647_s25  }
  0x23   :  { %s3648_s10 = smov [#allocation7]   ;;  %s3594_s14 = scalar_lea.hbm %s4445_s2, 16 }
  0x24   :  { %s41_s11 = sshll.u32 %s3648_s10, 4  ;;  %p3595_p2 = scmp.ne.s32.totalorder %s4445_s2, %s3594_s14  ;;  %s42_s11 = int_to_ptr.vmem [resolvable:$true] %s41_s11 }
  0x25   :  { %p3598_p3 = scmp.lt.u32.totalorder %s3594_s14, %s4445_s2 }
  0x27   :  { %p3600_p4 = pnand %p3598_p3, %p3595_p2 }
  0x29   :  { %3603 = shalt.err (!%p3600_p4)
}
  0x2a   :  { %s3604_s20 = scalar_lea.vmem %s42_s11, 16  ;;  %s3608_s0 = scalar_lea.vmem %s42_s11, 32 }
  0x2b   :  { %p3605_p5 = scmp.ne.s32.totalorder %s42_s11, %s3604_s20  ;;  %p3609_p6 = scmp.lt.s32.totalorder %s42_s11, %s42_s11 }
  0x2c   :  { %p3610_p7 = scmp.lt.s32.totalorder %s3608_s0, %s3604_s20 }
  0x2e   :  { %p3611_p8 = por %p3610_p7, %p3609_p6 }
  0x30   :  { %p3612_p9 = pnand %p3611_p8, %p3605_p5 }
  0x32   :  { %3615 = shalt.err (!%p3612_p9)
}
  0x33   :  { %44 = dma.hbm_to_vmem [thread:$0]  %s4445_s2, 16, %s42_s11, [#allocation6]  }
  0x34   :  { %3638 = dma.done.wait [#allocation3], 12544  }
  0x35   :  { %3639 = vsyncadd [#allocation3], 4294954752 }
  0x36   :  { %3640 = dma.done.wait [#allocation6], 272  }
  0x37   :  { %3641 = vsyncadd [#allocation6], 4294967024  ;;  %v3649_v0 = vmov 0.0   ;;  %vm325_vm0 = vcmask 1043456   ;;  %vm3650_vm1 = vmmov 0   ;;  %vm326_vm2 = vcmask 1044480  }
  0x38   :  { %3021 = vmatprep.subr.bf16.mxu0 %v3649_v0  ;;  %3125 = vmatprep.subr.bf16.mxu1 %v3649_v0  ;;  %v3651_v1 = vmov 65535   ;;  %v3446_v3 = vld [vmem:[#allocation5] sm:$0xff]   ;;  %v3447_v5 = vld [vmem:[#allocation5 + $0x8] sm:$0x1f]   ;;  %v3448_v7 = vld [vmem:[#allocation2] sm:$0xff]   ;;  %vm249_vm3 = vcmask 203776  }
  0x39   :  { %3025 = vmatprep.mubr.msk.bf16.mxu0 %vm3650_vm1, %v3649_v0  ;;  %3129 = vmatprep.mubr.msk.bf16.mxu1 %vm3650_vm1, %v3649_v0  ;;  %v327_v2 = vsel %vm325_vm0, 4294967295, %v3651_v1  ;;  %v3449_v8 = vld [vmem:[#allocation2 + $0xc4] sm:$0xff]   ;;  %v3451_v10 = vld [vmem:[#allocation2 + $0xcc] sm:$0xff]   ;;  %v3453_v12 = vld [vmem:[#allocation2 + $0xd4] sm:$0xff]   ;;  %vm2544_vm4 = vcmask 125952   ;;  %s3652_s2 = smov [#allocation8]  }
  0x3a   :  { %v328_v4 = vsel %vm326_vm2, %v327_v2, 0  ;;  %3022 = vmatpush3.bf16.msra.mxu0 %v3446_v3  ;;  %3126 = vmatpush3.bf16.msra.mxu1 %v3446_v3  ;;  %v3450_v9 = vld [vmem:[#allocation2 + $0x8] sm:$0xff]   ;;  %v3452_v11 = vld [vmem:[#allocation2 + $0x10] sm:$0xff]   ;;  %v3454_v13 = vld [vmem:[#allocation2 + $0x18] sm:$0xff]   ;;  %s2599_s22 = sshll.u32 %s3652_s2, 4  ;;  %s2600_s22 = int_to_ptr.vmem [resolvable:$true] %s2599_s22 }
  0x3b   :  { %3023 = vmatprep.subr.bf16.mxu0 %v3649_v0  ;;  %3127 = vmatprep.subr.bf16.mxu1 %v3649_v0  ;;  %v330_v6 = vand.u32 %v3447_v5, %v328_v4  ;;  %v3455_v14 = vld [vmem:[#allocation2 + $0xdc] sm:$0xff]   ;;  %v3457_v16 = vld [vmem:[#allocation2 + $0xe4] sm:$0xff]   ;;  %v3459_v18 = vld [vmem:[#allocation2 + $0xec] sm:$0xff]   ;;  %s3616_s23 = scalar_lea.vmem %s2600_s22, 3136  ;;  %p3621_p11 = scmp.lt.s32.totalorder %s2600_s22, %s2600_s22 }
  0x3c   :  { %v3456_v15 = vld [vmem:[#allocation2 + $0x20] sm:$0xff]   ;;  %v3458_v17 = vld [vmem:[#allocation2 + $0x28] sm:$0xff]   ;;  %v3460_v19 = vld [vmem:[#allocation2 + $0x30] sm:$0xff]   ;;  %p3617_p10 = scmp.ne.s32.totalorder %s2600_s22, %s3616_s23  ;;  %p3622_p12 = scmp.lt.s32.totalorder %s3616_s23, %s3616_s23 }
  0x3d   :  { %v3461_v20 = vld [vmem:[#allocation2 + $0xf4] sm:$0xff]   ;;  %v3463_v22 = vld [vmem:[#allocation2 + $0xfc] sm:$0xff]   ;;  %v3465_v24 = vld [vmem:[#allocation2 + $0x104] sm:$0xff]  }
  0x3e   :  { %3024 = vmatpush3.bf16.msra.mxu0 %v330_v6  ;;  %3128 = vmatpush3.bf16.msra.mxu1 %v330_v6  ;;  %v3462_v21 = vld [vmem:[#allocation2 + $0x38] sm:$0xff]   ;;  %v3464_v23 = vld [vmem:[#allocation2 + $0x40] sm:$0xff]   ;;  %v3466_v25 = vld [vmem:[#allocation2 + $0x48] sm:$0xff]   ;;  %p3623_p13 = por %p3622_p12, %p3621_p11 }
  0x3f   :  { %3229 = vmatprep.subr.bf16.mxu0 %v3649_v0  ;;  %3333 = vmatprep.subr.bf16.mxu1 %v3649_v0  ;;  %v3467_v26 = vld [vmem:[#allocation2 + $0x10c] sm:$0xff]   ;;  %v3469_v28 = vld [vmem:[#allocation2 + $0x114] sm:$0xff]   ;;  %v3471_v30 = vld [vmem:[#allocation2 + $0x11c] sm:$0xff]  }
  0x40   :  { %v3468_v27 = vld [vmem:[#allocation2 + $0x50] sm:$0xff]   ;;  %v3470_v29 = vld [vmem:[#allocation2 + $0x58] sm:$0xff]   ;;  %v3472_v31 = vld [vmem:[#allocation2 + $0x60] sm:$0xff]   ;;  %p3624_p0 = pnand %p3623_p13, %p3617_p10 }
  0x41   :  { %3026 = vmatmul.mubr.msk.bf16.vlgmr.msra.gmra.mrb[0].mxu0 %vm249_vm3, %v3448_v7  ;;  %3130 = vmatmul.mubr.msk.bf16.vlgmr.msra.gmra.mrb[0].mxu1 %vm249_vm3, %v3449_v8  ;;  %v3473_v32 = vld [vmem:[#allocation2 + $0x124] sm:$0xff]   ;;  %v3475_v34 = vld [vmem:[#allocation2 + $0x12c] sm:$0xff]   ;;  %v3477_v36 = vld [vmem:[#allocation2 + $0x134] sm:$0xff]  }
  0x42   :  { %3230 = vmatpush3.bf16.msra.mxu0 %v3446_v3  ;;  %3334 = vmatpush3.bf16.msra.mxu1 %v3446_v3  ;;  %v3474_v33 = vld [vmem:[#allocation2 + $0x68] sm:$0xff]   ;;  %v3476_v35 = vld [vmem:[#allocation2 + $0x70] sm:$0xff]   ;;  %v3478_v37 = vld [vmem:[#allocation2 + $0x78] sm:$0xff]  }
  0x43   :  { %3029 = vmatprep.mubr.msk.bf16.mxu0 %vm3650_vm1, %v3649_v0  ;;  %3133 = vmatprep.mubr.msk.bf16.mxu1 %vm3650_vm1, %v3649_v0  ;;  %v3479_v38 = vld [vmem:[#allocation2 + $0x13c] sm:$0xff]   ;;  %v3481_v40 = vld [vmem:[#allocation2 + $0x144] sm:$0xff]   ;;  %v3483_v42 = vld [vmem:[#allocation2 + $0x14c] sm:$0xff]  }
  0x44   :  { %3231 = vmatprep.subr.bf16.mxu0 %v3649_v0  ;;  %3335 = vmatprep.subr.bf16.mxu1 %v3649_v0  ;;  %v3480_v39 = vld [vmem:[#allocation2 + $0x80] sm:$0xff]   ;;  %v3482_v41 = vld [vmem:[#allocation2 + $0x88] sm:$0xff]   ;;  %v3484_v43 = vld [vmem:[#allocation2 + $0x90] sm:$0xff]  }
  0x45   :  { %v3485_v44 = vld [vmem:[#allocation2 + $0x154] sm:$0xff]   ;;  %v3487_v46 = vld [vmem:[#allocation2 + $0x15c] sm:$0xff]   ;;  %v3489_v48 = vld [vmem:[#allocation2 + $0x164] sm:$0xff]  }
  0x46   :  { %3232 = vmatpush3.bf16.msra.mxu0 %v330_v6  ;;  %3336 = vmatpush3.bf16.msra.mxu1 %v330_v6  ;;  %v3486_v45 = vld [vmem:[#allocation2 + $0x98] sm:$0xff]   ;;  %v3488_v47 = vld [vmem:[#allocation2 + $0xa0] sm:$0xff]   ;;  %v3490_v49 = vld [vmem:[#allocation2 + $0xa8] sm:$0xff]  }
  0x47   :  { %v3491_v50 = vld [vmem:[#allocation2 + $0x16c] sm:$0xff]   ;;  %v3493_v52 = vld [vmem:[#allocation2 + $0x174] sm:$0xff]   ;;  %v3495_v54 = vld [vmem:[#allocation2 + $0x17c] sm:$0xff]  }
  0x48   :  { %v3492_v51 = vld [vmem:[#allocation2 + $0xb0] sm:$0xff]   ;;  %v3494_v53 = vld [vmem:[#allocation2 + $0xb8] sm:$0xff]   ;;  %v3496_v55 = vld [vmem:[#allocation2 + $0xc0] ss:$0 sps:$4 sm:$0xff]  }
  0x49   :  { %3030 = vmatmul.mubr.msk.bf16.gmra.mrb[4].mxu0 %vm249_vm3, %v3450_v9  ;;  %3134 = vmatmul.mubr.msk.bf16.gmra.mrb[4].mxu1 %vm249_vm3, %v3451_v10  ;;  %v3497_v56 = vld [vmem:[#allocation2 + $0x184] ss:$0 sps:$4 sm:$0xff]   ;;  %v3498_v57 = vld [vmem:[#allocation2 + $0x188] sm:$0xff]   ;;  %v3500_v59 = vld [vmem:[#allocation2 + $0x190] sm:$0xff]  }
  0x4a   :  { %3033 = vmatprep.mubr.msk.bf16.mxu0 %vm3650_vm1, %v3649_v0  ;;  %3137 = vmatprep.mubr.msk.bf16.mxu1 %vm3650_vm1, %v3649_v0  ;;  %v3499_v58 = vld [vmem:[#allocation2 + $0x24c] sm:$0xff]   ;;  %v3501_v60 = vld [vmem:[#allocation2 + $0x254] sm:$0xff]   ;;  %v3892_v61 = vld [vmem:[#allocation7] ss:$0 sm:$0xff] }
  0x4b   :  { %v3502_v5 = vld [vmem:[#allocation2 + $0x198] sm:$0xff]  }
  0x4c   :  { %v3503_v6 = vld [vmem:[#allocation2 + $0x25c] sm:$0xff]  }
  0x51   :  { %3034 = vmatmul.mubr.msk.bf16.gmra.mrb[8].mxu0 %vm249_vm3, %v3452_v11  ;;  %3138 = vmatmul.mubr.msk.bf16.gmra.mrb[8].mxu1 %vm249_vm3, %v3453_v12 }
  0x52   :  { %3037 = vmatprep.mubr.msk.bf16.mxu0 %vm3650_vm1, %v3649_v0  ;;  %3141 = vmatprep.mubr.msk.bf16.mxu1 %vm3650_vm1, %v3649_v0 }
  0x59   :  { %3038 = vmatmul.mubr.msk.bf16.gmra.mrb[12].mxu0 %vm249_vm3, %v3454_v13  ;;  %3142 = vmatmul.mubr.msk.bf16.gmra.mrb[12].mxu1 %vm249_vm3, %v3455_v14 }
  0x5a   :  { %3041 = vmatprep.mubr.msk.bf16.mxu0 %vm3650_vm1, %v3649_v0  ;;  %3145 = vmatprep.mubr.msk.bf16.mxu1 %vm3650_vm1, %v3649_v0 }
  0x61   :  { %3042 = vmatmul.mubr.msk.bf16.gmra.mrb[16].mxu0 %vm249_vm3, %v3456_v15  ;;  %3146 = vmatmul.mubr.msk.bf16.gmra.mrb[16].mxu1 %vm249_vm3, %v3457_v16 }
  0x62   :  { %3045 = vmatprep.mubr.msk.bf16.mxu0 %vm3650_vm1, %v3649_v0  ;;  %3149 = vmatprep.mubr.msk.bf16.mxu1 %vm3650_vm1, %v3649_v0 }
  0x69   :  { %3046 = vmatmul.mubr.msk.bf16.gmra.mrb[20].mxu0 %vm249_vm3, %v3458_v17  ;;  %3150 = vmatmul.mubr.msk.bf16.gmra.mrb[20].mxu1 %vm249_vm3, %v3459_v18 }
  0x6a   :  { %3049 = vmatprep.mubr.msk.bf16.mxu0 %vm3650_vm1, %v3649_v0  ;;  %3153 = vmatprep.mubr.msk.bf16.mxu1 %vm3650_vm1, %v3649_v0 }
  0x71   :  { %3050 = vmatmul.mubr.msk.bf16.gmra.mrb[24].mxu0 %vm249_vm3, %v3460_v19  ;;  %3154 = vmatmul.mubr.msk.bf16.gmra.mrb[24].mxu1 %vm249_vm3, %v3461_v20 }
  0x72   :  { %3053 = vmatprep.mubr.msk.bf16.mxu0 %vm3650_vm1, %v3649_v0  ;;  %3157 = vmatprep.mubr.msk.bf16.mxu1 %vm3650_vm1, %v3649_v0 }
  0x79   :  { %3054 = vmatmul.mubr.msk.bf16.gmra.mrb[28].mxu0 %vm249_vm3, %v3462_v21  ;;  %3158 = vmatmul.mubr.msk.bf16.gmra.mrb[28].mxu1 %vm249_vm3, %v3463_v22 }
  0x7a   :  { %3057 = vmatprep.mubr.msk.bf16.mxu0 %vm3650_vm1, %v3649_v0  ;;  %3161 = vmatprep.mubr.msk.bf16.mxu1 %vm3650_vm1, %v3649_v0 }
  0x81   :  { %3058 = vmatmul.mubr.msk.bf16.gmra.mrb[32].mxu0 %vm249_vm3, %v3464_v23  ;;  %3162 = vmatmul.mubr.msk.bf16.gmra.mrb[32].mxu1 %vm249_vm3, %v3465_v24 }
  0x82   :  { %3061 = vmatprep.mubr.msk.bf16.mxu0 %vm3650_vm1, %v3649_v0  ;;  %3165 = vmatprep.mubr.msk.bf16.mxu1 %vm3650_vm1, %v3649_v0 }
  0x89   :  { %3062 = vmatmul.mubr.msk.bf16.gmra.mrb[36].mxu0 %vm249_vm3, %v3466_v25  ;;  %3166 = vmatmul.mubr.msk.bf16.gmra.mrb[36].mxu1 %vm249_vm3, %v3467_v26  ;;  %v3504_v25 = vld [vmem:[#allocation2 + $0x1a0] sm:$0xff]  }
  0x8a   :  { %3065 = vmatprep.mubr.msk.bf16.mxu0 %vm3650_vm1, %v3649_v0  ;;  %3169 = vmatprep.mubr.msk.bf16.mxu1 %vm3650_vm1, %v3649_v0  ;;  %v3505_v26 = vld [vmem:[#allocation2 + $0x264] sm:$0xff]  }
  0x91   :  { %3066 = vmatmul.mubr.msk.bf16.gmra.mrb[40].mxu0 %vm249_vm3, %v3468_v27  ;;  %3170 = vmatmul.mubr.msk.bf16.gmra.mrb[40].mxu1 %vm249_vm3, %v3469_v28 }
  0x92   :  { %3069 = vmatprep.mubr.msk.bf16.mxu0 %vm3650_vm1, %v3649_v0  ;;  %3173 = vmatprep.mubr.msk.bf16.mxu1 %vm3650_vm1, %v3649_v0 }
  0x99   :  { %3070 = vmatmul.mubr.msk.bf16.gmra.mrb[44].mxu0 %vm249_vm3, %v3470_v29  ;;  %3174 = vmatmul.mubr.msk.bf16.gmra.mrb[44].mxu1 %vm249_vm3, %v3471_v30 }
  0x9a   :  { %3073 = vmatprep.mubr.msk.bf16.mxu0 %vm3650_vm1, %v3649_v0  ;;  %3177 = vmatprep.mubr.msk.bf16.mxu1 %vm3650_vm1, %v3649_v0 }
  0xa1   :  { %3074 = vmatmul.mubr.msk.bf16.gmra.mrb[48].mxu0 %vm249_vm3, %v3472_v31  ;;  %3178 = vmatmul.mubr.msk.bf16.gmra.mrb[48].mxu1 %vm249_vm3, %v3473_v32 }
  0xa2   :  { %3077 = vmatprep.mubr.msk.bf16.mxu0 %vm3650_vm1, %v3649_v0  ;;  %3181 = vmatprep.mubr.msk.bf16.mxu1 %vm3650_vm1, %v3649_v0 }
  0xa9   :  { %3078 = vmatmul.mubr.msk.bf16.gmra.mrb[52].mxu0 %vm249_vm3, %v3474_v33  ;;  %3182 = vmatmul.mubr.msk.bf16.gmra.mrb[52].mxu1 %vm249_vm3, %v3475_v34 }
  0xaa   :  { %3081 = vmatprep.mubr.msk.bf16.mxu0 %vm3650_vm1, %v3649_v0  ;;  %3185 = vmatprep.mubr.msk.bf16.mxu1 %vm3650_vm1, %v3649_v0 }
  0xb1   :  { %3082 = vmatmul.mubr.msk.bf16.gmra.mrb[56].mxu0 %vm249_vm3, %v3476_v35  ;;  %3186 = vmatmul.mubr.msk.bf16.gmra.mrb[56].mxu1 %vm249_vm3, %v3477_v36 }
  0xb2   :  { %3085 = vmatprep.mubr.msk.bf16.mxu0 %vm3650_vm1, %v3649_v0  ;;  %3189 = vmatprep.mubr.msk.bf16.mxu1 %vm3650_vm1, %v3649_v0 }
  0xb9   :  { %3086 = vmatmul.mubr.msk.bf16.gmra.mrb[60].mxu0 %vm249_vm3, %v3478_v37  ;;  %3190 = vmatmul.mubr.msk.bf16.gmra.mrb[60].mxu1 %vm249_vm3, %v3479_v38 }
  0xba   :  { %3089 = vmatprep.mubr.msk.bf16.mxu0 %vm3650_vm1, %v3649_v0  ;;  %3193 = vmatprep.mubr.msk.bf16.mxu1 %vm3650_vm1, %v3649_v0 }
  0xc1   :  { %3090 = vmatmul.mubr.msk.bf16.gmra.mrb[64].mxu0 %vm249_vm3, %v3480_v39  ;;  %3194 = vmatmul.mubr.msk.bf16.gmra.mrb[64].mxu1 %vm249_vm3, %v3481_v40 }
  0xc2   :  { %3093 = vmatprep.mubr.msk.bf16.mxu0 %vm3650_vm1, %v3649_v0  ;;  %3197 = vmatprep.mubr.msk.bf16.mxu1 %vm3650_vm1, %v3649_v0 }
  0xc9   :  { %3094 = vmatmul.mubr.msk.bf16.gmra.mrb[68].mxu0 %vm249_vm3, %v3482_v41  ;;  %3198 = vmatmul.mubr.msk.bf16.gmra.mrb[68].mxu1 %vm249_vm3, %v3483_v42 }
  0xca   :  { %3097 = vmatprep.mubr.msk.bf16.mxu0 %vm3650_vm1, %v3649_v0  ;;  %3201 = vmatprep.mubr.msk.bf16.mxu1 %vm3650_vm1, %v3649_v0 }
  0xd1   :  { %3098 = vmatmul.mubr.msk.bf16.gmra.mrb[72].mxu0 %vm249_vm3, %v3484_v43  ;;  %3202 = vmatmul.mubr.msk.bf16.gmra.mrb[72].mxu1 %vm249_vm3, %v3485_v44 }
  0xd2   :  { %3101 = vmatprep.mubr.msk.bf16.mxu0 %vm3650_vm1, %v3649_v0  ;;  %3205 = vmatprep.mubr.msk.bf16.mxu1 %vm3650_vm1, %v3649_v0 }
  0xd9   :  { %3102 = vmatmul.mubr.msk.bf16.gmra.mrb[76].mxu0 %vm249_vm3, %v3486_v45  ;;  %3206 = vmatmul.mubr.msk.bf16.gmra.mrb[76].mxu1 %vm249_vm3, %v3487_v46  ;;  %v3506_v45 = vld [vmem:[#allocation2 + $0x1a8] sm:$0xff]  }
  0xda   :  { %3105 = vmatprep.mubr.msk.bf16.mxu0 %vm3650_vm1, %v3649_v0  ;;  %3209 = vmatprep.mubr.msk.bf16.mxu1 %vm3650_vm1, %v3649_v0  ;;  %v3507_v46 = vld [vmem:[#allocation2 + $0x26c] sm:$0xff]  }
  0xe1   :  { %3106 = vmatmul.mubr.msk.bf16.gmra.mrb[80].mxu0 %vm249_vm3, %v3488_v47  ;;  %3210 = vmatmul.mubr.msk.bf16.gmra.mrb[80].mxu1 %vm249_vm3, %v3489_v48 }
  0xe2   :  { %3109 = vmatprep.mubr.msk.bf16.mxu0 %vm3650_vm1, %v3649_v0  ;;  %3213 = vmatprep.mubr.msk.bf16.mxu1 %vm3650_vm1, %v3649_v0 }
  0xe9   :  { %3110 = vmatmul.mubr.msk.bf16.gmra.mrb[84].mxu0 %vm249_vm3, %v3490_v49  ;;  %3214 = vmatmul.mubr.msk.bf16.gmra.mrb[84].mxu1 %vm249_vm3, %v3491_v50 }
  0xea   :  { %3113 = vmatprep.mubr.msk.bf16.mxu0 %vm3650_vm1, %v3649_v0  ;;  %3217 = vmatprep.mubr.msk.bf16.mxu1 %vm3650_vm1, %v3649_v0 }
  0xf1   :  { %3114 = vmatmul.mubr.msk.bf16.gmra.mrb[88].mxu0 %vm249_vm3, %v3492_v51  ;;  %3218 = vmatmul.mubr.msk.bf16.gmra.mrb[88].mxu1 %vm249_vm3, %v3493_v52 }
  0xf2   :  { %3117 = vmatprep.mubr.msk.bf16.mxu0 %vm3650_vm1, %v3649_v0  ;;  %3221 = vmatprep.mubr.msk.bf16.mxu1 %vm3650_vm1, %v3649_v0 }
  0xf9   :  { %3118 = vmatmul.mubr.msk.bf16.gmra.mrb[92].mxu0 %vm249_vm3, %v3494_v53  ;;  %3222 = vmatmul.mubr.msk.bf16.gmra.mrb[92].mxu1 %vm249_vm3, %v3495_v54 }
  0xfa   :  { %3121 = vmatprep.mubr.msk.bf16.mxu0 %vm3650_vm1, %v3649_v0  ;;  %3225 = vmatprep.mubr.msk.bf16.mxu1 %vm3650_vm1, %v3649_v0 }
 0x101   :  { %3122 = vmatmul.mubr.msk.bf16.gmra.mrb[96].mxu0 %vm249_vm3, %v3496_v55  ;;  %3226 = vmatmul.mubr.msk.bf16.gmra.mrb[96].mxu1 %vm249_vm3, %v3497_v56 }
 0x102   :  { %3233 = vmatprep.mubr.msk.bf16.mxu0 %vm3650_vm1, %v3649_v0  ;;  %3337 = vmatprep.mubr.msk.bf16.mxu1 %vm3650_vm1, %v3649_v0 }
 0x109   :  { %3234 = vmatmul.mubr.msk.bf16.vlgmr.msra.gmra.mrb[100].mxu0 %vm249_vm3, %v3498_v57  ;;  %3338 = vmatmul.mubr.msk.bf16.vlgmr.msra.gmra.mrb[100].mxu1 %vm249_vm3, %v3499_v58 }
 0x10a   :  { %3237 = vmatprep.mubr.msk.bf16.mxu0 %vm3650_vm1, %v3649_v0  ;;  %3341 = vmatprep.mubr.msk.bf16.mxu1 %vm3650_vm1, %v3649_v0 }
 0x111   :  { %3238 = vmatmul.mubr.msk.bf16.gmra.mrb[104].mxu0 %vm249_vm3, %v3500_v59  ;;  %3342 = vmatmul.mubr.msk.bf16.gmra.mrb[104].mxu1 %vm249_vm3, %v3501_v60 }
 0x112   :  { %3241 = vmatprep.mubr.msk.bf16.mxu0 %vm3650_vm1, %v3649_v0  ;;  %3345 = vmatprep.mubr.msk.bf16.mxu1 %vm3650_vm1, %v3649_v0 }
 0x114   :  { %v366_v62 = vpop.f32.mrb[0].mxu0  ;;  %v895_v63 = vpop.f32.mrb[0].mxu1 }
 0x115   :  { %v367_v1 = vadd.f32 %v3892_v61, %v366_v62  ;;  %v896_v2 = vadd.f32 %v3892_v61, %v895_v63  ;;  %v3027_v3 = vpop.f32.mrb[1].mxu0  ;;  %v3131_v4 = vpop.f32.mrb[1].mxu1 }
 0x116   :  { %v369_v7 = vpop.f32.mrb[2].mxu0  ;;  %v898_v8 = vpop.f32.mrb[2].mxu1  ;;  %v3508_v3 = vld [vmem:[#allocation2 + $0x1b0] sm:$0xff]  }
 0x117   :  { %v564_v9 = vmax.f32 %v367_v1, 0.0  ;;  %v1093_v10 = vmax.f32 %v896_v2, 0.0  ;;  %v370_v11 = vadd.f32 %v3892_v61, %v369_v7  ;;  %v899_v12 = vadd.f32 %v3892_v61, %v898_v8  ;;  %v3028_v13 = vpop.f32.mrb[3].mxu0  ;;  %v3132_v14 = vpop.f32.mrb[3].mxu1  ;;  %v3509_v4 = vld [vmem:[#allocation2 + $0x274] sm:$0xff]  }
 0x119   :  { %v3902_v15 = vmax.f32 %v564_v9, %v1093_v10  ;;  %v565_v16 = vmax.f32 %v370_v11, 0.0  ;;  %v1094_v17 = vmax.f32 %v899_v12, 0.0  ;;  %3242 = vmatmul.mubr.msk.bf16.gmra.mrb[108].mxu0 %vm249_vm3, %v3502_v5  ;;  %3346 = vmatmul.mubr.msk.bf16.gmra.mrb[108].mxu1 %vm249_vm3, %v3503_v6 }
 0x11a   :  { %3245 = vmatprep.mubr.msk.bf16.mxu0 %vm3650_vm1, %v3649_v0  ;;  %3349 = vmatprep.mubr.msk.bf16.mxu1 %vm3650_vm1, %v3649_v0 }
 0x11b   :  { %v3910_v18 = vmax.f32 %v565_v16, %v1094_v17 }
 0x11c   :  { %v374_v19 = vpop.f32.mrb[4].mxu0  ;;  %v903_v20 = vpop.f32.mrb[4].mxu1 }
 0x11d   :  { %v375_v21 = vadd.f32 %v3892_v61, %v374_v19  ;;  %v904_v22 = vadd.f32 %v3892_v61, %v903_v20  ;;  %v3031_v23 = vpop.f32.mrb[5].mxu0  ;;  %v3135_v24 = vpop.f32.mrb[5].mxu1 }
 0x11e   :  { %v377_v27 = vpop.f32.mrb[6].mxu0  ;;  %v906_v28 = vpop.f32.mrb[6].mxu1 }
 0x11f   :  { %v566_v29 = vmax.f32 %v375_v21, 0.0  ;;  %v1095_v30 = vmax.f32 %v904_v22, 0.0  ;;  %v378_v31 = vadd.f32 %v3892_v61, %v377_v27  ;;  %v907_v32 = vadd.f32 %v3892_v61, %v906_v28  ;;  %v3032_v33 = vpop.f32.mrb[7].mxu0  ;;  %v3136_v34 = vpop.f32.mrb[7].mxu1 }
 0x121   :  { %v3916_v35 = vmax.f32 %v566_v29, %v1095_v30  ;;  %v567_v36 = vmax.f32 %v378_v31, 0.0  ;;  %v1096_v37 = vmax.f32 %v907_v32, 0.0  ;;  %3246 = vmatmul.mubr.msk.bf16.gmra.mrb[112].mxu0 %vm249_vm3, %v3504_v25  ;;  %3350 = vmatmul.mubr.msk.bf16.gmra.mrb[112].mxu1 %vm249_vm3, %v3505_v26  ;;  %v3510_v25 = vld [vmem:[#allocation2 + $0x1b8] sm:$0xff]  }
 0x122   :  { %3249 = vmatprep.mubr.msk.bf16.mxu0 %vm3650_vm1, %v3649_v0  ;;  %3353 = vmatprep.mubr.msk.bf16.mxu1 %vm3650_vm1, %v3649_v0  ;;  %v3511_v26 = vld [vmem:[#allocation2 + $0x27c] sm:$0xff]  }
 0x123   :  { %v3924_v38 = vmax.f32 %v567_v36, %v1096_v37 }
 0x124   :  { %v382_v39 = vpop.f32.mrb[8].mxu0  ;;  %v911_v40 = vpop.f32.mrb[8].mxu1 }
 0x125   :  { %v383_v41 = vadd.f32 %v3892_v61, %v382_v39  ;;  %v912_v42 = vadd.f32 %v3892_v61, %v911_v40  ;;  %v3035_v43 = vpop.f32.mrb[9].mxu0  ;;  %v3139_v44 = vpop.f32.mrb[9].mxu1 }
 0x126   :  { %v385_v47 = vpop.f32.mrb[10].mxu0  ;;  %v914_v48 = vpop.f32.mrb[10].mxu1 }
 0x127   :  { %v568_v49 = vmax.f32 %v383_v41, 0.0  ;;  %v1097_v50 = vmax.f32 %v912_v42, 0.0  ;;  %v386_v51 = vadd.f32 %v3892_v61, %v385_v47  ;;  %v915_v52 = vadd.f32 %v3892_v61, %v914_v48  ;;  %v3036_v53 = vpop.f32.mrb[11].mxu0  ;;  %v3140_v54 = vpop.f32.mrb[11].mxu1  ;;  %v3512_v47 = vld [vmem:[#allocation2 + $0x1c0] sm:$0xff]  }
 0x128   :  { %v3513_v48 = vld [vmem:[#allocation2 + $0x284] sm:$0xff]  }
 0x129   :  { %v3930_v55 = vmax.f32 %v568_v49, %v1097_v50  ;;  %v569_v56 = vmax.f32 %v386_v51, 0.0  ;;  %v1098_v57 = vmax.f32 %v915_v52, 0.0  ;;  %3250 = vmatmul.mubr.msk.bf16.gmra.mrb[116].mxu0 %vm249_vm3, %v3506_v45  ;;  %3354 = vmatmul.mubr.msk.bf16.gmra.mrb[116].mxu1 %vm249_vm3, %v3507_v46 }
 0x12a   :  { %3253 = vmatprep.mubr.msk.bf16.mxu0 %vm3650_vm1, %v3649_v0  ;;  %3357 = vmatprep.mubr.msk.bf16.mxu1 %vm3650_vm1, %v3649_v0 }
 0x12b   :  { %v3938_v58 = vmax.f32 %v569_v56, %v1098_v57 }
 0x12c   :  { %v390_v59 = vpop.f32.mrb[12].mxu0  ;;  %v919_v60 = vpop.f32.mrb[12].mxu1 }
 0x12d   :  { %v391_v62 = vadd.f32 %v3892_v61, %v390_v59  ;;  %v920_v63 = vadd.f32 %v3892_v61, %v919_v60  ;;  %v3039_v1 = vpop.f32.mrb[13].mxu0  ;;  %v3143_v2 = vpop.f32.mrb[13].mxu1 }
 0x12e   :  { %v393_v5 = vpop.f32.mrb[14].mxu0  ;;  %v922_v6 = vpop.f32.mrb[14].mxu1 }
 0x12f   :  { %v570_v7 = vmax.f32 %v391_v62, 0.0  ;;  %v1099_v8 = vmax.f32 %v920_v63, 0.0  ;;  %v394_v9 = vadd.f32 %v3892_v61, %v393_v5  ;;  %v923_v10 = vadd.f32 %v3892_v61, %v922_v6  ;;  %v3040_v11 = vpop.f32.mrb[15].mxu0  ;;  %v3144_v12 = vpop.f32.mrb[15].mxu1 }
 0x131   :  { %v3944_v13 = vmax.f32 %v570_v7, %v1099_v8  ;;  %v571_v14 = vmax.f32 %v394_v9, 0.0  ;;  %v1100_v16 = vmax.f32 %v923_v10, 0.0  ;;  %3254 = vmatmul.mubr.msk.bf16.gmra.mrb[120].mxu0 %vm249_vm3, %v3508_v3  ;;  %3358 = vmatmul.mubr.msk.bf16.gmra.mrb[120].mxu1 %vm249_vm3, %v3509_v4  ;;  %v3514_v7 = vld [vmem:[#allocation2 + $0x1c8] sm:$0xff]  }
 0x132   :  { %3257 = vmatprep.mubr.msk.bf16.mxu0 %vm3650_vm1, %v3649_v0  ;;  %3361 = vmatprep.mubr.msk.bf16.mxu1 %vm3650_vm1, %v3649_v0  ;;  %v3515_v8 = vld [vmem:[#allocation2 + $0x28c] sm:$0xff]  }
 0x133   :  { %v3952_v17 = vmax.f32 %v571_v14, %v1100_v16 }
 0x134   :  { %v398_v19 = vpop.f32.mrb[16].mxu0  ;;  %v927_v20 = vpop.f32.mrb[16].mxu1 }
 0x135   :  { %v399_v21 = vadd.f32 %v3892_v61, %v398_v19  ;;  %v928_v22 = vadd.f32 %v3892_v61, %v927_v20  ;;  %v3043_v23 = vpop.f32.mrb[17].mxu0  ;;  %v3147_v24 = vpop.f32.mrb[17].mxu1 }
 0x136   :  { %v401_v27 = vpop.f32.mrb[18].mxu0  ;;  %v930_v28 = vpop.f32.mrb[18].mxu1 }
 0x137   :  { %v572_v29 = vmax.f32 %v399_v21, 0.0  ;;  %v1101_v30 = vmax.f32 %v928_v22, 0.0  ;;  %v402_v31 = vadd.f32 %v3892_v61, %v401_v27  ;;  %v931_v32 = vadd.f32 %v3892_v61, %v930_v28  ;;  %v3044_v33 = vpop.f32.mrb[19].mxu0  ;;  %v3148_v34 = vpop.f32.mrb[19].mxu1 }
 0x139   :  { %v3958_v36 = vmax.f32 %v572_v29, %v1101_v30  ;;  %v573_v37 = vmax.f32 %v402_v31, 0.0  ;;  %v1102_v39 = vmax.f32 %v931_v32, 0.0  ;;  %3258 = vmatmul.mubr.msk.bf16.gmra.mrb[124].mxu0 %vm249_vm3, %v3510_v25  ;;  %3362 = vmatmul.mubr.msk.bf16.gmra.mrb[124].mxu1 %vm249_vm3, %v3511_v26  ;;  %v3516_v31 = vld [vmem:[#allocation2 + $0x1d0] sm:$0xff]  }
 0x13a   :  { %3261 = vmatprep.mubr.msk.bf16.mxu0 %vm3650_vm1, %v3649_v0  ;;  %3365 = vmatprep.mubr.msk.bf16.mxu1 %vm3650_vm1, %v3649_v0  ;;  %v3517_v32 = vld [vmem:[#allocation2 + $0x294] sm:$0xff]  }
 0x13b   :  { %v3966_v40 = vmax.f32 %v573_v37, %v1102_v39 }
 0x13c   :  { %v406_v41 = vpop.f32.mrb[20].mxu0  ;;  %v935_v42 = vpop.f32.mrb[20].mxu1 }
 0x13d   :  { %v407_v43 = vadd.f32 %v3892_v61, %v406_v41  ;;  %v936_v44 = vadd.f32 %v3892_v61, %v935_v42  ;;  %v3047_v45 = vpop.f32.mrb[21].mxu0  ;;  %v3151_v46 = vpop.f32.mrb[21].mxu1 }
 0x13e   :  { %v409_v49 = vpop.f32.mrb[22].mxu0  ;;  %v938_v50 = vpop.f32.mrb[22].mxu1 }
 0x13f   :  { %v574_v51 = vmax.f32 %v407_v43, 0.0  ;;  %v1103_v52 = vmax.f32 %v936_v44, 0.0  ;;  %v410_v53 = vadd.f32 %v3892_v61, %v409_v49  ;;  %v939_v54 = vadd.f32 %v3892_v61, %v938_v50  ;;  %v3048_v56 = vpop.f32.mrb[23].mxu0  ;;  %v3152_v57 = vpop.f32.mrb[23].mxu1 }
 0x140   :  { %v3518_v56 = vld [vmem:[#allocation2 + $0x1d8] sm:$0xff]  }
 0x141   :  { %v3972_v59 = vmax.f32 %v574_v51, %v1103_v52  ;;  %v575_v60 = vmax.f32 %v410_v53, 0.0  ;;  %v1104_v62 = vmax.f32 %v939_v54, 0.0  ;;  %3262 = vmatmul.mubr.msk.bf16.gmra.mrb[128].mxu0 %vm249_vm3, %v3512_v47  ;;  %3366 = vmatmul.mubr.msk.bf16.gmra.mrb[128].mxu1 %vm249_vm3, %v3513_v48  ;;  %v3519_v57 = vld [vmem:[#allocation2 + $0x29c] sm:$0xff]  }
 0x142   :  { %3265 = vmatprep.mubr.msk.bf16.mxu0 %vm3650_vm1, %v3649_v0  ;;  %3369 = vmatprep.mubr.msk.bf16.mxu1 %vm3650_vm1, %v3649_v0 }
 0x143   :  { %v3980_v63 = vmax.f32 %v575_v60, %v1104_v62 }
 0x144   :  { %v414_v1 = vpop.f32.mrb[24].mxu0  ;;  %v943_v2 = vpop.f32.mrb[24].mxu1 }
 0x145   :  { %v415_v3 = vadd.f32 %v3892_v61, %v414_v1  ;;  %v944_v4 = vadd.f32 %v3892_v61, %v943_v2  ;;  %v3051_v5 = vpop.f32.mrb[25].mxu0  ;;  %v3155_v6 = vpop.f32.mrb[25].mxu1 }
 0x146   :  { %v417_v9 = vpop.f32.mrb[26].mxu0  ;;  %v946_v10 = vpop.f32.mrb[26].mxu1 }
 0x147   :  { %v576_v11 = vmax.f32 %v415_v3, 0.0  ;;  %v1105_v12 = vmax.f32 %v944_v4, 0.0  ;;  %v418_v14 = vadd.f32 %v3892_v61, %v417_v9  ;;  %v947_v16 = vadd.f32 %v3892_v61, %v946_v10  ;;  %v3052_v19 = vpop.f32.mrb[27].mxu0  ;;  %v3156_v20 = vpop.f32.mrb[27].mxu1 }
 0x149   :  { %v3986_v21 = vmax.f32 %v576_v11, %v1105_v12  ;;  %v577_v22 = vmax.f32 %v418_v14, 0.0  ;;  %v1106_v23 = vmax.f32 %v947_v16, 0.0  ;;  %3266 = vmatmul.mubr.msk.bf16.gmra.mrb[132].mxu0 %vm249_vm3, %v3514_v7  ;;  %3370 = vmatmul.mubr.msk.bf16.gmra.mrb[132].mxu1 %vm249_vm3, %v3515_v8 }
 0x14a   :  { %3269 = vmatprep.mubr.msk.bf16.mxu0 %vm3650_vm1, %v3649_v0  ;;  %3373 = vmatprep.mubr.msk.bf16.mxu1 %vm3650_vm1, %v3649_v0 }
 0x14b   :  { %v3994_v24 = vmax.f32 %v577_v22, %v1106_v23  ;;  %v3520_v22 = vld [vmem:[#allocation2 + $0x1e0] sm:$0xff]  }
 0x14c   :  { %v422_v25 = vpop.f32.mrb[28].mxu0  ;;  %v951_v26 = vpop.f32.mrb[28].mxu1  ;;  %v3521_v23 = vld [vmem:[#allocation2 + $0x2a4] sm:$0xff]  }
 0x14d   :  { %v423_v27 = vadd.f32 %v3892_v61, %v422_v25  ;;  %v952_v28 = vadd.f32 %v3892_v61, %v951_v26  ;;  %v3055_v29 = vpop.f32.mrb[29].mxu0  ;;  %v3159_v30 = vpop.f32.mrb[29].mxu1 }
 0x14e   :  { %v425_v33 = vpop.f32.mrb[30].mxu0  ;;  %v954_v34 = vpop.f32.mrb[30].mxu1 }
 0x14f   :  { %v578_v37 = vmax.f32 %v423_v27, 0.0  ;;  %v1107_v39 = vmax.f32 %v952_v28, 0.0  ;;  %v426_v41 = vadd.f32 %v3892_v61, %v425_v33  ;;  %v955_v42 = vadd.f32 %v3892_v61, %v954_v34  ;;  %v3056_v43 = vpop.f32.mrb[31].mxu0  ;;  %v3160_v44 = vpop.f32.mrb[31].mxu1 }
 0x151   :  { %v4000_v45 = vmax.f32 %v578_v37, %v1107_v39  ;;  %v579_v46 = vmax.f32 %v426_v41, 0.0  ;;  %v1108_v47 = vmax.f32 %v955_v42, 0.0  ;;  %3270 = vmatmul.mubr.msk.bf16.gmra.mrb[136].mxu0 %vm249_vm3, %v3516_v31  ;;  %3374 = vmatmul.mubr.msk.bf16.gmra.mrb[136].mxu1 %vm249_vm3, %v3517_v32 }
 0x152   :  { %3273 = vmatprep.mubr.msk.bf16.mxu0 %vm3650_vm1, %v3649_v0  ;;  %3377 = vmatprep.mubr.msk.bf16.mxu1 %vm3650_vm1, %v3649_v0 }
 0x153   :  { %v4008_v48 = vmax.f32 %v579_v46, %v1108_v47 }
 0x154   :  { %v430_v49 = vpop.f32.mrb[32].mxu0  ;;  %v959_v50 = vpop.f32.mrb[32].mxu1 }
 0x155   :  { %v431_v51 = vadd.f32 %v3892_v61, %v430_v49  ;;  %v960_v52 = vadd.f32 %v3892_v61, %v959_v50  ;;  %v3059_v53 = vpop.f32.mrb[33].mxu0  ;;  %v3163_v54 = vpop.f32.mrb[33].mxu1  ;;  %v3522_v49 = vld [vmem:[#allocation2 + $0x1e8] sm:$0xff]  }
 0x156   :  { %v433_v60 = vpop.f32.mrb[34].mxu0  ;;  %v962_v62 = vpop.f32.mrb[34].mxu1  ;;  %v3523_v50 = vld [vmem:[#allocation2 + $0x2ac] sm:$0xff]  }
 0x157   :  { %v580_v1 = vmax.f32 %v431_v51, 0.0  ;;  %v1109_v2 = vmax.f32 %v960_v52, 0.0  ;;  %v434_v3 = vadd.f32 %v3892_v61, %v433_v60  ;;  %v963_v4 = vadd.f32 %v3892_v61, %v962_v62  ;;  %v3060_v5 = vpop.f32.mrb[35].mxu0  ;;  %v3164_v6 = vpop.f32.mrb[35].mxu1 }
 0x159   :  { %v4014_v7 = vmax.f32 %v580_v1, %v1109_v2  ;;  %v581_v8 = vmax.f32 %v434_v3, 0.0  ;;  %v1110_v9 = vmax.f32 %v963_v4, 0.0  ;;  %3274 = vmatmul.mubr.msk.bf16.gmra.mrb[140].mxu0 %vm249_vm3, %v3518_v56  ;;  %3378 = vmatmul.mubr.msk.bf16.gmra.mrb[140].mxu1 %vm249_vm3, %v3519_v57 }
 0x15a   :  { %3277 = vmatprep.mubr.msk.bf16.mxu0 %vm3650_vm1, %v3649_v0  ;;  %3381 = vmatprep.mubr.msk.bf16.mxu1 %vm3650_vm1, %v3649_v0 }
 0x15b   :  { %v4022_v10 = vmax.f32 %v581_v8, %v1110_v9 }
 0x15c   :  { %v438_v11 = vpop.f32.mrb[36].mxu0  ;;  %v967_v12 = vpop.f32.mrb[36].mxu1 }
 0x15d   :  { %v439_v14 = vadd.f32 %v3892_v61, %v438_v11  ;;  %v968_v16 = vadd.f32 %v3892_v61, %v967_v12  ;;  %v3063_v19 = vpop.f32.mrb[37].mxu0  ;;  %v3167_v20 = vpop.f32.mrb[37].mxu1 }
 0x15e   :  { %v441_v25 = vpop.f32.mrb[38].mxu0  ;;  %v970_v26 = vpop.f32.mrb[38].mxu1 }
 0x15f   :  { %v582_v27 = vmax.f32 %v439_v14, 0.0  ;;  %v1111_v28 = vmax.f32 %v968_v16, 0.0  ;;  %v442_v29 = vadd.f32 %v3892_v61, %v441_v25  ;;  %v971_v30 = vadd.f32 %v3892_v61, %v970_v26  ;;  %v3064_v31 = vpop.f32.mrb[39].mxu0  ;;  %v3168_v32 = vpop.f32.mrb[39].mxu1  ;;  %v3524_v14 = vld [vmem:[#allocation2 + $0x1f0] sm:$0xff]  }
 0x160   :  { %v3525_v16 = vld [vmem:[#allocation2 + $0x2b4] sm:$0xff]  }
 0x161   :  { %v4028_v33 = vmax.f32 %v582_v27, %v1111_v28  ;;  %v583_v34 = vmax.f32 %v442_v29, 0.0  ;;  %v1112_v37 = vmax.f32 %v971_v30, 0.0  ;;  %3278 = vmatmul.mubr.msk.bf16.gmra.mrb[144].mxu0 %vm249_vm3, %v3520_v22  ;;  %3382 = vmatmul.mubr.msk.bf16.gmra.mrb[144].mxu1 %vm249_vm3, %v3521_v23 }
 0x162   :  { %3281 = vmatprep.mubr.msk.bf16.mxu0 %vm3650_vm1, %v3649_v0  ;;  %3385 = vmatprep.mubr.msk.bf16.mxu1 %vm3650_vm1, %v3649_v0 }
 0x163   :  { %v4036_v39 = vmax.f32 %v583_v34, %v1112_v37 }
 0x164   :  { %v446_v41 = vpop.f32.mrb[40].mxu0  ;;  %v975_v42 = vpop.f32.mrb[40].mxu1 }
 0x165   :  { %v447_v43 = vadd.f32 %v3892_v61, %v446_v41  ;;  %v976_v44 = vadd.f32 %v3892_v61, %v975_v42  ;;  %v3067_v46 = vpop.f32.mrb[41].mxu0  ;;  %v3171_v47 = vpop.f32.mrb[41].mxu1 }
 0x166   :  { %v449_v51 = vpop.f32.mrb[42].mxu0  ;;  %v978_v52 = vpop.f32.mrb[42].mxu1  ;;  %v3526_v46 = vld [vmem:[#allocation2 + $0x1f8] sm:$0xff]  }
 0x167   :  { %v584_v53 = vmax.f32 %v447_v43, 0.0  ;;  %v1113_v54 = vmax.f32 %v976_v44, 0.0  ;;  %v450_v56 = vadd.f32 %v3892_v61, %v449_v51  ;;  %v979_v57 = vadd.f32 %v3892_v61, %v978_v52  ;;  %v3068_v60 = vpop.f32.mrb[43].mxu0  ;;  %v3172_v62 = vpop.f32.mrb[43].mxu1  ;;  %v3527_v47 = vld [vmem:[#allocation2 + $0x2bc] sm:$0xff]  }
 0x169   :  { %v4042_v1 = vmax.f32 %v584_v53, %v1113_v54  ;;  %v585_v2 = vmax.f32 %v450_v56, 0.0  ;;  %v1114_v3 = vmax.f32 %v979_v57, 0.0  ;;  %3282 = vmatmul.mubr.msk.bf16.gmra.mrb[148].mxu0 %vm249_vm3, %v3522_v49  ;;  %3386 = vmatmul.mubr.msk.bf16.gmra.mrb[148].mxu1 %vm249_vm3, %v3523_v50 }
 0x16a   :  { %3285 = vmatprep.mubr.msk.bf16.mxu0 %vm3650_vm1, %v3649_v0  ;;  %3389 = vmatprep.mubr.msk.bf16.mxu1 %vm3650_vm1, %v3649_v0 }
 0x16b   :  { %v4050_v4 = vmax.f32 %v585_v2, %v1114_v3 }
 0x16c   :  { %v454_v5 = vpop.f32.mrb[44].mxu0  ;;  %v983_v6 = vpop.f32.mrb[44].mxu1 }
 0x16d   :  { %v455_v8 = vadd.f32 %v3892_v61, %v454_v5  ;;  %v984_v9 = vadd.f32 %v3892_v61, %v983_v6  ;;  %v3071_v11 = vpop.f32.mrb[45].mxu0  ;;  %v3175_v12 = vpop.f32.mrb[45].mxu1 }
 0x16e   :  { %v457_v19 = vpop.f32.mrb[46].mxu0  ;;  %v986_v20 = vpop.f32.mrb[46].mxu1 }
 0x16f   :  { %v586_v22 = vmax.f32 %v455_v8, 0.0  ;;  %v1115_v23 = vmax.f32 %v984_v9, 0.0  ;;  %v458_v25 = vadd.f32 %v3892_v61, %v457_v19  ;;  %v987_v26 = vadd.f32 %v3892_v61, %v986_v20  ;;  %v3072_v27 = vpop.f32.mrb[47].mxu0  ;;  %v3176_v28 = vpop.f32.mrb[47].mxu1 }
 0x171   :  { %v4056_v29 = vmax.f32 %v586_v22, %v1115_v23  ;;  %v587_v30 = vmax.f32 %v458_v25, 0.0  ;;  %v1116_v31 = vmax.f32 %v987_v26, 0.0  ;;  %3286 = vmatmul.mubr.msk.bf16.gmra.mrb[152].mxu0 %vm249_vm3, %v3524_v14  ;;  %3390 = vmatmul.mubr.msk.bf16.gmra.mrb[152].mxu1 %vm249_vm3, %v3525_v16  ;;  %v3528_v14 = vld [vmem:[#allocation2 + $0x200] sm:$0xff]  }
 0x172   :  { %3289 = vmatprep.mubr.msk.bf16.mxu0 %vm3650_vm1, %v3649_v0  ;;  %3393 = vmatprep.mubr.msk.bf16.mxu1 %vm3650_vm1, %v3649_v0  ;;  %v3529_v16 = vld [vmem:[#allocation2 + $0x2c4] sm:$0xff]  }
 0x173   :  { %v4064_v32 = vmax.f32 %v587_v30, %v1116_v31 }
 0x174   :  { %v462_v34 = vpop.f32.mrb[48].mxu0  ;;  %v991_v37 = vpop.f32.mrb[48].mxu1 }
 0x175   :  { %v463_v41 = vadd.f32 %v3892_v61, %v462_v34  ;;  %v992_v42 = vadd.f32 %v3892_v61, %v991_v37  ;;  %v3075_v43 = vpop.f32.mrb[49].mxu0  ;;  %v3179_v44 = vpop.f32.mrb[49].mxu1 }
 0x176   :  { %v465_v49 = vpop.f32.mrb[50].mxu0  ;;  %v994_v50 = vpop.f32.mrb[50].mxu1 }
 0x177   :  { %v588_v51 = vmax.f32 %v463_v41, 0.0  ;;  %v1117_v52 = vmax.f32 %v992_v42, 0.0  ;;  %v466_v53 = vadd.f32 %v3892_v61, %v465_v49  ;;  %v995_v54 = vadd.f32 %v3892_v61, %v994_v50  ;;  %v3076_v56 = vpop.f32.mrb[51].mxu0  ;;  %v3180_v57 = vpop.f32.mrb[51].mxu1  ;;  %v3530_v49 = vld [vmem:[#allocation2 + $0x208] sm:$0xff]  }
 0x178   :  { %v3531_v50 = vld [vmem:[#allocation2 + $0x2cc] sm:$0xff]  }
 0x179   :  { %v4070_v60 = vmax.f32 %v588_v51, %v1117_v52  ;;  %v589_v62 = vmax.f32 %v466_v53, 0.0  ;;  %v1118_v2 = vmax.f32 %v995_v54, 0.0  ;;  %3290 = vmatmul.mubr.msk.bf16.gmra.mrb[156].mxu0 %vm249_vm3, %v3526_v46  ;;  %3394 = vmatmul.mubr.msk.bf16.gmra.mrb[156].mxu1 %vm249_vm3, %v3527_v47 }
 0x17a   :  { %3293 = vmatprep.mubr.msk.bf16.mxu0 %vm3650_vm1, %v3649_v0  ;;  %3397 = vmatprep.mubr.msk.bf16.mxu1 %vm3650_vm1, %v3649_v0 }
 0x17b   :  { %v4078_v3 = vmax.f32 %v589_v62, %v1118_v2 }
 0x17c   :  { %v470_v5 = vpop.f32.mrb[52].mxu0  ;;  %v999_v6 = vpop.f32.mrb[52].mxu1 }
 0x17d   :  { %v471_v8 = vadd.f32 %v3892_v61, %v470_v5  ;;  %v1000_v9 = vadd.f32 %v3892_v61, %v999_v6  ;;  %v3079_v11 = vpop.f32.mrb[53].mxu0  ;;  %v3183_v12 = vpop.f32.mrb[53].mxu1 }
 0x17e   :  { %v473_v19 = vpop.f32.mrb[54].mxu0  ;;  %v1002_v20 = vpop.f32.mrb[54].mxu1 }
 0x17f   :  { %v590_v22 = vmax.f32 %v471_v8, 0.0  ;;  %v1119_v23 = vmax.f32 %v1000_v9, 0.0  ;;  %v474_v25 = vadd.f32 %v3892_v61, %v473_v19  ;;  %v1003_v26 = vadd.f32 %v3892_v61, %v1002_v20  ;;  %v3080_v27 = vpop.f32.mrb[55].mxu0  ;;  %v3184_v28 = vpop.f32.mrb[55].mxu1 }
 0x181   :  { %v4084_v30 = vmax.f32 %v590_v22, %v1119_v23  ;;  %v591_v31 = vmax.f32 %v474_v25, 0.0  ;;  %v1120_v34 = vmax.f32 %v1003_v26, 0.0  ;;  %3294 = vmatmul.mubr.msk.bf16.gmra.mrb[160].mxu0 %vm249_vm3, %v3528_v14  ;;  %3398 = vmatmul.mubr.msk.bf16.gmra.mrb[160].mxu1 %vm249_vm3, %v3529_v16  ;;  %v3532_v22 = vld [vmem:[#allocation2 + $0x210] sm:$0xff]  }
 0x182   :  { %3297 = vmatprep.mubr.msk.bf16.mxu0 %vm3650_vm1, %v3649_v0  ;;  %3401 = vmatprep.mubr.msk.bf16.mxu1 %vm3650_vm1, %v3649_v0  ;;  %v3533_v23 = vld [vmem:[#allocation2 + $0x2d4] sm:$0xff]  }
 0x183   :  { %v4092_v37 = vmax.f32 %v591_v31, %v1120_v34 }
 0x184   :  { %v478_v41 = vpop.f32.mrb[56].mxu0  ;;  %v1007_v42 = vpop.f32.mrb[56].mxu1 }
 0x185   :  { %v479_v43 = vadd.f32 %v3892_v61, %v478_v41  ;;  %v1008_v44 = vadd.f32 %v3892_v61, %v1007_v42  ;;  %v3083_v46 = vpop.f32.mrb[57].mxu0  ;;  %v3187_v47 = vpop.f32.mrb[57].mxu1 }
 0x186   :  { %v481_v51 = vpop.f32.mrb[58].mxu0  ;;  %v1010_v52 = vpop.f32.mrb[58].mxu1 }
 0x187   :  { %v592_v53 = vmax.f32 %v479_v43, 0.0  ;;  %v1121_v54 = vmax.f32 %v1008_v44, 0.0  ;;  %v482_v56 = vadd.f32 %v3892_v61, %v481_v51  ;;  %v1011_v57 = vadd.f32 %v3892_v61, %v1010_v52  ;;  %v3084_v62 = vpop.f32.mrb[59].mxu0  ;;  %v3188_v2 = vpop.f32.mrb[59].mxu1 }
 0x189   :  { %v4098_v5 = vmax.f32 %v592_v53, %v1121_v54  ;;  %v593_v6 = vmax.f32 %v482_v56, 0.0  ;;  %v1122_v8 = vmax.f32 %v1011_v57, 0.0  ;;  %3298 = vmatmul.mubr.msk.bf16.gmra.mrb[164].mxu0 %vm249_vm3, %v3530_v49  ;;  %3402 = vmatmul.mubr.msk.bf16.gmra.mrb[164].mxu1 %vm249_vm3, %v3531_v50  ;;  %v3534_v56 = vld [vmem:[#allocation2 + $0x218] sm:$0xff]  }
 0x18a   :  { %3301 = vmatprep.mubr.msk.bf16.mxu0 %vm3650_vm1, %v3649_v0  ;;  %3405 = vmatprep.mubr.msk.bf16.mxu1 %vm3650_vm1, %v3649_v0  ;;  %v3535_v57 = vld [vmem:[#allocation2 + $0x2dc] sm:$0xff]  }
 0x18b   :  { %v4106_v9 = vmax.f32 %v593_v6, %v1122_v8 }
 0x18c   :  { %v486_v11 = vpop.f32.mrb[60].mxu0  ;;  %v1015_v12 = vpop.f32.mrb[60].mxu1 }
 0x18d   :  { %v487_v14 = vadd.f32 %v3892_v61, %v486_v11  ;;  %v1016_v16 = vadd.f32 %v3892_v61, %v1015_v12  ;;  %v3087_v19 = vpop.f32.mrb[61].mxu0  ;;  %v3191_v20 = vpop.f32.mrb[61].mxu1 }
 0x18e   :  { %v489_v25 = vpop.f32.mrb[62].mxu0  ;;  %v1018_v26 = vpop.f32.mrb[62].mxu1 }
 0x18f   :  { %v594_v27 = vmax.f32 %v487_v14, 0.0  ;;  %v1123_v28 = vmax.f32 %v1016_v16, 0.0  ;;  %v490_v31 = vadd.f32 %v3892_v61, %v489_v25  ;;  %v1019_v34 = vadd.f32 %v3892_v61, %v1018_v26  ;;  %v3088_v41 = vpop.f32.mrb[63].mxu0  ;;  %v3192_v42 = vpop.f32.mrb[63].mxu1 }
 0x190   :  { %v3536_v41 = vld [vmem:[#allocation2 + $0x220] sm:$0xff]  }
 0x191   :  { %v4112_v43 = vmax.f32 %v594_v27, %v1123_v28  ;;  %v595_v44 = vmax.f32 %v490_v31, 0.0  ;;  %v1124_v46 = vmax.f32 %v1019_v34, 0.0  ;;  %3302 = vmatmul.mubr.msk.bf16.gmra.mrb[168].mxu0 %vm249_vm3, %v3532_v22  ;;  %3406 = vmatmul.mubr.msk.bf16.gmra.mrb[168].mxu1 %vm249_vm3, %v3533_v23  ;;  %v3537_v42 = vld [vmem:[#allocation2 + $0x2e4] sm:$0xff]  }
 0x192   :  { %3305 = vmatprep.mubr.msk.bf16.mxu0 %vm3650_vm1, %v3649_v0  ;;  %3409 = vmatprep.mubr.msk.bf16.mxu1 %vm3650_vm1, %v3649_v0 }
 0x193   :  { %v4120_v47 = vmax.f32 %v595_v44, %v1124_v46 }
 0x194   :  { %v494_v49 = vpop.f32.mrb[64].mxu0  ;;  %v1023_v50 = vpop.f32.mrb[64].mxu1 }
 0x195   :  { %v495_v51 = vadd.f32 %v3892_v61, %v494_v49  ;;  %v1024_v52 = vadd.f32 %v3892_v61, %v1023_v50  ;;  %v3091_v53 = vpop.f32.mrb[65].mxu0  ;;  %v3195_v54 = vpop.f32.mrb[65].mxu1 }
 0x196   :  { %v497_v62 = vpop.f32.mrb[66].mxu0  ;;  %v1026_v2 = vpop.f32.mrb[66].mxu1 }
 0x197   :  { %v596_v6 = vmax.f32 %v495_v51, 0.0  ;;  %v1125_v8 = vmax.f32 %v1024_v52, 0.0  ;;  %v498_v11 = vadd.f32 %v3892_v61, %v497_v62  ;;  %v1027_v12 = vadd.f32 %v3892_v61, %v1026_v2  ;;  %v3092_v14 = vpop.f32.mrb[67].mxu0  ;;  %v3196_v16 = vpop.f32.mrb[67].mxu1 }
 0x199   :  { %v4126_v19 = vmax.f32 %v596_v6, %v1125_v8  ;;  %v597_v20 = vmax.f32 %v498_v11, 0.0  ;;  %v1126_v22 = vmax.f32 %v1027_v12, 0.0  ;;  %3306 = vmatmul.mubr.msk.bf16.gmra.mrb[172].mxu0 %vm249_vm3, %v3534_v56  ;;  %3410 = vmatmul.mubr.msk.bf16.gmra.mrb[172].mxu1 %vm249_vm3, %v3535_v57 }
 0x19a   :  { %3309 = vmatprep.mubr.msk.bf16.mxu0 %vm3650_vm1, %v3649_v0  ;;  %3413 = vmatprep.mubr.msk.bf16.mxu1 %vm3650_vm1, %v3649_v0 }
 0x19b   :  { %v4134_v23 = vmax.f32 %v597_v20, %v1126_v22  ;;  %v3538_v20 = vld [vmem:[#allocation2 + $0x228] sm:$0xff]  }
 0x19c   :  { %v502_v25 = vpop.f32.mrb[68].mxu0  ;;  %v1031_v26 = vpop.f32.mrb[68].mxu1  ;;  %v3539_v22 = vld [vmem:[#allocation2 + $0x2ec] sm:$0xff]  }
 0x19d   :  { %v503_v27 = vadd.f32 %v3892_v61, %v502_v25  ;;  %v1032_v28 = vadd.f32 %v3892_v61, %v1031_v26  ;;  %v3095_v31 = vpop.f32.mrb[69].mxu0  ;;  %v3199_v34 = vpop.f32.mrb[69].mxu1 }
 0x19e   :  { %v505_v44 = vpop.f32.mrb[70].mxu0  ;;  %v1034_v46 = vpop.f32.mrb[70].mxu1 }
 0x19f   :  { %v598_v49 = vmax.f32 %v503_v27, 0.0  ;;  %v1127_v50 = vmax.f32 %v1032_v28, 0.0  ;;  %v506_v51 = vadd.f32 %v3892_v61, %v505_v44  ;;  %v1035_v52 = vadd.f32 %v3892_v61, %v1034_v46  ;;  %v3096_v53 = vpop.f32.mrb[71].mxu0  ;;  %v3200_v54 = vpop.f32.mrb[71].mxu1 }
 0x1a1   :  { %v4140_v56 = vmax.f32 %v598_v49, %v1127_v50  ;;  %v599_v57 = vmax.f32 %v506_v51, 0.0  ;;  %v1128_v62 = vmax.f32 %v1035_v52, 0.0  ;;  %3310 = vmatmul.mubr.msk.bf16.gmra.mrb[176].mxu0 %vm249_vm3, %v3536_v41  ;;  %3414 = vmatmul.mubr.msk.bf16.gmra.mrb[176].mxu1 %vm249_vm3, %v3537_v42 }
 0x1a2   :  { %3313 = vmatprep.mubr.msk.bf16.mxu0 %vm3650_vm1, %v3649_v0  ;;  %3417 = vmatprep.mubr.msk.bf16.mxu1 %vm3650_vm1, %v3649_v0 }
 0x1a3   :  { %v4148_v2 = vmax.f32 %v599_v57, %v1128_v62 }
 0x1a4   :  { %v510_v6 = vpop.f32.mrb[72].mxu0  ;;  %v1039_v8 = vpop.f32.mrb[72].mxu1 }
 0x1a5   :  { %v511_v11 = vadd.f32 %v3892_v61, %v510_v6  ;;  %v1040_v12 = vadd.f32 %v3892_v61, %v1039_v8  ;;  %v3099_v14 = vpop.f32.mrb[73].mxu0  ;;  %v3203_v16 = vpop.f32.mrb[73].mxu1  ;;  %v3540_v6 = vld [vmem:[#allocation2 + $0x230] sm:$0xff]  }
 0x1a6   :  { %v513_v25 = vpop.f32.mrb[74].mxu0  ;;  %v1042_v26 = vpop.f32.mrb[74].mxu1  ;;  %v3541_v8 = vld [vmem:[#allocation2 + $0x2f4] sm:$0xff]  }
 0x1a7   :  { %v600_v27 = vmax.f32 %v511_v11, 0.0  ;;  %v1129_v28 = vmax.f32 %v1040_v12, 0.0  ;;  %v514_v31 = vadd.f32 %v3892_v61, %v513_v25  ;;  %v1043_v34 = vadd.f32 %v3892_v61, %v1042_v26  ;;  %v3100_v41 = vpop.f32.mrb[75].mxu0  ;;  %v3204_v42 = vpop.f32.mrb[75].mxu1 }
 0x1a9   :  { %v4154_v44 = vmax.f32 %v600_v27, %v1129_v28  ;;  %v601_v46 = vmax.f32 %v514_v31, 0.0  ;;  %v1130_v49 = vmax.f32 %v1043_v34, 0.0  ;;  %3314 = vmatmul.mubr.msk.bf16.gmra.mrb[180].mxu0 %vm249_vm3, %v3538_v20  ;;  %3418 = vmatmul.mubr.msk.bf16.gmra.mrb[180].mxu1 %vm249_vm3, %v3539_v22 }
 0x1aa   :  { %3317 = vmatprep.mubr.msk.bf16.mxu0 %vm3650_vm1, %v3649_v0  ;;  %3421 = vmatprep.mubr.msk.bf16.mxu1 %vm3650_vm1, %v3649_v0 }
 0x1ab   :  { %v4162_v50 = vmax.f32 %v601_v46, %v1130_v49 }
 0x1ac   :  { %v518_v51 = vpop.f32.mrb[76].mxu0  ;;  %v1047_v52 = vpop.f32.mrb[76].mxu1 }
 0x1ad   :  { %v519_v53 = vadd.f32 %v3892_v61, %v518_v51  ;;  %v1048_v54 = vadd.f32 %v3892_v61, %v1047_v52  ;;  %v3103_v57 = vpop.f32.mrb[77].mxu0  ;;  %v3207_v62 = vpop.f32.mrb[77].mxu1 }
 0x1ae   :  { %v521_v11 = vpop.f32.mrb[78].mxu0  ;;  %v1050_v12 = vpop.f32.mrb[78].mxu1 }
 0x1af   :  { %v602_v14 = vmax.f32 %v519_v53, 0.0  ;;  %v1131_v16 = vmax.f32 %v1048_v54, 0.0  ;;  %v522_v20 = vadd.f32 %v3892_v61, %v521_v11  ;;  %v1051_v22 = vadd.f32 %v3892_v61, %v1050_v12  ;;  %v3104_v25 = vpop.f32.mrb[79].mxu0  ;;  %v3208_v26 = vpop.f32.mrb[79].mxu1  ;;  %v3542_v53 = vld [vmem:[#allocation2 + $0x238] sm:$0xff]  }
 0x1b0   :  { %v3543_v54 = vld [vmem:[#allocation2 + $0x2fc] sm:$0xff]  }
 0x1b1   :  { %v4168_v27 = vmax.f32 %v602_v14, %v1131_v16  ;;  %v603_v28 = vmax.f32 %v522_v20, 0.0  ;;  %v1132_v31 = vmax.f32 %v1051_v22, 0.0  ;;  %3318 = vmatmul.mubr.msk.bf16.gmra.mrb[184].mxu0 %vm249_vm3, %v3540_v6  ;;  %3422 = vmatmul.mubr.msk.bf16.gmra.mrb[184].mxu1 %vm249_vm3, %v3541_v8 }
 0x1b2   :  { %3321 = vmatprep.mubr.msk.bf16.mxu0 %vm3650_vm1, %v3649_v0  ;;  %3425 = vmatprep.mubr.msk.bf16.mxu1 %vm3650_vm1, %v3649_v0 }
 0x1b3   :  { %v4176_v34 = vmax.f32 %v603_v28, %v1132_v31 }
 0x1b4   :  { %v526_v41 = vpop.f32.mrb[80].mxu0  ;;  %v1055_v42 = vpop.f32.mrb[80].mxu1 }
 0x1b5   :  { %v527_v46 = vadd.f32 %v3892_v61, %v526_v41  ;;  %v1056_v49 = vadd.f32 %v3892_v61, %v1055_v42  ;;  %v3107_v51 = vpop.f32.mrb[81].mxu0  ;;  %v3211_v52 = vpop.f32.mrb[81].mxu1 }
 0x1b6   :  { %v529_v57 = vpop.f32.mrb[82].mxu0  ;;  %v1058_v62 = vpop.f32.mrb[82].mxu1  ;;  %v3544_v51 = vld [vmem:[#allocation2 + $0x240] sm:$0xff]  }
 0x1b7   :  { %v604_v6 = vmax.f32 %v527_v46, 0.0  ;;  %v1133_v8 = vmax.f32 %v1056_v49, 0.0  ;;  %v530_v11 = vadd.f32 %v3892_v61, %v529_v57  ;;  %v1059_v12 = vadd.f32 %v3892_v61, %v1058_v62  ;;  %v3108_v14 = vpop.f32.mrb[83].mxu0  ;;  %v3212_v16 = vpop.f32.mrb[83].mxu1  ;;  %v3545_v52 = vld [vmem:[#allocation2 + $0x304] sm:$0xff]  }
 0x1b9   :  { %v4182_v20 = vmax.f32 %v604_v6, %v1133_v8  ;;  %v605_v22 = vmax.f32 %v530_v11, 0.0  ;;  %v1134_v25 = vmax.f32 %v1059_v12, 0.0  ;;  %3322 = vmatmul.mubr.msk.bf16.gmra.mrb[188].mxu0 %vm249_vm3, %v3542_v53  ;;  %3426 = vmatmul.mubr.msk.bf16.gmra.mrb[188].mxu1 %vm249_vm3, %v3543_v54  ;;  %v4194_v6 = vld [vmem:[#allocation7] ss:$0 sm:$0xff] }
 0x1ba   :  { %3325 = vmatprep.mubr.msk.bf16.mxu0 %vm3650_vm1, %v3649_v0  ;;  %3429 = vmatprep.mubr.msk.bf16.mxu1 %vm3650_vm1, %v3649_v0 }
 0x1bb   :  { %v4190_v26 = vmax.f32 %v605_v22, %v1134_v25 }
 0x1bc   :  { %v534_v28 = vpop.f32.mrb[84].mxu0  ;;  %v1063_v31 = vpop.f32.mrb[84].mxu1 }
 0x1bd   :  { %v535_v41 = vadd.f32 %v3892_v61, %v534_v28  ;;  %v1064_v42 = vadd.f32 %v3892_v61, %v1063_v31  ;;  %v3111_v46 = vpop.f32.mrb[85].mxu0  ;;  %v3215_v49 = vpop.f32.mrb[85].mxu1 }
 0x1be   :  { %v537_v53 = vpop.f32.mrb[86].mxu0  ;;  %v1066_v54 = vpop.f32.mrb[86].mxu1 }
 0x1bf   :  { %v606_v57 = vmax.f32 %v535_v41, 0.0  ;;  %v1135_v62 = vmax.f32 %v1064_v42, 0.0  ;;  %v538_v8 = vadd.f32 %v4194_v6, %v537_v53  ;;  %v1067_v11 = vadd.f32 %v4194_v6, %v1066_v54  ;;  %v3112_v12 = vpop.f32.mrb[87].mxu0  ;;  %v3216_v14 = vpop.f32.mrb[87].mxu1  ;;  %v3546_v53 = vld [vmem:[#allocation2 + $0x248] ss:$0 sps:$4 sm:$0xff]  }
 0x1c1   :  { %v4198_v16 = vmax.f32 %v606_v57, %v1135_v62  ;;  %v607_v22 = vmax.f32 %v538_v8, 0.0  ;;  %v1136_v61 = vmax.f32 %v1067_v11, 0.0  ;;  %3326 = vmatmul.mubr.msk.bf16.gmra.mrb[192].mxu0 %vm249_vm3, %v3544_v51  ;;  %3430 = vmatmul.mubr.msk.bf16.gmra.mrb[192].mxu1 %vm249_vm3, %v3545_v52  ;;  %v3547_v51 = vld [vmem:[#allocation2 + $0x30c] ss:$0 sps:$4 sm:$0xff]  }
 0x1c2   :  { %3329 = vmatprep.mubr.msk.bf16.mxu0 %vm3650_vm1, %v3649_v0  ;;  %3433 = vmatprep.mubr.msk.bf16.mxu1 %vm3650_vm1, %v3649_v0 }
 0x1c3   :  { %v4206_v25 = vmax.f32 %v607_v22, %v1136_v61 }
 0x1c4   :  { %v542_v28 = vpop.f32.mrb[88].mxu0  ;;  %v1071_v31 = vpop.f32.mrb[88].mxu1 }
 0x1c5   :  { %4447 = vst [vmem:[#allocation12_spill] sm:$0xff] %v4206_v25  ;;  %v543_v41 = vadd.f32 %v4194_v6, %v542_v28  ;;  %v1072_v42 = vadd.f32 %v4194_v6, %v1071_v31  ;;  %v3115_v46 = vpop.f32.mrb[89].mxu0  ;;  %v3219_v49 = vpop.f32.mrb[89].mxu1 }
 0x1c6   :  { %v545_v54 = vpop.f32.mrb[90].mxu0  ;;  %v1074_v52 = vpop.f32.mrb[90].mxu1 }
 0x1c7   :  { %v608_v57 = vmax.f32 %v543_v41, 0.0  ;;  %v1137_v62 = vmax.f32 %v1072_v42, 0.0  ;;  %v546_v8 = vadd.f32 %v4194_v6, %v545_v54  ;;  %v1075_v0 = vadd.f32 %v4194_v6, %v1074_v52  ;;  %v3116_v11 = vpop.f32.mrb[91].mxu0  ;;  %v3220_v12 = vpop.f32.mrb[91].mxu1 }
 0x1c9   :  { %v4212_v14 = vmax.f32 %v608_v57, %v1137_v62  ;;  %v609_v22 = vmax.f32 %v546_v8, 0.0  ;;  %v1138_v61 = vmax.f32 %v1075_v0, 0.0  ;;  %3330 = vmatmul.mubr.msk.bf16.gmra.mrb[196].mxu0 %vm249_vm3, %v3546_v53  ;;  %3434 = vmatmul.mubr.msk.bf16.gmra.mrb[196].mxu1 %vm249_vm3, %v3547_v51 }
 0x1cb   :  { %4448 = vst [vmem:[#allocation13_spill] sm:$0xff] %v4212_v14  ;;  %v4216_v28 = vmax.f32 %v609_v22, %v1138_v61 }
 0x1cc   :  { %v550_v31 = vpop.f32.mrb[92].mxu0  ;;  %v1079_v46 = vpop.f32.mrb[92].mxu1 }
 0x1cd   :  { %4449 = vst [vmem:[#allocation14_spill] sm:$0xff] %v4216_v28  ;;  %v551_v41 = vadd.f32 %v4194_v6, %v550_v31  ;;  %v1080_v42 = vadd.f32 %v4194_v6, %v1079_v46  ;;  %v3119_v49 = vpop.f32.mrb[93].mxu0  ;;  %v3223_v54 = vpop.f32.mrb[93].mxu1 }
 0x1ce   :  { %v553_v52 = vpop.f32.mrb[94].mxu0  ;;  %v1082_v11 = vpop.f32.mrb[94].mxu1 }
 0x1cf   :  { %v610_v57 = vmax.f32 %v551_v41, 0.0  ;;  %v1139_v62 = vmax.f32 %v1080_v42, 0.0  ;;  %v554_v8 = vadd.f32 %v4194_v6, %v553_v52  ;;  %v1083_v53 = vadd.f32 %v4194_v6, %v1082_v11  ;;  %v3120_v0 = vpop.f32.mrb[95].mxu0  ;;  %v3224_v51 = vpop.f32.mrb[95].mxu1 }
 0x1d1   :  { %v4222_v12 = vmax.f32 %v610_v57, %v1139_v62  ;;  %v611_v22 = vmax.f32 %v554_v8, 0.0  ;;  %v1140_v61 = vmax.f32 %v1083_v53, 0.0 }
 0x1d3   :  { %v4224_v28 = vmax.f32 %v611_v22, %v1140_v61 }
 0x1d4   :  { %v558_v31 = vpop.f32.mrb[96].mxu0  ;;  %v1087_v46 = vpop.f32.mrb[96].mxu1 }
 0x1d5   :  { %4450 = vst [vmem:[#allocation15_spill] sm:$0xff] %v4224_v28  ;;  %v559_v49 = vadd.f32 %v4194_v6, %v558_v31  ;;  %v1088_v54 = vadd.f32 %v4194_v6, %v1087_v46  ;;  %v3123_v41 = vpop.f32.mrb[97].mxu0  ;;  %v3227_v42 = vpop.f32.mrb[97].mxu1 }
 0x1d6   :  { %v561_v14 = vpop.f32.mrb[98].mxu0  ;;  %v1090_v52 = vpop.f32.mrb[98].mxu1 }
 0x1d7   :  { %v612_v25 = vmax.f32 %v559_v49, 0.0  ;;  %v1141_v11 = vmax.f32 %v1088_v54, 0.0  ;;  %v3124_v0 = vpop.f32.mrb[99].mxu0  ;;  %v3228_v51 = vpop.f32.mrb[99].mxu1 }
 0x1d9   :  { %v4228_v57 = vmax.f32 %v612_v25, %v1141_v11 }
 0x1db   :  { %4451 = vst [vmem:[#allocation16_spill] sm:$0xff] %v4228_v57 }
 0x1dc   :  { %v1473_v62 = vpop.f32.mrb[100].mxu0  ;;  %v2002_v8 = vpop.f32.mrb[100].mxu1 }
 0x1dd   :  { %v1474_v53 = vadd.f32 %v4194_v6, %v1473_v62  ;;  %v2003_v22 = vadd.f32 %v4194_v6, %v2002_v8  ;;  %v3235_v61 = vpop.f32.mrb[101].mxu0  ;;  %v3339_v31 = vpop.f32.mrb[101].mxu1 }
 0x1de   :  { %v1476_v28 = vpop.f32.mrb[102].mxu0  ;;  %v2005_v46 = vpop.f32.mrb[102].mxu1 }
 0x1df   :  { %v1671_v41 = vmax.f32 %v1474_v53, 0.0  ;;  %v2200_v42 = vmax.f32 %v2003_v22, 0.0  ;;  %v1477_v14 = vadd.f32 %v4194_v6, %v1476_v28  ;;  %v2006_v49 = vadd.f32 %v4194_v6, %v2005_v46  ;;  %v3236_v54 = vpop.f32.mrb[103].mxu0  ;;  %v3340_v52 = vpop.f32.mrb[103].mxu1 }
 0x1e1   :  { %v2249_v25 = vmax.f32 %v1671_v41, %v2200_v42  ;;  %v1672_v11 = vmax.f32 %v1477_v14, 0.0  ;;  %v2201_v0 = vmax.f32 %v2006_v49, 0.0 }
 0x1e3   :  { %v2298_v51 = vmax.f32 %v3902_v15, %v2249_v25  ;;  %v2250_v62 = vmax.f32 %v1672_v11, %v2201_v0 }
 0x1e4   :  { %v1481_v8 = vpop.f32.mrb[104].mxu0  ;;  %v2010_v61 = vpop.f32.mrb[104].mxu1 }
 0x1e5   :  { %v2864_v31 = vpack.c.bf16 %v2298_v51, %v2298_v51  ;;  %v2299_v57 = vmax.f32 %v3910_v18, %v2250_v62  ;;  %v1482_v53 = vadd.f32 %v4194_v6, %v1481_v8  ;;  %v2011_v28 = vadd.f32 %v4194_v6, %v2010_v61  ;;  %v3239_v22 = vpop.f32.mrb[105].mxu0  ;;  %v3343_v46 = vpop.f32.mrb[105].mxu1 }
 0x1e6   :  { %v1484_v54 = vpop.f32.mrb[106].mxu0  ;;  %v2013_v52 = vpop.f32.mrb[106].mxu1 }
 0x1e7   :  { %2545 = vst.msk [vmem:[#allocation8] sm:$0xf] %vm2544_vm4, %v2864_v31  ;;  %v2865_v41 = vpack.c.bf16 %v2299_v57, %v2299_v57  ;;  %v1673_v42 = vmax.f32 %v1482_v53, 0.0  ;;  %v2202_v15 = vmax.f32 %v2011_v28, 0.0  ;;  %v1485_v14 = vadd.f32 %v4194_v6, %v1484_v54  ;;  %v3240_v49 = vpop.f32.mrb[107].mxu0  ;;  %v3344_v25 = vpop.f32.mrb[107].mxu1 }
 0x1e8   :  { %v2014_v11 = vadd.f32 %v4194_v6, %v2013_v52 }
 0x1e9   :  { %2546 = vst.msk [vmem:[#allocation8 + $0x4] sm:$0xf] %vm2544_vm4, %v2865_v41  ;;  %v2251_v18 = vmax.f32 %v1673_v42, %v2202_v15  ;;  %v1674_v0 = vmax.f32 %v1485_v14, 0.0 }
 0x1ea   :  { %v2203_v51 = vmax.f32 %v2014_v11, 0.0 }
 0x1eb   :  { %v2300_v62 = vmax.f32 %v3916_v35, %v2251_v18 }
 0x1ec   :  { %v2252_v8 = vmax.f32 %v1674_v0, %v2203_v51  ;;  %v1489_v61 = vpop.f32.mrb[108].mxu0  ;;  %v2018_v22 = vpop.f32.mrb[108].mxu1 }
 0x1ed   :  { %v2866_v31 = vpack.c.bf16 %v2300_v62, %v2300_v62  ;;  %v1490_v57 = vadd.f32 %v4194_v6, %v1489_v61  ;;  %v2019_v53 = vadd.f32 %v4194_v6, %v2018_v22  ;;  %v3243_v28 = vpop.f32.mrb[109].mxu0  ;;  %v3347_v46 = vpop.f32.mrb[109].mxu1 }
 0x1ee   :  { %v2301_v54 = vmax.f32 %v3924_v38, %v2252_v8  ;;  %v1492_v52 = vpop.f32.mrb[110].mxu0  ;;  %v2021_v49 = vpop.f32.mrb[110].mxu1 }
 0x1ef   :  { %2547 = vst.msk [vmem:[#allocation8 + $0x8] sm:$0xf] %vm2544_vm4, %v2866_v31  ;;  %v1675_v41 = vmax.f32 %v1490_v57, 0.0  ;;  %v2204_v42 = vmax.f32 %v2019_v53, 0.0  ;;  %v1493_v35 = vadd.f32 %v4194_v6, %v1492_v52  ;;  %v2022_v15 = vadd.f32 %v4194_v6, %v2021_v49  ;;  %v3244_v14 = vpop.f32.mrb[111].mxu0  ;;  %v3348_v25 = vpop.f32.mrb[111].mxu1 }
 0x1f0   :  { %v2867_v11 = vpack.c.bf16 %v2301_v54, %v2301_v54 }
 0x1f1   :  { %v2253_v18 = vmax.f32 %v1675_v41, %v2204_v42  ;;  %v1676_v0 = vmax.f32 %v1493_v35, 0.0  ;;  %v2205_v51 = vmax.f32 %v2022_v15, 0.0 }
 0x1f2   :  { %2548 = vst.msk [vmem:[#allocation8 + $0xc] sm:$0xf] %vm2544_vm4, %v2867_v11 }
 0x1f3   :  { %v2302_v38 = vmax.f32 %v3930_v55, %v2253_v18  ;;  %v2254_v62 = vmax.f32 %v1676_v0, %v2205_v51 }
 0x1f4   :  { %v1497_v8 = vpop.f32.mrb[112].mxu0  ;;  %v2026_v61 = vpop.f32.mrb[112].mxu1 }
 0x1f5   :  { %v2868_v22 = vpack.c.bf16 %v2302_v38, %v2302_v38  ;;  %v2303_v31 = vmax.f32 %v3938_v58, %v2254_v62  ;;  %v1498_v57 = vadd.f32 %v4194_v6, %v1497_v8  ;;  %v2027_v53 = vadd.f32 %v4194_v6, %v2026_v61  ;;  %v3247_v28 = vpop.f32.mrb[113].mxu0  ;;  %v3351_v46 = vpop.f32.mrb[113].mxu1 }
 0x1f6   :  { %v1500_v54 = vpop.f32.mrb[114].mxu0  ;;  %v2029_v52 = vpop.f32.mrb[114].mxu1 }
 0x1f7   :  { %2549 = vst.msk [vmem:[#allocation8 + $0x10] sm:$0xf] %vm2544_vm4, %v2868_v22  ;;  %v2869_v49 = vpack.c.bf16 %v2303_v31, %v2303_v31  ;;  %v1677_v41 = vmax.f32 %v1498_v57, 0.0  ;;  %v2206_v42 = vmax.f32 %v2027_v53, 0.0  ;;  %v1501_v55 = vadd.f32 %v4194_v6, %v1500_v54  ;;  %v3248_v35 = vpop.f32.mrb[115].mxu0  ;;  %v3352_v15 = vpop.f32.mrb[115].mxu1 }
 0x1f8   :  { %v2030_v14 = vadd.f32 %v4194_v6, %v2029_v52 }
 0x1f9   :  { %2550 = vst.msk [vmem:[#allocation8 + $0x14] sm:$0xf] %vm2544_vm4, %v2869_v49  ;;  %v2255_v58 = vmax.f32 %v1677_v41, %v2206_v42  ;;  %v1678_v25 = vmax.f32 %v1501_v55, 0.0 }
 0x1fa   :  { %v2207_v11 = vmax.f32 %v2030_v14, 0.0 }
 0x1fb   :  { %v2304_v18 = vmax.f32 %v3944_v13, %v2255_v58 }
 0x1fc   :  { %v2256_v0 = vmax.f32 %v1678_v25, %v2207_v11  ;;  %v1505_v51 = vpop.f32.mrb[116].mxu0  ;;  %v2034_v38 = vpop.f32.mrb[116].mxu1 }
 0x1fd   :  { %v2870_v62 = vpack.c.bf16 %v2304_v18, %v2304_v18  ;;  %v1506_v8 = vadd.f32 %v4194_v6, %v1505_v51  ;;  %v2035_v61 = vadd.f32 %v4194_v6, %v2034_v38  ;;  %v3251_v22 = vpop.f32.mrb[117].mxu0  ;;  %v3355_v31 = vpop.f32.mrb[117].mxu1 }
 0x1fe   :  { %v2305_v57 = vmax.f32 %v3952_v17, %v2256_v0  ;;  %v1508_v53 = vpop.f32.mrb[118].mxu0  ;;  %v2037_v28 = vpop.f32.mrb[118].mxu1 }
 0x1ff   :  { %2551 = vst.msk [vmem:[#allocation8 + $0x18] sm:$0xf] %vm2544_vm4, %v2870_v62  ;;  %v1679_v46 = vmax.f32 %v1506_v8, 0.0  ;;  %v2208_v54 = vmax.f32 %v2035_v61, 0.0  ;;  %v1509_v13 = vadd.f32 %v4194_v6, %v1508_v53  ;;  %v2038_v52 = vadd.f32 %v4194_v6, %v2037_v28  ;;  %v3252_v49 = vpop.f32.mrb[119].mxu0  ;;  %v3356_v41 = vpop.f32.mrb[119].mxu1 }
 0x200   :  { %v2871_v42 = vpack.c.bf16 %v2305_v57, %v2305_v57 }
 0x201   :  { %v2257_v55 = vmax.f32 %v1679_v46, %v2208_v54  ;;  %v1680_v35 = vmax.f32 %v1509_v13, 0.0  ;;  %v2209_v15 = vmax.f32 %v2038_v52, 0.0 }
 0x202   :  { %2552 = vst.msk [vmem:[#allocation8 + $0x1c] sm:$0xf] %vm2544_vm4, %v2871_v42 }
 0x203   :  { %v2306_v17 = vmax.f32 %v3958_v36, %v2257_v55  ;;  %v2258_v14 = vmax.f32 %v1680_v35, %v2209_v15 }
 0x204   :  { %v1513_v58 = vpop.f32.mrb[120].mxu0  ;;  %v2042_v25 = vpop.f32.mrb[120].mxu1 }
 0x205   :  { %v2872_v11 = vpack.c.bf16 %v2306_v17, %v2306_v17  ;;  %v2307_v18 = vmax.f32 %v3966_v40, %v2258_v14  ;;  %v1514_v0 = vadd.f32 %v4194_v6, %v1513_v58  ;;  %v2043_v51 = vadd.f32 %v4194_v6, %v2042_v25  ;;  %v3255_v38 = vpop.f32.mrb[121].mxu0  ;;  %v3359_v62 = vpop.f32.mrb[121].mxu1 }
 0x206   :  { %v1516_v8 = vpop.f32.mrb[122].mxu0  ;;  %v2045_v61 = vpop.f32.mrb[122].mxu1 }
 0x207   :  { %2553 = vst.msk [vmem:[#allocation8 + $0x20] sm:$0xf] %vm2544_vm4, %v2872_v11  ;;  %v2873_v22 = vpack.c.bf16 %v2307_v18, %v2307_v18  ;;  %v1681_v31 = vmax.f32 %v1514_v0, 0.0  ;;  %v2210_v57 = vmax.f32 %v2043_v51, 0.0  ;;  %v1517_v36 = vadd.f32 %v4194_v6, %v1516_v8  ;;  %v3256_v53 = vpop.f32.mrb[123].mxu0  ;;  %v3360_v28 = vpop.f32.mrb[123].mxu1 }
 0x208   :  { %v2046_v46 = vadd.f32 %v4194_v6, %v2045_v61 }
 0x209   :  { %2554 = vst.msk [vmem:[#allocation8 + $0x24] sm:$0xf] %vm2544_vm4, %v2873_v22  ;;  %v2259_v40 = vmax.f32 %v1681_v31, %v2210_v57  ;;  %v1682_v54 = vmax.f32 %v1517_v36, 0.0 }
 0x20a   :  { %v2211_v13 = vmax.f32 %v2046_v46, 0.0 }
 0x20b   :  { %v2308_v52 = vmax.f32 %v3972_v59, %v2259_v40 }
 0x20c   :  { %v2260_v49 = vmax.f32 %v1682_v54, %v2211_v13  ;;  %v1521_v41 = vpop.f32.mrb[124].mxu0  ;;  %v2050_v42 = vpop.f32.mrb[124].mxu1 }
 0x20d   :  { %v2874_v55 = vpack.c.bf16 %v2308_v52, %v2308_v52  ;;  %v1522_v35 = vadd.f32 %v4194_v6, %v1521_v41  ;;  %v2051_v15 = vadd.f32 %v4194_v6, %v2050_v42  ;;  %v3259_v17 = vpop.f32.mrb[125].mxu0  ;;  %v3363_v14 = vpop.f32.mrb[125].mxu1 }
 0x20e   :  { %v2309_v58 = vmax.f32 %v3980_v63, %v2260_v49  ;;  %v1524_v25 = vpop.f32.mrb[126].mxu0  ;;  %v2053_v11 = vpop.f32.mrb[126].mxu1 }
 0x20f   :  { %2555 = vst.msk [vmem:[#allocation8 + $0x28] sm:$0xf] %vm2544_vm4, %v2874_v55  ;;  %v1683_v18 = vmax.f32 %v1522_v35, 0.0  ;;  %v2212_v0 = vmax.f32 %v2051_v15, 0.0  ;;  %v1525_v59 = vadd.f32 %v4194_v6, %v1524_v25  ;;  %v2054_v51 = vadd.f32 %v4194_v6, %v2053_v11  ;;  %v3260_v38 = vpop.f32.mrb[127].mxu0  ;;  %v3364_v62 = vpop.f32.mrb[127].mxu1 }
 0x210   :  { %v2875_v8 = vpack.c.bf16 %v2309_v58, %v2309_v58 }
 0x211   :  { %v2261_v61 = vmax.f32 %v1683_v18, %v2212_v0  ;;  %v1684_v22 = vmax.f32 %v1525_v59, 0.0  ;;  %v2213_v31 = vmax.f32 %v2054_v51, 0.0 }
 0x212   :  { %2556 = vst.msk [vmem:[#allocation8 + $0x2c] sm:$0xf] %vm2544_vm4, %v2875_v8 }
 0x213   :  { %v2310_v63 = vmax.f32 %v3986_v21, %v2261_v61  ;;  %v2262_v57 = vmax.f32 %v1684_v22, %v2213_v31 }
 0x214   :  { %v1529_v36 = vpop.f32.mrb[128].mxu0  ;;  %v2058_v53 = vpop.f32.mrb[128].mxu1 }
 0x215   :  { %v2876_v28 = vpack.c.bf16 %v2310_v63, %v2310_v63  ;;  %v2311_v46 = vmax.f32 %v3994_v24, %v2262_v57  ;;  %v1530_v40 = vadd.f32 %v4194_v6, %v1529_v36  ;;  %v2059_v54 = vadd.f32 %v4194_v6, %v2058_v53  ;;  %v3263_v13 = vpop.f32.mrb[129].mxu0  ;;  %v3367_v52 = vpop.f32.mrb[129].mxu1 }
 0x216   :  { %v1532_v49 = vpop.f32.mrb[130].mxu0  ;;  %v2061_v41 = vpop.f32.mrb[130].mxu1 }
 0x217   :  { %2557 = vst.msk [vmem:[#allocation8 + $0x30] sm:$0xf] %vm2544_vm4, %v2876_v28  ;;  %v2877_v42 = vpack.c.bf16 %v2311_v46, %v2311_v46  ;;  %v1685_v55 = vmax.f32 %v1530_v40, 0.0  ;;  %v2214_v35 = vmax.f32 %v2059_v54, 0.0  ;;  %v1533_v21 = vadd.f32 %v4194_v6, %v1532_v49  ;;  %v3264_v15 = vpop.f32.mrb[131].mxu0  ;;  %v3368_v17 = vpop.f32.mrb[131].mxu1 }
 0x218   :  { %v2062_v14 = vadd.f32 %v4194_v6, %v2061_v41 }
 0x219   :  { %2558 = vst.msk [vmem:[#allocation8 + $0x34] sm:$0xf] %vm2544_vm4, %v2877_v42  ;;  %v2263_v24 = vmax.f32 %v1685_v55, %v2214_v35  ;;  %v1686_v58 = vmax.f32 %v1533_v21, 0.0 }
 0x21a   :  { %v2215_v25 = vmax.f32 %v2062_v14, 0.0 }
 0x21b   :  { %v2312_v11 = vmax.f32 %v4000_v45, %v2263_v24 }
 0x21c   :  { %v2264_v18 = vmax.f32 %v1686_v58, %v2215_v25  ;;  %v1537_v0 = vpop.f32.mrb[132].mxu0  ;;  %v2066_v59 = vpop.f32.mrb[132].mxu1 }
 0x21d   :  { %v2878_v51 = vpack.c.bf16 %v2312_v11, %v2312_v11  ;;  %v1538_v38 = vadd.f32 %v4194_v6, %v1537_v0  ;;  %v2067_v62 = vadd.f32 %v4194_v6, %v2066_v59  ;;  %v3267_v8 = vpop.f32.mrb[133].mxu0  ;;  %v3371_v61 = vpop.f32.mrb[133].mxu1 }
 0x21e   :  { %v2313_v22 = vmax.f32 %v4008_v48, %v2264_v18  ;;  %v1540_v31 = vpop.f32.mrb[134].mxu0  ;;  %v2069_v63 = vpop.f32.mrb[134].mxu1 }
 0x21f   :  { %2559 = vst.msk [vmem:[#allocation8 + $0x38] sm:$0xf] %vm2544_vm4, %v2878_v51  ;;  %v1687_v57 = vmax.f32 %v1538_v38, 0.0  ;;  %v2216_v36 = vmax.f32 %v2067_v62, 0.0  ;;  %v1541_v45 = vadd.f32 %v4194_v6, %v1540_v31  ;;  %v2070_v53 = vadd.f32 %v4194_v6, %v2069_v63  ;;  %v3268_v28 = vpop.f32.mrb[135].mxu0  ;;  %v3372_v46 = vpop.f32.mrb[135].mxu1 }
 0x220   :  { %v2879_v40 = vpack.c.bf16 %v2313_v22, %v2313_v22 }
 0x221   :  { %v2265_v54 = vmax.f32 %v1687_v57, %v2216_v36  ;;  %v1688_v13 = vmax.f32 %v1541_v45, 0.0  ;;  %v2217_v52 = vmax.f32 %v2070_v53, 0.0 }
 0x222   :  { %2560 = vst.msk [vmem:[#allocation8 + $0x3c] sm:$0xf] %vm2544_vm4, %v2879_v40 }
 0x223   :  { %v2314_v48 = vmax.f32 %v4014_v7, %v2265_v54  ;;  %v2266_v49 = vmax.f32 %v1688_v13, %v2217_v52 }
 0x224   :  { %v1545_v41 = vpop.f32.mrb[136].mxu0  ;;  %v2074_v42 = vpop.f32.mrb[136].mxu1 }
 0x225   :  { %v2880_v55 = vpack.c.bf16 %v2314_v48, %v2314_v48  ;;  %v2315_v35 = vmax.f32 %v4022_v10, %v2266_v49  ;;  %v1546_v21 = vadd.f32 %v4194_v6, %v1545_v41  ;;  %v2075_v15 = vadd.f32 %v4194_v6, %v2074_v42  ;;  %v3271_v17 = vpop.f32.mrb[137].mxu0  ;;  %v3375_v14 = vpop.f32.mrb[137].mxu1 }
 0x226   :  { %v1548_v24 = vpop.f32.mrb[138].mxu0  ;;  %v2077_v58 = vpop.f32.mrb[138].mxu1 }
 0x227   :  { %2561 = vst.msk [vmem:[#allocation8 + $0x40] sm:$0xf] %vm2544_vm4, %v2880_v55  ;;  %v2881_v25 = vpack.c.bf16 %v2315_v35, %v2315_v35  ;;  %v1689_v11 = vmax.f32 %v1546_v21, 0.0  ;;  %v2218_v18 = vmax.f32 %v2075_v15, 0.0  ;;  %v1549_v7 = vadd.f32 %v4194_v6, %v1548_v24  ;;  %v3272_v0 = vpop.f32.mrb[139].mxu0  ;;  %v3376_v59 = vpop.f32.mrb[139].mxu1 }
 0x228   :  { %v2078_v51 = vadd.f32 %v4194_v6, %v2077_v58 }
 0x229   :  { %2562 = vst.msk [vmem:[#allocation8 + $0x44] sm:$0xf] %vm2544_vm4, %v2881_v25  ;;  %v2267_v10 = vmax.f32 %v1689_v11, %v2218_v18  ;;  %v1690_v38 = vmax.f32 %v1549_v7, 0.0 }
 0x22a   :  { %v2219_v62 = vmax.f32 %v2078_v51, 0.0 }
 0x22b   :  { %v2316_v8 = vmax.f32 %v4028_v33, %v2267_v10 }
 0x22c   :  { %v2268_v61 = vmax.f32 %v1690_v38, %v2219_v62  ;;  %v1553_v22 = vpop.f32.mrb[140].mxu0  ;;  %v2082_v31 = vpop.f32.mrb[140].mxu1 }
 0x22d   :  { %v2882_v63 = vpack.c.bf16 %v2316_v8, %v2316_v8  ;;  %v1554_v57 = vadd.f32 %v4194_v6, %v1553_v22  ;;  %v2083_v36 = vadd.f32 %v4194_v6, %v2082_v31  ;;  %v3275_v45 = vpop.f32.mrb[141].mxu0  ;;  %v3379_v53 = vpop.f32.mrb[141].mxu1 }
 0x22e   :  { %v2317_v28 = vmax.f32 %v4036_v39, %v2268_v61  ;;  %v1556_v46 = vpop.f32.mrb[142].mxu0  ;;  %v2085_v40 = vpop.f32.mrb[142].mxu1 }
 0x22f   :  { %2563 = vst.msk [vmem:[#allocation8 + $0x48] sm:$0xf] %vm2544_vm4, %v2882_v63  ;;  %v1691_v54 = vmax.f32 %v1554_v57, 0.0  ;;  %v2220_v13 = vmax.f32 %v2083_v36, 0.0  ;;  %v1557_v33 = vadd.f32 %v4194_v6, %v1556_v46  ;;  %v2086_v52 = vadd.f32 %v4194_v6, %v2085_v40  ;;  %v3276_v48 = vpop.f32.mrb[143].mxu0  ;;  %v3380_v49 = vpop.f32.mrb[143].mxu1 }
 0x230   :  { %v2883_v41 = vpack.c.bf16 %v2317_v28, %v2317_v28 }
 0x231   :  { %v2269_v42 = vmax.f32 %v1691_v54, %v2220_v13  ;;  %v1692_v55 = vmax.f32 %v1557_v33, 0.0  ;;  %v2221_v35 = vmax.f32 %v2086_v52, 0.0 }
 0x232   :  { %2564 = vst.msk [vmem:[#allocation8 + $0x4c] sm:$0xf] %vm2544_vm4, %v2883_v41 }
 0x233   :  { %v2318_v39 = vmax.f32 %v4042_v1, %v2269_v42  ;;  %v2270_v21 = vmax.f32 %v1692_v55, %v2221_v35 }
 0x234   :  { %v1561_v15 = vpop.f32.mrb[144].mxu0  ;;  %v2090_v17 = vpop.f32.mrb[144].mxu1 }
 0x235   :  { %v2884_v14 = vpack.c.bf16 %v2318_v39, %v2318_v39  ;;  %v2319_v24 = vmax.f32 %v4050_v4, %v2270_v21  ;;  %v1562_v58 = vadd.f32 %v4194_v6, %v1561_v15  ;;  %v2091_v25 = vadd.f32 %v4194_v6, %v2090_v17  ;;  %v3279_v11 = vpop.f32.mrb[145].mxu0  ;;  %v3383_v18 = vpop.f32.mrb[145].mxu1 }
 0x236   :  { %v1564_v7 = vpop.f32.mrb[146].mxu0  ;;  %v2093_v0 = vpop.f32.mrb[146].mxu1 }
 0x237   :  { %2565 = vst.msk [vmem:[#allocation8 + $0x50] sm:$0xf] %vm2544_vm4, %v2884_v14  ;;  %v2885_v59 = vpack.c.bf16 %v2319_v24, %v2319_v24  ;;  %v1693_v51 = vmax.f32 %v1562_v58, 0.0  ;;  %v2222_v10 = vmax.f32 %v2091_v25, 0.0  ;;  %v1565_v1 = vadd.f32 %v4194_v6, %v1564_v7  ;;  %v3280_v38 = vpop.f32.mrb[147].mxu0  ;;  %v3384_v62 = vpop.f32.mrb[147].mxu1 }
 0x238   :  { %v2094_v8 = vadd.f32 %v4194_v6, %v2093_v0 }
 0x239   :  { %2566 = vst.msk [vmem:[#allocation8 + $0x54] sm:$0xf] %vm2544_vm4, %v2885_v59  ;;  %v2271_v4 = vmax.f32 %v1693_v51, %v2222_v10  ;;  %v1694_v61 = vmax.f32 %v1565_v1, 0.0 }
 0x23a   :  { %v2223_v22 = vmax.f32 %v2094_v8, 0.0 }
 0x23b   :  { %v2320_v31 = vmax.f32 %v4056_v29, %v2271_v4 }
 0x23c   :  { %v2272_v63 = vmax.f32 %v1694_v61, %v2223_v22  ;;  %v1569_v57 = vpop.f32.mrb[148].mxu0  ;;  %v2098_v36 = vpop.f32.mrb[148].mxu1 }
 0x23d   :  { %v2886_v45 = vpack.c.bf16 %v2320_v31, %v2320_v31  ;;  %v1570_v53 = vadd.f32 %v4194_v6, %v1569_v57  ;;  %v2099_v28 = vadd.f32 %v4194_v6, %v2098_v36  ;;  %v3283_v46 = vpop.f32.mrb[149].mxu0  ;;  %v3387_v40 = vpop.f32.mrb[149].mxu1 }
 0x23e   :  { %v2321_v54 = vmax.f32 %v4064_v32, %v2272_v63  ;;  %v1572_v13 = vpop.f32.mrb[150].mxu0  ;;  %v2101_v33 = vpop.f32.mrb[150].mxu1 }
 0x23f   :  { %2567 = vst.msk [vmem:[#allocation8 + $0x58] sm:$0xf] %vm2544_vm4, %v2886_v45  ;;  %v1695_v52 = vmax.f32 %v1570_v53, 0.0  ;;  %v2224_v48 = vmax.f32 %v2099_v28, 0.0  ;;  %v1573_v29 = vadd.f32 %v4194_v6, %v1572_v13  ;;  %v2102_v49 = vadd.f32 %v4194_v6, %v2101_v33  ;;  %v3284_v41 = vpop.f32.mrb[151].mxu0  ;;  %v3388_v42 = vpop.f32.mrb[151].mxu1 }
 0x240   :  { %v2887_v55 = vpack.c.bf16 %v2321_v54, %v2321_v54 }
 0x241   :  { %v2273_v35 = vmax.f32 %v1695_v52, %v2224_v48  ;;  %v1696_v39 = vmax.f32 %v1573_v29, 0.0  ;;  %v2225_v21 = vmax.f32 %v2102_v49, 0.0 }
 0x242   :  { %2568 = vst.msk [vmem:[#allocation8 + $0x5c] sm:$0xf] %vm2544_vm4, %v2887_v55 }
 0x243   :  { %v2322_v32 = vmax.f32 %v4070_v60, %v2273_v35  ;;  %v2274_v15 = vmax.f32 %v1696_v39, %v2225_v21 }
 0x244   :  { %v1577_v17 = vpop.f32.mrb[152].mxu0  ;;  %v2106_v14 = vpop.f32.mrb[152].mxu1 }
 0x245   :  { %v2888_v24 = vpack.c.bf16 %v2322_v32, %v2322_v32  ;;  %v2323_v58 = vmax.f32 %v4078_v3, %v2274_v15  ;;  %v1578_v25 = vadd.f32 %v4194_v6, %v1577_v17  ;;  %v2107_v11 = vadd.f32 %v4194_v6, %v2106_v14  ;;  %v3287_v18 = vpop.f32.mrb[153].mxu0  ;;  %v3391_v7 = vpop.f32.mrb[153].mxu1 }
 0x246   :  { %v1580_v0 = vpop.f32.mrb[154].mxu0  ;;  %v2109_v59 = vpop.f32.mrb[154].mxu1 }
 0x247   :  { %2569 = vst.msk [vmem:[#allocation8 + $0x60] sm:$0xf] %vm2544_vm4, %v2888_v24  ;;  %v2889_v51 = vpack.c.bf16 %v2323_v58, %v2323_v58  ;;  %v1697_v10 = vmax.f32 %v1578_v25, 0.0  ;;  %v2226_v1 = vmax.f32 %v2107_v11, 0.0  ;;  %v1581_v60 = vadd.f32 %v4194_v6, %v1580_v0  ;;  %v3288_v38 = vpop.f32.mrb[155].mxu0  ;;  %v3392_v62 = vpop.f32.mrb[155].mxu1 }
 0x248   :  { %v2110_v8 = vadd.f32 %v4194_v6, %v2109_v59 }
 0x249   :  { %2570 = vst.msk [vmem:[#allocation8 + $0x64] sm:$0xf] %vm2544_vm4, %v2889_v51  ;;  %v2275_v3 = vmax.f32 %v1697_v10, %v2226_v1  ;;  %v1698_v4 = vmax.f32 %v1581_v60, 0.0 }
 0x24a   :  { %v2227_v61 = vmax.f32 %v2110_v8, 0.0 }
 0x24b   :  { %v2324_v22 = vmax.f32 %v4084_v30, %v2275_v3 }
 0x24c   :  { %v2276_v31 = vmax.f32 %v1698_v4, %v2227_v61  ;;  %v1585_v63 = vpop.f32.mrb[156].mxu0  ;;  %v2114_v57 = vpop.f32.mrb[156].mxu1 }
 0x24d   :  { %v2890_v36 = vpack.c.bf16 %v2324_v22, %v2324_v22  ;;  %v1586_v45 = vadd.f32 %v4194_v6, %v1585_v63  ;;  %v2115_v53 = vadd.f32 %v4194_v6, %v2114_v57  ;;  %v3291_v28 = vpop.f32.mrb[157].mxu0  ;;  %v3395_v46 = vpop.f32.mrb[157].mxu1 }
 0x24e   :  { %v2325_v40 = vmax.f32 %v4092_v37, %v2276_v31  ;;  %v1588_v54 = vpop.f32.mrb[158].mxu0  ;;  %v2117_v13 = vpop.f32.mrb[158].mxu1 }
 0x24f   :  { %2571 = vst.msk [vmem:[#allocation8 + $0x68] sm:$0xf] %vm2544_vm4, %v2890_v36  ;;  %v1699_v33 = vmax.f32 %v1586_v45, 0.0  ;;  %v2228_v52 = vmax.f32 %v2115_v53, 0.0  ;;  %v1589_v30 = vadd.f32 %v4194_v6, %v1588_v54  ;;  %v2118_v48 = vadd.f32 %v4194_v6, %v2117_v13  ;;  %v3292_v29 = vpop.f32.mrb[159].mxu0  ;;  %v3396_v49 = vpop.f32.mrb[159].mxu1 }
 0x250   :  { %v2891_v41 = vpack.c.bf16 %v2325_v40, %v2325_v40 }
 0x251   :  { %v2277_v42 = vmax.f32 %v1699_v33, %v2228_v52  ;;  %v1700_v55 = vmax.f32 %v1589_v30, 0.0  ;;  %v2229_v35 = vmax.f32 %v2118_v48, 0.0 }
 0x252   :  { %2572 = vst.msk [vmem:[#allocation8 + $0x6c] sm:$0xf] %vm2544_vm4, %v2891_v41 }
 0x253   :  { %v2326_v37 = vmax.f32 %v4098_v5, %v2277_v42  ;;  %v2278_v39 = vmax.f32 %v1700_v55, %v2229_v35 }
 0x254   :  { %v1593_v21 = vpop.f32.mrb[160].mxu0  ;;  %v2122_v32 = vpop.f32.mrb[160].mxu1 }
 0x255   :  { %v2892_v15 = vpack.c.bf16 %v2326_v37, %v2326_v37  ;;  %v2327_v17 = vmax.f32 %v4106_v9, %v2278_v39  ;;  %v1594_v14 = vadd.f32 %v4194_v6, %v1593_v21  ;;  %v2123_v24 = vadd.f32 %v4194_v6, %v2122_v32  ;;  %v3295_v58 = vpop.f32.mrb[161].mxu0  ;;  %v3399_v25 = vpop.f32.mrb[161].mxu1 }
 0x256   :  { %v1596_v11 = vpop.f32.mrb[162].mxu0  ;;  %v2125_v18 = vpop.f32.mrb[162].mxu1 }
 0x257   :  { %2573 = vst.msk [vmem:[#allocation8 + $0x70] sm:$0xf] %vm2544_vm4, %v2892_v15  ;;  %v2893_v7 = vpack.c.bf16 %v2327_v17, %v2327_v17  ;;  %v1701_v0 = vmax.f32 %v1594_v14, 0.0  ;;  %v2230_v59 = vmax.f32 %v2123_v24, 0.0  ;;  %v1597_v5 = vadd.f32 %v4194_v6, %v1596_v11  ;;  %v3296_v51 = vpop.f32.mrb[163].mxu0  ;;  %v3400_v10 = vpop.f32.mrb[163].mxu1 }
 0x258   :  { %v2126_v1 = vadd.f32 %v4194_v6, %v2125_v18 }
 0x259   :  { %2574 = vst.msk [vmem:[#allocation8 + $0x74] sm:$0xf] %vm2544_vm4, %v2893_v7  ;;  %v2279_v9 = vmax.f32 %v1701_v0, %v2230_v59  ;;  %v1702_v60 = vmax.f32 %v1597_v5, 0.0 }
 0x25a   :  { %v2231_v38 = vmax.f32 %v2126_v1, 0.0 }
 0x25b   :  { %v2328_v62 = vmax.f32 %v4112_v43, %v2279_v9 }
 0x25c   :  { %v2280_v8 = vmax.f32 %v1702_v60, %v2231_v38  ;;  %v1601_v3 = vpop.f32.mrb[164].mxu0  ;;  %v2130_v4 = vpop.f32.mrb[164].mxu1 }
 0x25d   :  { %v2894_v61 = vpack.c.bf16 %v2328_v62, %v2328_v62  ;;  %v1602_v22 = vadd.f32 %v4194_v6, %v1601_v3  ;;  %v2131_v31 = vadd.f32 %v4194_v6, %v2130_v4  ;;  %v3299_v63 = vpop.f32.mrb[165].mxu0  ;;  %v3403_v57 = vpop.f32.mrb[165].mxu1 }
 0x25e   :  { %v2329_v36 = vmax.f32 %v4120_v47, %v2280_v8  ;;  %v1604_v45 = vpop.f32.mrb[166].mxu0  ;;  %v2133_v53 = vpop.f32.mrb[166].mxu1 }
 0x25f   :  { %2575 = vst.msk [vmem:[#allocation8 + $0x78] sm:$0xf] %vm2544_vm4, %v2894_v61  ;;  %v1703_v28 = vmax.f32 %v1602_v22, 0.0  ;;  %v2232_v46 = vmax.f32 %v2131_v31, 0.0  ;;  %v1605_v43 = vadd.f32 %v4194_v6, %v1604_v45  ;;  %v2134_v40 = vadd.f32 %v4194_v6, %v2133_v53  ;;  %v3300_v54 = vpop.f32.mrb[167].mxu0  ;;  %v3404_v13 = vpop.f32.mrb[167].mxu1 }
 0x260   :  { %v2895_v33 = vpack.c.bf16 %v2329_v36, %v2329_v36  ;;  %v4380_v13 = vld [vmem:[#allocation7] ss:$0 sm:$0xff] }
 0x261   :  { %v2281_v52 = vmax.f32 %v1703_v28, %v2232_v46  ;;  %v1704_v30 = vmax.f32 %v1605_v43, 0.0  ;;  %v2233_v48 = vmax.f32 %v2134_v40, 0.0 }
 0x262   :  { %2576 = vst.msk [vmem:[#allocation8 + $0x7c] sm:$0xf] %vm2544_vm4, %v2895_v33 }
 0x263   :  { %v2330_v47 = vmax.f32 %v4126_v19, %v2281_v52  ;;  %v2282_v29 = vmax.f32 %v1704_v30, %v2233_v48 }
 0x264   :  { %v1609_v49 = vpop.f32.mrb[168].mxu0  ;;  %v2138_v41 = vpop.f32.mrb[168].mxu1 }
 0x265   :  { %v2896_v42 = vpack.c.bf16 %v2330_v47, %v2330_v47  ;;  %v2331_v55 = vmax.f32 %v4134_v23, %v2282_v29  ;;  %v1610_v35 = vadd.f32 %v4194_v6, %v1609_v49  ;;  %v2139_v37 = vadd.f32 %v4194_v6, %v2138_v41  ;;  %v3303_v39 = vpop.f32.mrb[169].mxu0  ;;  %v3407_v21 = vpop.f32.mrb[169].mxu1 }
 0x266   :  { %v1612_v32 = vpop.f32.mrb[170].mxu0  ;;  %v2141_v15 = vpop.f32.mrb[170].mxu1 }
 0x267   :  { %2577 = vst.msk [vmem:[#allocation8 + $0x80] sm:$0xf] %vm2544_vm4, %v2896_v42  ;;  %v2897_v17 = vpack.c.bf16 %v2331_v55, %v2331_v55  ;;  %v1705_v14 = vmax.f32 %v1610_v35, 0.0  ;;  %v2234_v24 = vmax.f32 %v2139_v37, 0.0  ;;  %v1613_v19 = vadd.f32 %v4194_v6, %v1612_v32  ;;  %v3304_v58 = vpop.f32.mrb[171].mxu0  ;;  %v3408_v25 = vpop.f32.mrb[171].mxu1 }
 0x268   :  { %v2142_v11 = vadd.f32 %v4194_v6, %v2141_v15 }
 0x269   :  { %2578 = vst.msk [vmem:[#allocation8 + $0x84] sm:$0xf] %vm2544_vm4, %v2897_v17  ;;  %v2283_v23 = vmax.f32 %v1705_v14, %v2234_v24  ;;  %v1706_v18 = vmax.f32 %v1613_v19, 0.0 }
 0x26a   :  { %v2235_v7 = vmax.f32 %v2142_v11, 0.0 }
 0x26b   :  { %v2332_v0 = vmax.f32 %v4140_v56, %v2283_v23 }
 0x26c   :  { %v2284_v59 = vmax.f32 %v1706_v18, %v2235_v7  ;;  %v1617_v5 = vpop.f32.mrb[172].mxu0  ;;  %v2146_v51 = vpop.f32.mrb[172].mxu1 }
 0x26d   :  { %v2898_v10 = vpack.c.bf16 %v2332_v0, %v2332_v0  ;;  %v1618_v1 = vadd.f32 %v4194_v6, %v1617_v5  ;;  %v2147_v9 = vadd.f32 %v4194_v6, %v2146_v51  ;;  %v3307_v60 = vpop.f32.mrb[173].mxu0  ;;  %v3411_v38 = vpop.f32.mrb[173].mxu1 }
 0x26e   :  { %v2333_v62 = vmax.f32 %v4148_v2, %v2284_v59  ;;  %v1620_v8 = vpop.f32.mrb[174].mxu0  ;;  %v2149_v3 = vpop.f32.mrb[174].mxu1 }
 0x26f   :  { %2579 = vst.msk [vmem:[#allocation8 + $0x88] sm:$0xf] %vm2544_vm4, %v2898_v10  ;;  %v1707_v4 = vmax.f32 %v1618_v1, 0.0  ;;  %v2236_v61 = vmax.f32 %v2147_v9, 0.0  ;;  %v1621_v56 = vadd.f32 %v4194_v6, %v1620_v8  ;;  %v2150_v22 = vadd.f32 %v4194_v6, %v2149_v3  ;;  %v3308_v31 = vpop.f32.mrb[175].mxu0  ;;  %v3412_v63 = vpop.f32.mrb[175].mxu1 }
 0x270   :  { %v2899_v57 = vpack.c.bf16 %v2333_v62, %v2333_v62 }
 0x271   :  { %v2285_v36 = vmax.f32 %v1707_v4, %v2236_v61  ;;  %v1708_v45 = vmax.f32 %v1621_v56, 0.0  ;;  %v2237_v53 = vmax.f32 %v2150_v22, 0.0 }
 0x272   :  { %2580 = vst.msk [vmem:[#allocation8 + $0x8c] sm:$0xf] %vm2544_vm4, %v2899_v57 }
 0x273   :  { %v2334_v2 = vmax.f32 %v4154_v44, %v2285_v36  ;;  %v2286_v28 = vmax.f32 %v1708_v45, %v2237_v53 }
 0x274   :  { %v1625_v46 = vpop.f32.mrb[176].mxu0  ;;  %v2154_v43 = vpop.f32.mrb[176].mxu1 }
 0x275   :  { %v2900_v40 = vpack.c.bf16 %v2334_v2, %v2334_v2  ;;  %v2335_v54 = vmax.f32 %v4162_v50, %v2286_v28  ;;  %v1626_v6 = vadd.f32 %v4380_v13, %v1625_v46  ;;  %v2155_v33 = vadd.f32 %v4380_v13, %v2154_v43  ;;  %v3311_v52 = vpop.f32.mrb[177].mxu0  ;;  %v3415_v30 = vpop.f32.mrb[177].mxu1 }
 0x276   :  { %v1628_v48 = vpop.f32.mrb[178].mxu0  ;;  %v2157_v47 = vpop.f32.mrb[178].mxu1 }
 0x277   :  { %2581 = vst.msk [vmem:[#allocation8 + $0x90] sm:$0xf] %vm2544_vm4, %v2900_v40  ;;  %v2901_v29 = vpack.c.bf16 %v2335_v54, %v2335_v54  ;;  %v1709_v44 = vmax.f32 %v1626_v6, 0.0  ;;  %v2238_v49 = vmax.f32 %v2155_v33, 0.0  ;;  %v1629_v41 = vadd.f32 %v4380_v13, %v1628_v48  ;;  %v3312_v42 = vpop.f32.mrb[179].mxu0  ;;  %v3416_v55 = vpop.f32.mrb[179].mxu1 }
 0x278   :  { %v2158_v50 = vadd.f32 %v4380_v13, %v2157_v47 }
 0x279   :  { %2582 = vst.msk [vmem:[#allocation8 + $0x94] sm:$0xf] %vm2544_vm4, %v2901_v29  ;;  %v2287_v35 = vmax.f32 %v1709_v44, %v2238_v49  ;;  %v1710_v37 = vmax.f32 %v1629_v41, 0.0  ;;  %v4452_v49 = vld [vmem:[#allocation12_spill] sm:$0xff] }
 0x27a   :  { %v2239_v39 = vmax.f32 %v2158_v50, 0.0 }
 0x27b   :  { %v2336_v21 = vmax.f32 %v4168_v27, %v2287_v35 }
 0x27c   :  { %v2288_v32 = vmax.f32 %v1710_v37, %v2239_v39  ;;  %v1633_v15 = vpop.f32.mrb[180].mxu0  ;;  %v2162_v17 = vpop.f32.mrb[180].mxu1 }
 0x27d   :  { %v2902_v14 = vpack.c.bf16 %v2336_v21, %v2336_v21  ;;  %v1634_v24 = vadd.f32 %v4380_v13, %v1633_v15  ;;  %v2163_v19 = vadd.f32 %v4380_v13, %v2162_v17  ;;  %v3315_v58 = vpop.f32.mrb[181].mxu0  ;;  %v3419_v25 = vpop.f32.mrb[181].mxu1 }
 0x27e   :  { %v2337_v11 = vmax.f32 %v4176_v34, %v2288_v32  ;;  %v1636_v23 = vpop.f32.mrb[182].mxu0  ;;  %v2165_v18 = vpop.f32.mrb[182].mxu1 }
 0x27f   :  { %2583 = vst.msk [vmem:[#allocation8 + $0x98] sm:$0xf] %vm2544_vm4, %v2902_v14  ;;  %v1711_v7 = vmax.f32 %v1634_v24, 0.0  ;;  %v2240_v0 = vmax.f32 %v2163_v19, 0.0  ;;  %v1637_v27 = vadd.f32 %v4380_v13, %v1636_v23  ;;  %v2166_v59 = vadd.f32 %v4380_v13, %v2165_v18  ;;  %v3316_v5 = vpop.f32.mrb[183].mxu0  ;;  %v3420_v51 = vpop.f32.mrb[183].mxu1 }
 0x280   :  { %v2903_v10 = vpack.c.bf16 %v2337_v11, %v2337_v11  ;;  %v4453_v24 = vld [vmem:[#allocation13_spill] sm:$0xff]  ;;  %v4454_v18 = vld [vmem:[#allocation14_spill] sm:$0xff] }
 0x281   :  { %v2289_v1 = vmax.f32 %v1711_v7, %v2240_v0  ;;  %v1712_v9 = vmax.f32 %v1637_v27, 0.0  ;;  %v2241_v60 = vmax.f32 %v2166_v59, 0.0 }
 0x282   :  { %2584 = vst.msk [vmem:[#allocation8 + $0x9c] sm:$0xf] %vm2544_vm4, %v2903_v10 }
 0x283   :  { %v2338_v34 = vmax.f32 %v4182_v20, %v2289_v1  ;;  %v2290_v38 = vmax.f32 %v1712_v9, %v2241_v60 }
 0x284   :  { %v1641_v62 = vpop.f32.mrb[184].mxu0  ;;  %v2170_v8 = vpop.f32.mrb[184].mxu1 }
 0x285   :  { %v2904_v3 = vpack.c.bf16 %v2338_v34, %v2338_v34  ;;  %v2339_v4 = vmax.f32 %v4190_v26, %v2290_v38  ;;  %v1642_v61 = vadd.f32 %v4380_v13, %v1641_v62  ;;  %v2171_v56 = vadd.f32 %v4380_v13, %v2170_v8  ;;  %v3319_v22 = vpop.f32.mrb[185].mxu0  ;;  %v3423_v31 = vpop.f32.mrb[185].mxu1 }
 0x286   :  { %v1644_v63 = vpop.f32.mrb[186].mxu0  ;;  %v2173_v57 = vpop.f32.mrb[186].mxu1 }
 0x287   :  { %2585 = vst.msk [vmem:[#allocation8 + $0xa0] sm:$0xf] %vm2544_vm4, %v2904_v3  ;;  %v2905_v36 = vpack.c.bf16 %v2339_v4, %v2339_v4  ;;  %v1713_v45 = vmax.f32 %v1642_v61, 0.0  ;;  %v2242_v53 = vmax.f32 %v2171_v56, 0.0  ;;  %v1645_v20 = vadd.f32 %v4380_v13, %v1644_v63  ;;  %v3320_v2 = vpop.f32.mrb[187].mxu0  ;;  %v3424_v28 = vpop.f32.mrb[187].mxu1 }
 0x288   :  { %v2174_v46 = vadd.f32 %v4380_v13, %v2173_v57  ;;  %v4455_v2 = vld [vmem:[#allocation15_spill] sm:$0xff] }
 0x289   :  { %2586 = vst.msk [vmem:[#allocation8 + $0xa4] sm:$0xf] %vm2544_vm4, %v2905_v36  ;;  %v2291_v26 = vmax.f32 %v1713_v45, %v2242_v53  ;;  %v1714_v43 = vmax.f32 %v1645_v20, 0.0 }
 0x28a   :  { %v2243_v40 = vmax.f32 %v2174_v46, 0.0 }
 0x28b   :  { %v2340_v54 = vmax.f32 %v4198_v16, %v2291_v26 }
 0x28c   :  { %v2292_v6 = vmax.f32 %v1714_v43, %v2243_v40  ;;  %v1649_v33 = vpop.f32.mrb[188].mxu0  ;;  %v2178_v52 = vpop.f32.mrb[188].mxu1 }
 0x28d   :  { %v2906_v30 = vpack.c.bf16 %v2340_v54, %v2340_v54  ;;  %v1650_v48 = vadd.f32 %v4380_v13, %v1649_v33  ;;  %v2179_v47 = vadd.f32 %v4380_v13, %v2178_v52  ;;  %v3323_v29 = vpop.f32.mrb[189].mxu0  ;;  %v3427_v44 = vpop.f32.mrb[189].mxu1  ;;  %v4456_v52 = vld [vmem:[#allocation16_spill] sm:$0xff] }
 0x28e   :  { %v2341_v41 = vmax.f32 %v4452_v49, %v2292_v6  ;;  %v1652_v42 = vpop.f32.mrb[190].mxu0  ;;  %v2181_v55 = vpop.f32.mrb[190].mxu1 }
 0x28f   :  { %2587 = vst.msk [vmem:[#allocation8 + $0xa8] sm:$0xf] %vm2544_vm4, %v2906_v30  ;;  %v1715_v50 = vmax.f32 %v1650_v48, 0.0  ;;  %v2244_v35 = vmax.f32 %v2179_v47, 0.0  ;;  %v1653_v16 = vadd.f32 %v4380_v13, %v1652_v42  ;;  %v2182_v37 = vadd.f32 %v4380_v13, %v2181_v55  ;;  %v3324_v39 = vpop.f32.mrb[191].mxu0  ;;  %v3428_v21 = vpop.f32.mrb[191].mxu1 }
 0x290   :  { %v2907_v32 = vpack.c.bf16 %v2341_v41, %v2341_v41 }
 0x291   :  { %v2293_v15 = vmax.f32 %v1715_v50, %v2244_v35  ;;  %v1716_v17 = vmax.f32 %v1653_v16, 0.0  ;;  %v2245_v14 = vmax.f32 %v2182_v37, 0.0 }
 0x292   :  { %2588 = vst.msk [vmem:[#allocation8 + $0xac] sm:$0xf] %vm2544_vm4, %v2907_v32 }
 0x293   :  { %v2342_v19 = vmax.f32 %v4453_v24, %v2293_v15  ;;  %v2294_v58 = vmax.f32 %v1716_v17, %v2245_v14 }
 0x294   :  { %v1657_v25 = vpop.f32.mrb[192].mxu0  ;;  %v2186_v11 = vpop.f32.mrb[192].mxu1 }
 0x295   :  { %v2908_v23 = vpack.c.bf16 %v2342_v19, %v2342_v19  ;;  %v2343_v7 = vmax.f32 %v4454_v18, %v2294_v58  ;;  %v1658_v0 = vadd.f32 %v4380_v13, %v1657_v25  ;;  %v2187_v27 = vadd.f32 %v4380_v13, %v2186_v11  ;;  %v3327_v59 = vpop.f32.mrb[193].mxu0  ;;  %v3431_v5 = vpop.f32.mrb[193].mxu1 }
 0x296   :  { %v1660_v51 = vpop.f32.mrb[194].mxu0  ;;  %v2189_v10 = vpop.f32.mrb[194].mxu1 }
 0x297   :  { %2589 = vst.msk [vmem:[#allocation8 + $0xb0] sm:$0xf] %vm2544_vm4, %v2908_v23  ;;  %v2909_v1 = vpack.c.bf16 %v2343_v7, %v2343_v7  ;;  %v1717_v9 = vmax.f32 %v1658_v0, 0.0  ;;  %v2246_v60 = vmax.f32 %v2187_v27, 0.0  ;;  %v1661_v34 = vadd.f32 %v4380_v13, %v1660_v51  ;;  %v3328_v38 = vpop.f32.mrb[195].mxu0  ;;  %v3432_v62 = vpop.f32.mrb[195].mxu1 }
 0x298   :  { %v2190_v8 = vadd.f32 %v4380_v13, %v2189_v10 }
 0x299   :  { %2590 = vst.msk [vmem:[#allocation8 + $0xb4] sm:$0xf] %vm2544_vm4, %v2909_v1  ;;  %v2295_v3 = vmax.f32 %v1717_v9, %v2246_v60  ;;  %v1718_v4 = vmax.f32 %v1661_v34, 0.0 }
 0x29a   :  { %v2247_v61 = vmax.f32 %v2190_v8, 0.0 }
 0x29b   :  { %v2344_v56 = vmax.f32 %v4222_v12, %v2295_v3 }
 0x29c   :  { %v2296_v22 = vmax.f32 %v1718_v4, %v2247_v61  ;;  %v1665_v31 = vpop.f32.mrb[196].mxu0  ;;  %v2194_v63 = vpop.f32.mrb[196].mxu1 }
 0x29d   :  { %v2910_v57 = vpack.c.bf16 %v2344_v56, %v2344_v56  ;;  %v1666_v36 = vadd.f32 %v4380_v13, %v1665_v31  ;;  %v2195_v45 = vadd.f32 %v4380_v13, %v2194_v63  ;;  %v3331_v53 = vpop.f32.mrb[197].mxu0  ;;  %v3435_v20 = vpop.f32.mrb[197].mxu1 }
 0x29e   :  { %v2345_v28 = vmax.f32 %v4455_v2, %v2296_v22  ;;  %v1668_v46 = vpop.f32.mrb[198].mxu0  ;;  %v2197_v26 = vpop.f32.mrb[198].mxu1 }
 0x29f   :  { %2591 = vst.msk [vmem:[#allocation8 + $0xb8] sm:$0xf] %vm2544_vm4, %v2910_v57  ;;  %v1719_v43 = vmax.f32 %v1666_v36, 0.0  ;;  %v2248_v40 = vmax.f32 %v2195_v45, 0.0  ;;  %v3332_v54 = vpop.f32.mrb[199].mxu0  ;;  %v3436_v12 = vpop.f32.mrb[199].mxu1 }
 0x2a0   :  { %v2911_v6 = vpack.c.bf16 %v2345_v28, %v2345_v28 }
 0x2a1   :  { %v2297_v33 = vmax.f32 %v1719_v43, %v2248_v40 }
 0x2a2   :  { %2592 = vst.msk [vmem:[#allocation8 + $0xbc] sm:$0xf] %vm2544_vm4, %v2911_v6 }
 0x2a3   :  { %v2346_v13 = vmax.f32 %v4456_v52, %v2297_v33 }
 0x2a5   :  { %v2912_v30 = vpack.c.bf16 %v2346_v13, %v2346_v13 }
 0x2a7   :  { %2593 = vst.msk [vmem:[#allocation8 + $0xc0] sm:$0xf] %vm2544_vm4, %v2912_v30 }
 0x2a8   :  { %3627 = shalt.err (!%p3624_p0)
}
 0x2a9   :  { %s3628_s28 = scalar_lea.hbm %s4446_s3, 3136 }
 0x2aa   :  { %p3629_p1 = scmp.ne.s32.totalorder %s4446_s3, %s3628_s28  ;;  %p3632_p2 = scmp.lt.u32.totalorder %s3628_s28, %s4446_s3 }
 0x2ac   :  { %p3634_p3 = pnand %p3632_p2, %p3629_p1 }
 0x2ae   :  { %3637 = shalt.err (!%p3634_p3)
}
 0x2af   :  { %2605 = dma.vmem_to_hbm [thread:$0]  %s2600_s22, 3136, %s4446_s3, [#allocation4], %s3646_s24, %s3646_s24, %s3647_s25  }
 0x2b0   :  { %3642 = dma.done.wait [#allocation4], 3136  }
 0x2b1   :  { %3643 = vsyncadd [#allocation4], 4294964160 }
 0x2b2   :  { %2609 = vsyncpa [#allocation3], 1 }
 0x2b3   :  { %2610 = vsyncpa [#allocation6], 1 }
 0x2b4   :  { %2611 = vsyncpa [#allocation4], 1 }

// kernel: model_forward.4
= control target key start
LH: loop header
LB: loop body
LE: loop exit
PB: predicated region body
PF: predicated region fallthrough
CT: control target
= control target key end

     0   :  { %8 = vsyncpa [#allocation3], 0  ;;  %s3035_s0 = inlined_call_operand.hbm [shape: bf16[4,98,400], index: 0, kind: input, shape index: {}]   ;;  %s3036_s1 = inlined_call_operand.hbm [shape: bf16[400,32], index: 1, kind: input, shape index: {}]   ;;  %s3037_s2 = inlined_call_operand.hbm [shape: f32[1,32], index: 2, kind: input, shape index: {}]   ;;  %s3038_s3 = inlined_call_operand.hbm [shape: bf16[98,32], index: 3, kind: output, shape index: {}]  }
   0x1   :  { %9 = vsyncpa [#allocation6], 0 }
   0x2   :  { %10 = vsyncpa [#allocation4], 0  ;;  %s2555_s12 = smov [#allocation5]   ;;  %s2461_s16 = scalar_lea.hbm %s3036_s1, 3200 }
   0x3   :  { %s28_s13 = sshll.u32 %s2555_s12, 4  ;;  %p2462_p0 = scmp.ne.s32.totalorder %s3036_s1, %s2461_s16  ;;  %s29_s13 = int_to_ptr.vmem [resolvable:$true] %s28_s13 }
   0x4   :  { %p2465_p1 = scmp.lt.u32.totalorder %s2461_s16, %s3036_s1 }
   0x6   :  { %p2467_p2 = pnand %p2465_p1, %p2462_p0 }
   0x8   :  { %2470 = shalt.err (!%p2467_p2)
}
   0x9   :  { %s2471_s21 = scalar_lea.vmem %s29_s13, 3200  ;;  %p2476_p4 = scmp.lt.s32.totalorder %s29_s13, %s29_s13 }
   0xa   :  { %p2472_p3 = scmp.ne.s32.totalorder %s29_s13, %s2471_s21  ;;  %p2477_p5 = scmp.lt.s32.totalorder %s2471_s21, %s2471_s21 }
   0xc   :  { %p2478_p6 = por %p2477_p5, %p2476_p4 }
   0xe   :  { %p2479_p7 = pnand %p2478_p6, %p2472_p3 }
  0x10   :  { %2482 = shalt.err (!%p2479_p7)
}
  0x11   :  { %s2556_s22 = smov 64   ;;  %s2557_s23 = smov 4  }
  0x12   :  { %34 = dma.hbm_to_vmem [thread:$0]  %s3036_s1, 3200, %s29_s13, [#allocation6], %s2556_s22, %s2556_s22, %s2557_s23  }
  0x13   :  { %s2558_s26 = smov [#allocation2]   ;;  %s2483_s30 = scalar_lea.hbm %s3035_s0, 13312 }
  0x14   :  { %s16_s27 = sshll.u32 %s2558_s26, 4  ;;  %p2484_p8 = scmp.ne.s32.totalorder %s3035_s0, %s2483_s30  ;;  %s17_s27 = int_to_ptr.vmem [resolvable:$true] %s16_s27 }
  0x15   :  { %p2487_p9 = scmp.lt.u32.totalorder %s2483_s30, %s3035_s0 }
  0x17   :  { %p2489_p10 = pnand %p2487_p9, %p2484_p8 }
  0x19   :  { %2492 = shalt.err (!%p2489_p10)
}
  0x1a   :  { %s2493_s8 = scalar_lea.vmem %s17_s27, 13312  ;;  %p2498_p12 = scmp.lt.s32.totalorder %s17_s27, %s17_s27 }
  0x1b   :  { %p2494_p11 = scmp.ne.s32.totalorder %s17_s27, %s2493_s8  ;;  %p2499_p13 = scmp.lt.s32.totalorder %s2493_s8, %s2493_s8 }
  0x1d   :  { %p2500_p0 = por %p2499_p13, %p2498_p12 }
  0x1f   :  { %p2501_p1 = pnand %p2500_p0, %p2494_p11 }
  0x21   :  { %2504 = shalt.err (!%p2501_p1)
}
  0x22   :  { %s2559_s1 = smov 256   ;;  %s2560_s9 = smov 16  }
  0x23   :  { %22 = dma.hbm_to_vmem [thread:$0]  %s3035_s0, 13312, %s17_s27, [#allocation3], %s2559_s1, %s2559_s1, %s2560_s9  }
  0x24   :  { %s2561_s12 = smov [#allocation7]   ;;  %s2505_s16 = scalar_lea.hbm %s3037_s2, 16 }
  0x25   :  { %s41_s13 = sshll.u32 %s2561_s12, 4  ;;  %p2506_p2 = scmp.ne.s32.totalorder %s3037_s2, %s2505_s16  ;;  %s42_s13 = int_to_ptr.vmem [resolvable:$true] %s41_s13 }
  0x26   :  { %p2509_p3 = scmp.lt.u32.totalorder %s2505_s16, %s3037_s2 }
  0x28   :  { %p2511_p4 = pnand %p2509_p3, %p2506_p2 }
  0x2a   :  { %2514 = shalt.err (!%p2511_p4)
}
  0x2b   :  { %s2515_s21 = scalar_lea.vmem %s42_s13, 16  ;;  %s2519_s0 = scalar_lea.vmem %s42_s13, 32 }
  0x2c   :  { %p2516_p5 = scmp.ne.s32.totalorder %s42_s13, %s2515_s21  ;;  %p2520_p6 = scmp.lt.s32.totalorder %s42_s13, %s42_s13 }
  0x2d   :  { %p2521_p7 = scmp.lt.s32.totalorder %s2519_s0, %s2515_s21 }
  0x2f   :  { %p2522_p8 = por %p2521_p7, %p2520_p6 }
  0x31   :  { %p2523_p9 = pnand %p2522_p8, %p2516_p5 }
  0x33   :  { %2526 = shalt.err (!%p2523_p9)
}
  0x34   :  { %44 = dma.hbm_to_vmem [thread:$0]  %s3037_s2, 16, %s42_s13, [#allocation6]  }
  0x35   :  { %2549 = dma.done.wait [#allocation3], 13312  }
  0x36   :  { %2550 = vsyncadd [#allocation3], 4294953984 }
  0x37   :  { %2551 = dma.done.wait [#allocation6], 3216  }
  0x38   :  { %2552 = vsyncadd [#allocation6], 4294964080  ;;  %v2562_v0 = vmov 0   ;;  %v2624_v1 = vld [vmem:[#allocation5 + $0x40] sm:$0xff]   ;;  %v2632_v4 = vld [vmem:[#allocation5 + $0x48] sm:$0xff]   ;;  %vm415_vm0 = vcmask 130048  }
  0x39   :  { %525 = vmatprep.subr.bf16.mxu1 %v2562_v0  ;;  %v2626_v2 = vld [vmem:[#allocation5 + $0x80] sm:$0xff]   ;;  %2035 = vmatprep.subr.bf16.mxu0 %v2624_v1  ;;  %v2636_v5 = vld [vmem:[#allocation5 + $0x88] sm:$0xff]   ;;  %v2641_v7 = vld [vmem:[#allocation5 + $0x50] sm:$0xff]   ;;  %vm1810_vm1 = vcmask 257024   ;;  %s2563_s2 = smov [#allocation8]   ;;  %vm1823_vm2 = vcmask 253952  }
  0x3a   :  { %v2629_v3 = vld [vmem:[#allocation5] sm:$0xff]   ;;  %526 = vmatpush1.bf16.msra.mxu1 %v2626_v2  ;;  %v2639_v6 = vld [vmem:[#allocation5 + $0x8] sm:$0xff]   ;;  %v2644_v8 = vld [vmem:[#allocation5 + $0x90] sm:$0xff]   ;;  %s1830_s26 = sshll.u32 %s2563_s2, 4  ;;  %s1831_s26 = int_to_ptr.vmem [resolvable:$true] %s1830_s26 }
  0x3b   :  { %2036 = vmatpush3.bf16.msra.mxu0 %v2629_v3  ;;  %527 = vmatprep.subr.bf16.mxu1 %v2562_v0  ;;  %v2648_v9 = vld [vmem:[#allocation5 + $0x10] sm:$0xff]   ;;  %v2651_v10 = vld [vmem:[#allocation5 + $0x58] sm:$0xff]   ;;  %v2661_v13 = vld [vmem:[#allocation5 + $0x60] sm:$0xff]   ;;  %s2527_s27 = scalar_lea.vmem %s1831_s26, 832  ;;  %p2532_p11 = scmp.lt.s32.totalorder %s1831_s26, %s1831_s26 }
  0x3c   :  { %2037 = vmatprep.subr.bf16.mxu0 %v2632_v4  ;;  %v2654_v11 = vld [vmem:[#allocation5 + $0x98] sm:$0xff]   ;;  %v2664_v14 = vld [vmem:[#allocation5 + $0xa0] sm:$0xff]   ;;  %v2671_v16 = vld [vmem:[#allocation5 + $0x68] sm:$0xff]   ;;  %p2528_p10 = scmp.ne.s32.totalorder %s1831_s26, %s2527_s27  ;;  %p2533_p12 = scmp.lt.s32.totalorder %s2527_s27, %s2527_s27 }
  0x3d   :  { %v2658_v12 = vld [vmem:[#allocation5 + $0x18] sm:$0xff]   ;;  %v2668_v15 = vld [vmem:[#allocation5 + $0x20] sm:$0xff]   ;;  %v2674_v17 = vld [vmem:[#allocation5 + $0xa8] sm:$0xff]  }
  0x3e   :  { %528 = vmatpush1.bf16.msra.mxu1 %v2636_v5  ;;  %v2678_v18 = vld [vmem:[#allocation5 + $0x28] sm:$0xff]   ;;  %v2681_v19 = vld [vmem:[#allocation5 + $0x70] sm:$0xff]   ;;  %v2690_v22 = vld [vmem:[#allocation5 + $0x78] sm:$0xff]   ;;  %p2534_p13 = por %p2533_p12, %p2532_p11 }
  0x3f   :  { %2038 = vmatpush3.bf16.msra.mxu0 %v2639_v6  ;;  %529 = vmatprep.subr.bf16.mxu1 %v2562_v0  ;;  %v2683_v20 = vld [vmem:[#allocation5 + $0xb0] sm:$0xff]   ;;  %v2694_v24 = vld [vmem:[#allocation5 + $0xb8] sm:$0xff]   ;;  %v2703_v28 = vld [vmem:[#allocation5 + $0xc0] sm:$0xff]  }
  0x40   :  { %2039 = vmatprep.subr.bf16.mxu0 %v2641_v7  ;;  %v2686_v21 = vld [vmem:[#allocation5 + $0x30] sm:$0xff]   ;;  %v2306_v25 = vld [vmem:[#allocation2 + $0xc] ss:$16 sps:$4 sm:$0xff]   ;;  %v2304_v30 = vld [vmem:[#allocation2 + $0x8] ss:$16 sps:$4 sm:$0xff]   ;;  %p2535_p0 = pnand %p2534_p13, %p2528_p10 }
  0x41   :  { %v2302_v23 = vld [vmem:[#allocation2 + $0x4] ss:$16 sps:$4 sm:$0xff]   ;;  %v2698_v26 = vld [vmem:[#allocation5 + $0x38] sm:$0xff]   ;;  %1897 = vmatprep.mubr.msk.bf16.mxu1 %vm415_vm0, %v2306_v25  ;;  %v2300_v27 = vld [vmem:[#allocation2] ss:$16 sps:$4 sm:$0xff]  }
  0x42   :  { %530 = vmatpush1.bf16.msra.mxu1 %v2644_v8  ;;  %469 = vmatprep.mubr.bf16.mxu0 %v2302_v23  ;;  %v2307_v29 = vld [vmem:[#allocation2 + $0x24] ss:$16 sps:$4 sm:$0xff]   ;;  %v2310_v31 = vld [vmem:[#allocation2 + $0x2c] ss:$16 sps:$4 sm:$0xff]   ;;  %v2309_v32 = vld [vmem:[#allocation2 + $0x20] ss:$16 sps:$4 sm:$0xff]  }
  0x43   :  { %2040 = vmatpush3.bf16.msra.mxu0 %v2648_v9  ;;  %531 = vmatprep.subr.bf16.mxu1 %v2562_v0  ;;  %v2313_v33 = vld [vmem:[#allocation2 + $0x44] ss:$16 sps:$4 sm:$0xff]   ;;  %v2312_v34 = vld [vmem:[#allocation2 + $0x28] ss:$16 sps:$4 sm:$0xff]   ;;  %v2316_v35 = vld [vmem:[#allocation2 + $0x4c] ss:$16 sps:$4 sm:$0xff]  }
  0x44   :  { %2041 = vmatprep.subr.bf16.mxu0 %v2651_v10  ;;  %v2315_v36 = vld [vmem:[#allocation2 + $0x40] ss:$16 sps:$4 sm:$0xff]   ;;  %v2319_v37 = vld [vmem:[#allocation2 + $0x64] ss:$16 sps:$4 sm:$0xff]   ;;  %v2318_v38 = vld [vmem:[#allocation2 + $0x48] ss:$16 sps:$4 sm:$0xff]  }
  0x45   :  { %v2322_v39 = vld [vmem:[#allocation2 + $0x6c] ss:$16 sps:$4 sm:$0xff]   ;;  %v2321_v40 = vld [vmem:[#allocation2 + $0x60] ss:$16 sps:$4 sm:$0xff]   ;;  %v2325_v41 = vld [vmem:[#allocation2 + $0x84] ss:$16 sps:$4 sm:$0xff]  }
  0x46   :  { %532 = vmatpush1.bf16.msra.mxu1 %v2654_v11  ;;  %v2324_v42 = vld [vmem:[#allocation2 + $0x68] ss:$16 sps:$4 sm:$0xff]   ;;  %v2328_v43 = vld [vmem:[#allocation2 + $0x8c] ss:$16 sps:$4 sm:$0xff]   ;;  %v2327_v44 = vld [vmem:[#allocation2 + $0x80] ss:$16 sps:$4 sm:$0xff]  }
  0x47   :  { %2042 = vmatpush3.bf16.msra.mxu0 %v2658_v12  ;;  %533 = vmatprep.subr.bf16.mxu1 %v2562_v0  ;;  %v2331_v45 = vld [vmem:[#allocation2 + $0xa4] ss:$16 sps:$4 sm:$0xff]   ;;  %v2330_v46 = vld [vmem:[#allocation2 + $0x88] ss:$16 sps:$4 sm:$0xff]   ;;  %v2334_v47 = vld [vmem:[#allocation2 + $0xac] ss:$16 sps:$4 sm:$0xff]  }
  0x48   :  { %2043 = vmatprep.subr.bf16.mxu0 %v2661_v13  ;;  %v130_v48 = vld [vmem:[#allocation2 + $0xc0] sm:$0x11]  ;;  %v131_v51 = vld [vmem:[#allocation2 + $0xc8] sm:$0x11] }
  0x49   :  { %v2333_v49 = vld [vmem:[#allocation2 + $0xa0] ss:$16 sps:$4 sm:$0xff]   ;;  %v1869_v50 = vcombine.high %v130_v48, %v130_v48  ;;  %v2336_v52 = vld [vmem:[#allocation2 + $0xa8] ss:$16 sps:$4 sm:$0xff]   ;;  %v1871_v53 = vcombine.high %v131_v51, %v131_v51  ;;  %v2343_v54 = vld [vmem:[#allocation2 + $0xd4] ss:$16 sps:$4 sm:$0xff]   ;;  %v1868_v55 = vcombine.low %v130_v48, %v130_v48  ;;  %v1870_v56 = vcombine.low %v131_v51, %v131_v51 }
  0x4a   :  { %534 = vmatpush1.bf16.msra.mxu1 %v2664_v14  ;;  %v2346_v57 = vld [vmem:[#allocation2 + $0xdc] ss:$16 sps:$4 sm:$0xff]   ;;  %v2341_v58 = vld [vmem:[#allocation2 + $0xd0] ss:$16 sps:$4 sm:$0xff]   ;;  %v2347_v59 = vld [vmem:[#allocation2 + $0xf4] ss:$16 sps:$4 sm:$0xff]  }
  0x4b   :  { %2044 = vmatpush3.bf16.msra.mxu0 %v2668_v15  ;;  %535 = vmatprep.subr.bf16.mxu1 %v2562_v0  ;;  %v2344_v60 = vld [vmem:[#allocation2 + $0xd8] ss:$16 sps:$4 sm:$0xff]   ;;  %v2350_v61 = vld [vmem:[#allocation2 + $0xfc] ss:$16 sps:$4 sm:$0xff]   ;;  %v2349_v62 = vld [vmem:[#allocation2 + $0xf0] ss:$16 sps:$4 sm:$0xff]  }
  0x4c   :  { %2045 = vmatprep.subr.bf16.mxu0 %v2671_v16  ;;  %v2353_v63 = vld [vmem:[#allocation2 + $0x114] ss:$16 sps:$4 sm:$0xff]   ;;  %v2352_v23 = vld [vmem:[#allocation2 + $0xf8] ss:$16 sps:$4 sm:$0xff]   ;;  %v2356_v25 = vld [vmem:[#allocation2 + $0x11c] ss:$16 sps:$4 sm:$0xff]  }
  0x4d   :  { %v2386_v48 = vld [vmem:[#allocation2 + $0x1ac] ss:$16 sps:$4 sm:$0xff]   ;;  %v2384_v51 = vld [vmem:[#allocation2 + $0x1a8] ss:$16 sps:$4 sm:$0xff]  }
  0x4e   :  { %536 = vmatpush1.bf16.msra.mxu1 %v2674_v17 }
  0x4f   :  { %2046 = vmatpush3.bf16.msra.mxu0 %v2678_v18  ;;  %537 = vmatprep.subr.bf16.mxu1 %v2562_v0 }
  0x50   :  { %2047 = vmatprep.subr.bf16.mxu0 %v2681_v19 }
  0x52   :  { %538 = vmatpush1.bf16.msra.mxu1 %v2683_v20 }
  0x53   :  { %2048 = vmatpush3.bf16.msra.mxu0 %v2686_v21  ;;  %539 = vmatprep.subr.bf16.mxu1 %v2562_v0 }
  0x54   :  { %2049 = vmatprep.subr.bf16.mxu0 %v2690_v22 }
  0x56   :  { %540 = vmatpush1.bf16.msra.mxu1 %v2694_v24 }
  0x57   :  { %2050 = vmatpush3.bf16.msra.mxu0 %v2698_v26  ;;  %541 = vmatprep.subr.bf16.mxu1 %v2562_v0 }
  0x58   :  { %2093 = vmatprep.subr.bf16.mxu0 %v2624_v1 }
  0x5a   :  { %470 = vmatmul.mubr.bf16.vlgmr.msra.gmra.mrb[0].mxu0 %v2300_v27  ;;  %542 = vmatpush1.bf16.msra.mxu1 %v2703_v28  ;;  %v2355_v27 = vld [vmem:[#allocation2 + $0x110] ss:$16 sps:$4 sm:$0xff]  }
  0x5b   :  { %2094 = vmatpush3.bf16.msra.mxu0 %v2629_v3  ;;  %889 = vmatprep.subr.bf16.mxu1 %v2562_v0 }
  0x5c   :  { %477 = vmatprep.mubr.bf16.mxu0 %v2307_v29  ;;  %2095 = vmatprep.subr.bf16.mxu0 %v2632_v4  ;;  %v2359_v29 = vld [vmem:[#allocation2 + $0x134] ss:$16 sps:$4 sm:$0xff]  }
  0x5d   :  { %558 = vmatmul.mubr.bf16.vlgmr.msra.gmra.mrb[0].mxu1 %v2304_v30  ;;  %v2358_v30 = vld [vmem:[#allocation2 + $0x118] ss:$16 sps:$4 sm:$0xff]  }
  0x5e   :  { %890 = vmatpush1.bf16.msra.mxu1 %v2626_v2  ;;  %1898 = vmatprep.mubr.msk.bf16.mxu1 %vm415_vm0, %v2310_v31  ;;  %v2362_v31 = vld [vmem:[#allocation2 + $0x13c] ss:$16 sps:$4 sm:$0xff]  }
  0x5f   :  { %2096 = vmatpush3.bf16.msra.mxu0 %v2639_v6  ;;  %891 = vmatprep.subr.bf16.mxu1 %v2562_v0 }
  0x60   :  { %2097 = vmatprep.subr.bf16.mxu0 %v2641_v7 }
  0x62   :  { %478 = vmatmul.mubr.bf16.gmra.mrb[4].mxu0 %v2309_v32  ;;  %892 = vmatpush1.bf16.msra.mxu1 %v2636_v5  ;;  %v2361_v32 = vld [vmem:[#allocation2 + $0x130] ss:$16 sps:$4 sm:$0xff]  }
  0x63   :  { %485 = vmatprep.mubr.bf16.mxu0 %v2313_v33  ;;  %2098 = vmatpush3.bf16.msra.mxu0 %v2648_v9  ;;  %v2365_v33 = vld [vmem:[#allocation2 + $0x154] ss:$16 sps:$4 sm:$0xff]  }
  0x64   :  { %893 = vmatprep.subr.bf16.mxu1 %v2562_v0  ;;  %2099 = vmatprep.subr.bf16.mxu0 %v2651_v10 }
  0x65   :  { %566 = vmatmul.mubr.bf16.gmra.mrb[4].mxu1 %v2312_v34  ;;  %v2364_v34 = vld [vmem:[#allocation2 + $0x138] ss:$16 sps:$4 sm:$0xff]  }
  0x66   :  { %1899 = vmatprep.mubr.msk.bf16.mxu1 %vm415_vm0, %v2316_v35  ;;  %894 = vmatpush1.bf16.msra.mxu1 %v2644_v8  ;;  %v2368_v35 = vld [vmem:[#allocation2 + $0x15c] ss:$16 sps:$4 sm:$0xff]  }
  0x67   :  { %2100 = vmatpush3.bf16.msra.mxu0 %v2658_v12  ;;  %895 = vmatprep.subr.bf16.mxu1 %v2562_v0 }
  0x68   :  { %2101 = vmatprep.subr.bf16.mxu0 %v2661_v13 }
  0x6a   :  { %486 = vmatmul.mubr.bf16.gmra.mrb[8].mxu0 %v2315_v36  ;;  %896 = vmatpush1.bf16.msra.mxu1 %v2654_v11  ;;  %v2367_v36 = vld [vmem:[#allocation2 + $0x150] ss:$16 sps:$4 sm:$0xff]  }
  0x6b   :  { %493 = vmatprep.mubr.bf16.mxu0 %v2319_v37  ;;  %2102 = vmatpush3.bf16.msra.mxu0 %v2668_v15  ;;  %v2371_v37 = vld [vmem:[#allocation2 + $0x174] ss:$16 sps:$4 sm:$0xff]  }
  0x6c   :  { %897 = vmatprep.subr.bf16.mxu1 %v2562_v0  ;;  %2103 = vmatprep.subr.bf16.mxu0 %v2671_v16 }
  0x6d   :  { %574 = vmatmul.mubr.bf16.gmra.mrb[8].mxu1 %v2318_v38  ;;  %v2370_v38 = vld [vmem:[#allocation2 + $0x158] ss:$16 sps:$4 sm:$0xff]  }
  0x6e   :  { %1900 = vmatprep.mubr.msk.bf16.mxu1 %vm415_vm0, %v2322_v39  ;;  %898 = vmatpush1.bf16.msra.mxu1 %v2664_v14  ;;  %v2374_v39 = vld [vmem:[#allocation2 + $0x17c] ss:$16 sps:$4 sm:$0xff]  }
  0x6f   :  { %2104 = vmatpush3.bf16.msra.mxu0 %v2678_v18  ;;  %899 = vmatprep.subr.bf16.mxu1 %v2562_v0 }
  0x70   :  { %2105 = vmatprep.subr.bf16.mxu0 %v2681_v19 }
  0x72   :  { %494 = vmatmul.mubr.bf16.gmra.mrb[12].mxu0 %v2321_v40  ;;  %900 = vmatpush1.bf16.msra.mxu1 %v2674_v17  ;;  %v651_v40 = vld [vmem:[#allocation2 + $0x190] sm:$0x11] }
  0x73   :  { %501 = vmatprep.mubr.bf16.mxu0 %v2325_v41  ;;  %2106 = vmatpush3.bf16.msra.mxu0 %v2686_v21  ;;  %v2373_v41 = vld [vmem:[#allocation2 + $0x170] ss:$16 sps:$4 sm:$0xff]  }
  0x74   :  { %901 = vmatprep.subr.bf16.mxu1 %v2562_v0  ;;  %2107 = vmatprep.subr.bf16.mxu0 %v2690_v22 }
  0x75   :  { %582 = vmatmul.mubr.bf16.gmra.mrb[12].mxu1 %v2324_v42  ;;  %v1929_v42 = vcombine.high %v651_v40, %v651_v40 }
  0x76   :  { %1901 = vmatprep.mubr.msk.bf16.mxu1 %vm415_vm0, %v2328_v43  ;;  %902 = vmatpush1.bf16.msra.mxu1 %v2683_v20  ;;  %v652_v43 = vld [vmem:[#allocation2 + $0x198] sm:$0x11] }
  0x77   :  { %903 = vmatprep.subr.bf16.mxu1 %v2562_v0  ;;  %2108 = vmatpush3.bf16.msra.mxu0 %v2698_v26 }
  0x78   :  { %2151 = vmatprep.subr.bf16.mxu0 %v2624_v1 }
  0x7a   :  { %502 = vmatmul.mubr.bf16.gmra.mrb[16].mxu0 %v2327_v44  ;;  %904 = vmatpush1.bf16.msra.mxu1 %v2694_v24  ;;  %v1931_v44 = vcombine.high %v652_v43, %v652_v43 }
  0x7b   :  { %509 = vmatprep.mubr.bf16.mxu0 %v2331_v45  ;;  %905 = vmatprep.subr.bf16.mxu1 %v2562_v0  ;;  %v1928_v45 = vcombine.low %v651_v40, %v651_v40  ;;  %v2456_v40 = vld [vmem:[#allocation2 + $0x318] ss:$16 sps:$4 sm:$0xff]  }
  0x7d   :  { %590 = vmatmul.mubr.bf16.gmra.mrb[16].mxu1 %v2330_v46  ;;  %v2383_v46 = vld [vmem:[#allocation2 + $0x1a4] ss:$16 sps:$4 sm:$0xff]  }
  0x7e   :  { %1902 = vmatprep.mubr.msk.bf16.mxu1 %vm415_vm0, %v2334_v47  ;;  %906 = vmatpush1.bf16.msra.mxu1 %v2703_v28  ;;  %v1930_v47 = vcombine.low %v652_v43, %v652_v43 }
  0x7f   :  { %1266 = vmatprep.subr.bf16.mxu1 %v2562_v0 }
  0x82   :  { %510 = vmatmul.mubr.bf16.gmra.mrb[20].mxu0 %v2333_v49  ;;  %v2381_v49 = vld [vmem:[#allocation2 + $0x1a0] ss:$16 sps:$4 sm:$0xff]  }
  0x83   :  { %517 = vmatprep.mubr.bf16.mxu0 %v1869_v50  ;;  %v2387_v50 = vld [vmem:[#allocation2 + $0x1c4] ss:$16 sps:$4 sm:$0xff]  }
  0x85   :  { %598 = vmatmul.mubr.bf16.gmra.mrb[20].mxu1 %v2336_v52  ;;  %v2390_v52 = vld [vmem:[#allocation2 + $0x1cc] ss:$16 sps:$4 sm:$0xff]  }
  0x86   :  { %1903 = vmatprep.mubr.msk.bf16.mxu1 %vm415_vm0, %v1871_v53  ;;  %v2389_v53 = vld [vmem:[#allocation2 + $0x1c0] ss:$16 sps:$4 sm:$0xff]  }
  0x8a   :  { %518 = vmatmul.mubr.bf16.gmra.mrb[24].mxu0 %v1868_v55  ;;  %v2392_v55 = vld [vmem:[#allocation2 + $0x1c8] ss:$16 sps:$4 sm:$0xff]  }
  0x8b   :  { %833 = vmatprep.mubr.bf16.mxu0 %v2343_v54  ;;  %v2393_v54 = vld [vmem:[#allocation2 + $0x1e4] ss:$16 sps:$4 sm:$0xff]  }
  0x8d   :  { %606 = vmatmul.mubr.bf16.gmra.mrb[24].mxu1 %v1870_v56  ;;  %v2424_v56 = vld [vmem:[#allocation2 + $0x278] ss:$16 sps:$4 sm:$0xff]  }
  0x8e   :  { %1932 = vmatprep.mubr.msk.bf16.mxu1 %vm415_vm0, %v2346_v57  ;;  %v2430_v57 = vld [vmem:[#allocation2 + $0x29c] ss:$16 sps:$4 sm:$0xff]  }
  0x92   :  { %834 = vmatmul.mubr.bf16.vlgmr.msra.gmra.mrb[28].mxu0 %v2341_v58  ;;  %v2429_v58 = vld [vmem:[#allocation2 + $0x290] ss:$16 sps:$4 sm:$0xff]  }
  0x93   :  { %2152 = vmatpush3.bf16.msra.mxu0 %v2629_v3  ;;  %841 = vmatprep.mubr.bf16.mxu0 %v2347_v59  ;;  %v2433_v59 = vld [vmem:[#allocation2 + $0x2b4] ss:$16 sps:$4 sm:$0xff]  }
  0x94   :  { %2153 = vmatprep.subr.bf16.mxu0 %v2632_v4 }
  0x95   :  { %922 = vmatmul.mubr.bf16.vlgmr.msra.gmra.mrb[28].mxu1 %v2344_v60  ;;  %v2432_v60 = vld [vmem:[#allocation2 + $0x298] ss:$16 sps:$4 sm:$0xff]  }
  0x96   :  { %1267 = vmatpush1.bf16.msra.mxu1 %v2626_v2  ;;  %1933 = vmatprep.mubr.msk.bf16.mxu1 %vm415_vm0, %v2350_v61  ;;  %v2436_v61 = vld [vmem:[#allocation2 + $0x2bc] ss:$16 sps:$4 sm:$0xff]  }
  0x97   :  { %2154 = vmatpush3.bf16.msra.mxu0 %v2639_v6  ;;  %1268 = vmatprep.subr.bf16.mxu1 %v2562_v0 }
  0x98   :  { %2155 = vmatprep.subr.bf16.mxu0 %v2641_v7 }
  0x9a   :  { %842 = vmatmul.mubr.bf16.gmra.mrb[32].mxu0 %v2349_v62  ;;  %1269 = vmatpush1.bf16.msra.mxu1 %v2636_v5  ;;  %v2435_v62 = vld [vmem:[#allocation2 + $0x2b0] ss:$16 sps:$4 sm:$0xff]  }
  0x9b   :  { %849 = vmatprep.mubr.bf16.mxu0 %v2353_v63  ;;  %2156 = vmatpush3.bf16.msra.mxu0 %v2648_v9  ;;  %v2439_v63 = vld [vmem:[#allocation2 + $0x2d4] ss:$16 sps:$4 sm:$0xff]  }
  0x9c   :  { %1270 = vmatprep.subr.bf16.mxu1 %v2562_v0  ;;  %2157 = vmatprep.subr.bf16.mxu0 %v2651_v10 }
  0x9d   :  { %930 = vmatmul.mubr.bf16.gmra.mrb[32].mxu1 %v2352_v23  ;;  %v2438_v23 = vld [vmem:[#allocation2 + $0x2b8] ss:$16 sps:$4 sm:$0xff]  }
  0x9e   :  { %1934 = vmatprep.mubr.msk.bf16.mxu1 %vm415_vm0, %v2356_v25  ;;  %1271 = vmatpush1.bf16.msra.mxu1 %v2644_v8  ;;  %v2442_v25 = vld [vmem:[#allocation2 + $0x2dc] ss:$16 sps:$4 sm:$0xff]  }
  0x9f   :  { %2158 = vmatpush3.bf16.msra.mxu0 %v2658_v12  ;;  %1272 = vmatprep.subr.bf16.mxu1 %v2562_v0 }
  0xa0   :  { %2159 = vmatprep.subr.bf16.mxu0 %v2661_v13 }
  0xa2   :  { %850 = vmatmul.mubr.bf16.gmra.mrb[36].mxu0 %v2355_v27  ;;  %1273 = vmatpush1.bf16.msra.mxu1 %v2654_v11  ;;  %v2441_v27 = vld [vmem:[#allocation2 + $0x2d0] ss:$16 sps:$4 sm:$0xff]  }
  0xa3   :  { %857 = vmatprep.mubr.bf16.mxu0 %v2359_v29  ;;  %2160 = vmatpush3.bf16.msra.mxu0 %v2668_v15  ;;  %v2445_v29 = vld [vmem:[#allocation2 + $0x2f4] ss:$16 sps:$4 sm:$0xff]  }
  0xa4   :  { %1274 = vmatprep.subr.bf16.mxu1 %v2562_v0  ;;  %2161 = vmatprep.subr.bf16.mxu0 %v2671_v16 }
  0xa5   :  { %938 = vmatmul.mubr.bf16.gmra.mrb[36].mxu1 %v2358_v30  ;;  %v2444_v30 = vld [vmem:[#allocation2 + $0x2d8] ss:$16 sps:$4 sm:$0xff]  }
  0xa6   :  { %1935 = vmatprep.mubr.msk.bf16.mxu1 %vm415_vm0, %v2362_v31  ;;  %1275 = vmatpush1.bf16.msra.mxu1 %v2664_v14  ;;  %v2448_v31 = vld [vmem:[#allocation2 + $0x2fc] ss:$16 sps:$4 sm:$0xff]  }
  0xa7   :  { %2162 = vmatpush3.bf16.msra.mxu0 %v2678_v18  ;;  %1276 = vmatprep.subr.bf16.mxu1 %v2562_v0 }
  0xa8   :  { %2163 = vmatprep.subr.bf16.mxu0 %v2681_v19 }
  0xaa   :  { %858 = vmatmul.mubr.bf16.gmra.mrb[40].mxu0 %v2361_v32  ;;  %1277 = vmatpush1.bf16.msra.mxu1 %v2674_v17  ;;  %v2447_v32 = vld [vmem:[#allocation2 + $0x2f0] ss:$16 sps:$4 sm:$0xff]  }
  0xab   :  { %865 = vmatprep.mubr.bf16.mxu0 %v2365_v33  ;;  %2164 = vmatpush3.bf16.msra.mxu0 %v2686_v21  ;;  %v2451_v33 = vld [vmem:[#allocation2 + $0x314] ss:$16 sps:$4 sm:$0xff]  }
  0xac   :  { %1278 = vmatprep.subr.bf16.mxu1 %v2562_v0  ;;  %2165 = vmatprep.subr.bf16.mxu0 %v2690_v22 }
  0xad   :  { %946 = vmatmul.mubr.bf16.gmra.mrb[40].mxu1 %v2364_v34  ;;  %v2450_v34 = vld [vmem:[#allocation2 + $0x2f8] ss:$16 sps:$4 sm:$0xff]  }
  0xae   :  { %1936 = vmatprep.mubr.msk.bf16.mxu1 %vm415_vm0, %v2368_v35  ;;  %1279 = vmatpush1.bf16.msra.mxu1 %v2683_v20  ;;  %v2454_v35 = vld [vmem:[#allocation2 + $0x31c] ss:$16 sps:$4 sm:$0xff]  }
  0xaf   :  { %1280 = vmatprep.subr.bf16.mxu1 %v2562_v0  ;;  %2166 = vmatpush3.bf16.msra.mxu0 %v2698_v26 }
  0xb0   :  { %2209 = vmatprep.subr.bf16.mxu0 %v2624_v1  ;;  %v2376_v1 = vld [vmem:[#allocation2 + $0x178] ss:$16 sps:$4 sm:$0xff]  }
  0xb2   :  { %866 = vmatmul.mubr.bf16.gmra.mrb[44].mxu0 %v2367_v36  ;;  %1281 = vmatpush1.bf16.msra.mxu1 %v2694_v24  ;;  %v1392_v36 = vld [vmem:[#allocation2 + $0x330] sm:$0x11] }
  0xb3   :  { %873 = vmatprep.mubr.bf16.mxu0 %v2371_v37  ;;  %1282 = vmatprep.subr.bf16.mxu1 %v2562_v0  ;;  %v2453_v37 = vld [vmem:[#allocation2 + $0x310] ss:$16 sps:$4 sm:$0xff]  }
  0xb5   :  { %954 = vmatmul.mubr.bf16.gmra.mrb[44].mxu1 %v2370_v38  ;;  %v1999_v38 = vcombine.high %v1392_v36, %v1392_v36 }
  0xb6   :  { %1937 = vmatprep.mubr.msk.bf16.mxu1 %vm415_vm0, %v2374_v39  ;;  %1283 = vmatpush1.bf16.msra.mxu1 %v2703_v28  ;;  %v1393_v39 = vld [vmem:[#allocation2 + $0x338] sm:$0x11] }
  0xb7   :  { %1630 = vmatprep.subr.bf16.mxu1 %v2562_v0 }
  0xba   :  { %874 = vmatmul.mubr.bf16.gmra.mrb[48].mxu0 %v2373_v41  ;;  %v2001_v41 = vcombine.high %v1393_v39, %v1393_v39 }
  0xbb   :  { %881 = vmatprep.mubr.bf16.mxu0 %v1929_v42 }
  0xbd   :  { %962 = vmatmul.mubr.bf16.gmra.mrb[48].mxu1 %v2376_v1  ;;  %v2836_v1 = vld [vmem:[#allocation7] ss:$0 sm:$0xff] }
  0xbe   :  { %1938 = vmatprep.mubr.msk.bf16.mxu1 %vm415_vm0, %v1931_v44  ;;  %v1998_v44 = vcombine.low %v1392_v36, %v1392_v36 }
  0xc2   :  { %882 = vmatmul.mubr.bf16.gmra.mrb[52].mxu0 %v1928_v45 }
  0xc3   :  { %1210 = vmatprep.mubr.bf16.mxu0 %v2383_v46 }
  0xc5   :  { %970 = vmatmul.mubr.bf16.gmra.mrb[52].mxu1 %v1930_v47 }
  0xc6   :  { %1967 = vmatprep.mubr.msk.bf16.mxu1 %vm415_vm0, %v2386_v48 }
  0xca   :  { %1211 = vmatmul.mubr.bf16.vlgmr.msra.gmra.mrb[56].mxu0 %v2381_v49 }
  0xcb   :  { %2210 = vmatpush3.bf16.msra.mxu0 %v2629_v3  ;;  %1218 = vmatprep.mubr.bf16.mxu0 %v2387_v50  ;;  %v2396_v3 = vld [vmem:[#allocation2 + $0x1ec] ss:$16 sps:$4 sm:$0xff]  }
  0xcc   :  { %2211 = vmatprep.subr.bf16.mxu0 %v2632_v4  ;;  %v2399_v4 = vld [vmem:[#allocation2 + $0x204] ss:$16 sps:$4 sm:$0xff]  }
  0xcd   :  { %1299 = vmatmul.mubr.bf16.vlgmr.msra.gmra.mrb[56].mxu1 %v2384_v51 }
  0xce   :  { %1631 = vmatpush1.bf16.msra.mxu1 %v2626_v2  ;;  %1968 = vmatprep.mubr.msk.bf16.mxu1 %vm415_vm0, %v2390_v52  ;;  %v2395_v2 = vld [vmem:[#allocation2 + $0x1e0] ss:$16 sps:$4 sm:$0xff]   ;;  %v2000_v52 = vcombine.low %v1393_v39, %v1393_v39 }
  0xcf   :  { %2212 = vmatpush3.bf16.msra.mxu0 %v2639_v6  ;;  %1632 = vmatprep.subr.bf16.mxu1 %v2562_v0  ;;  %v2402_v6 = vld [vmem:[#allocation2 + $0x20c] ss:$16 sps:$4 sm:$0xff]  }
  0xd0   :  { %2213 = vmatprep.subr.bf16.mxu0 %v2641_v7  ;;  %v2401_v7 = vld [vmem:[#allocation2 + $0x200] ss:$16 sps:$4 sm:$0xff]  }
  0xd2   :  { %1219 = vmatmul.mubr.bf16.gmra.mrb[60].mxu0 %v2389_v53  ;;  %1633 = vmatpush1.bf16.msra.mxu1 %v2636_v5  ;;  %v2398_v5 = vld [vmem:[#allocation2 + $0x1e8] ss:$16 sps:$4 sm:$0xff]  }
  0xd3   :  { %1226 = vmatprep.mubr.bf16.mxu0 %v2393_v54  ;;  %2214 = vmatpush3.bf16.msra.mxu0 %v2648_v9  ;;  %v2404_v9 = vld [vmem:[#allocation2 + $0x208] ss:$16 sps:$4 sm:$0xff]  }
  0xd4   :  { %1634 = vmatprep.subr.bf16.mxu1 %v2562_v0  ;;  %2215 = vmatprep.subr.bf16.mxu0 %v2651_v10  ;;  %v2408_v10 = vld [vmem:[#allocation2 + $0x22c] ss:$16 sps:$4 sm:$0xff]  }
  0xd5   :  { %1307 = vmatmul.mubr.bf16.gmra.mrb[60].mxu1 %v2392_v55 }
  0xd6   :  { %1969 = vmatprep.mubr.msk.bf16.mxu1 %vm415_vm0, %v2396_v3  ;;  %1635 = vmatpush1.bf16.msra.mxu1 %v2644_v8  ;;  %v2405_v8 = vld [vmem:[#allocation2 + $0x224] ss:$16 sps:$4 sm:$0xff]  }
  0xd7   :  { %2216 = vmatpush3.bf16.msra.mxu0 %v2658_v12  ;;  %1636 = vmatprep.subr.bf16.mxu1 %v2562_v0  ;;  %v2411_v12 = vld [vmem:[#allocation2 + $0x244] ss:$16 sps:$4 sm:$0xff]  }
  0xd8   :  { %2217 = vmatprep.subr.bf16.mxu0 %v2661_v13  ;;  %v2410_v13 = vld [vmem:[#allocation2 + $0x228] ss:$16 sps:$4 sm:$0xff]  }
  0xda   :  { %1227 = vmatmul.mubr.bf16.gmra.mrb[64].mxu0 %v2395_v2  ;;  %1637 = vmatpush1.bf16.msra.mxu1 %v2654_v11  ;;  %v2407_v11 = vld [vmem:[#allocation2 + $0x220] ss:$16 sps:$4 sm:$0xff]  }
  0xdb   :  { %1234 = vmatprep.mubr.bf16.mxu0 %v2399_v4  ;;  %2218 = vmatpush3.bf16.msra.mxu0 %v2668_v15  ;;  %v1028_v15 = vld [vmem:[#allocation2 + $0x260] sm:$0x11] }
  0xdc   :  { %1638 = vmatprep.subr.bf16.mxu1 %v2562_v0  ;;  %2219 = vmatprep.subr.bf16.mxu0 %v2671_v16  ;;  %v2413_v16 = vld [vmem:[#allocation2 + $0x240] ss:$16 sps:$4 sm:$0xff]  }
  0xdd   :  { %1315 = vmatmul.mubr.bf16.gmra.mrb[64].mxu1 %v2398_v5 }
  0xde   :  { %1970 = vmatprep.mubr.msk.bf16.mxu1 %vm415_vm0, %v2402_v6  ;;  %1639 = vmatpush1.bf16.msra.mxu1 %v2664_v14  ;;  %v2414_v14 = vld [vmem:[#allocation2 + $0x24c] ss:$16 sps:$4 sm:$0xff]  }
  0xdf   :  { %2220 = vmatpush3.bf16.msra.mxu0 %v2678_v18  ;;  %1640 = vmatprep.subr.bf16.mxu1 %v2562_v0  ;;  %v1029_v18 = vld [vmem:[#allocation2 + $0x268] sm:$0x11] }
  0xe0   :  { %2221 = vmatprep.subr.bf16.mxu0 %v2681_v19  ;;  %v2416_v19 = vld [vmem:[#allocation2 + $0x248] ss:$16 sps:$4 sm:$0xff]  }
  0xe2   :  { %1235 = vmatmul.mubr.bf16.gmra.mrb[68].mxu0 %v2401_v7  ;;  %1641 = vmatpush1.bf16.msra.mxu1 %v2674_v17  ;;  %v1964_v17 = vcombine.high %v1028_v15, %v1028_v15 }
  0xe3   :  { %1242 = vmatprep.mubr.bf16.mxu0 %v2405_v8  ;;  %2222 = vmatpush3.bf16.msra.mxu0 %v2686_v21  ;;  %v1963_v21 = vcombine.low %v1028_v15, %v1028_v15 }
  0xe4   :  { %1642 = vmatprep.subr.bf16.mxu1 %v2562_v0  ;;  %2223 = vmatprep.subr.bf16.mxu0 %v2690_v22  ;;  %v2423_v22 = vld [vmem:[#allocation2 + $0x274] ss:$16 sps:$4 sm:$0xff]  }
  0xe5   :  { %1323 = vmatmul.mubr.bf16.gmra.mrb[68].mxu1 %v2404_v9 }
  0xe6   :  { %1971 = vmatprep.mubr.msk.bf16.mxu1 %vm415_vm0, %v2408_v10  ;;  %1643 = vmatpush1.bf16.msra.mxu1 %v2683_v20  ;;  %v1966_v20 = vcombine.high %v1029_v18, %v1029_v18 }
  0xe7   :  { %1644 = vmatprep.subr.bf16.mxu1 %v2562_v0  ;;  %2224 = vmatpush3.bf16.msra.mxu0 %v2698_v26  ;;  %v2421_v26 = vld [vmem:[#allocation2 + $0x270] ss:$16 sps:$4 sm:$0xff]  }
  0xea   :  { %1243 = vmatmul.mubr.bf16.gmra.mrb[72].mxu0 %v2407_v11  ;;  %1645 = vmatpush1.bf16.msra.mxu1 %v2694_v24  ;;  %v1965_v24 = vcombine.low %v1029_v18, %v1029_v18 }
  0xeb   :  { %1250 = vmatprep.mubr.bf16.mxu0 %v2411_v12  ;;  %1646 = vmatprep.subr.bf16.mxu1 %v2562_v0  ;;  %v2426_v0 = vld [vmem:[#allocation2 + $0x27c] ss:$16 sps:$4 sm:$0xff]  }
  0xed   :  { %1331 = vmatmul.mubr.bf16.gmra.mrb[72].mxu1 %v2410_v13 }
  0xee   :  { %1972 = vmatprep.mubr.msk.bf16.mxu1 %vm415_vm0, %v2414_v14  ;;  %1647 = vmatpush1.bf16.msra.mxu1 %v2703_v28  ;;  %v2427_v28 = vld [vmem:[#allocation2 + $0x294] ss:$16 sps:$4 sm:$0xff]  }
  0xf2   :  { %1251 = vmatmul.mubr.bf16.gmra.mrb[76].mxu0 %v2413_v16 }
  0xf3   :  { %1258 = vmatprep.mubr.bf16.mxu0 %v1964_v17 }
  0xf5   :  { %1339 = vmatmul.mubr.bf16.gmra.mrb[76].mxu1 %v2416_v19 }
  0xf6   :  { %1973 = vmatprep.mubr.msk.bf16.mxu1 %vm415_vm0, %v1966_v20 }
  0xfa   :  { %1259 = vmatmul.mubr.bf16.gmra.mrb[80].mxu0 %v1963_v21 }
  0xfb   :  { %1574 = vmatprep.mubr.bf16.mxu0 %v2423_v22 }
  0xfd   :  { %1347 = vmatmul.mubr.bf16.gmra.mrb[80].mxu1 %v1965_v24 }
  0xfe   :  { %2002 = vmatprep.mubr.msk.bf16.mxu1 %vm415_vm0, %v2426_v0 }
 0x102   :  { %1575 = vmatmul.mubr.bf16.vlgmr.msra.gmra.mrb[84].mxu0 %v2421_v26 }
 0x103   :  { %1582 = vmatprep.mubr.bf16.mxu0 %v2427_v28 }
 0x105   :  { %1663 = vmatmul.mubr.bf16.vlgmr.msra.gmra.mrb[84].mxu1 %v2424_v56 }
 0x106   :  { %2003 = vmatprep.mubr.msk.bf16.mxu1 %vm415_vm0, %v2430_v57 }
 0x10a   :  { %1583 = vmatmul.mubr.bf16.gmra.mrb[88].mxu0 %v2429_v58 }
 0x10b   :  { %1590 = vmatprep.mubr.bf16.mxu0 %v2433_v59 }
 0x10d   :  { %1671 = vmatmul.mubr.bf16.gmra.mrb[88].mxu1 %v2432_v60 }
 0x10e   :  { %2004 = vmatprep.mubr.msk.bf16.mxu1 %vm415_vm0, %v2436_v61 }
 0x112   :  { %1591 = vmatmul.mubr.bf16.gmra.mrb[92].mxu0 %v2435_v62 }
 0x113   :  { %1598 = vmatprep.mubr.bf16.mxu0 %v2439_v63 }
 0x115   :  { %1679 = vmatmul.mubr.bf16.gmra.mrb[92].mxu1 %v2438_v23 }
 0x116   :  { %2005 = vmatprep.mubr.msk.bf16.mxu1 %vm415_vm0, %v2442_v25 }
 0x11a   :  { %1599 = vmatmul.mubr.bf16.gmra.mrb[96].mxu0 %v2441_v27 }
 0x11b   :  { %1606 = vmatprep.mubr.bf16.mxu0 %v2445_v29 }
 0x11d   :  { %1687 = vmatmul.mubr.bf16.gmra.mrb[96].mxu1 %v2444_v30 }
 0x11e   :  { %2006 = vmatprep.mubr.msk.bf16.mxu1 %vm415_vm0, %v2448_v31 }
 0x122   :  { %1607 = vmatmul.mubr.bf16.gmra.mrb[100].mxu0 %v2447_v32 }
 0x123   :  { %1614 = vmatprep.mubr.bf16.mxu0 %v2451_v33 }
 0x125   :  { %1695 = vmatmul.mubr.bf16.gmra.mrb[100].mxu1 %v2450_v34 }
 0x126   :  { %2007 = vmatprep.mubr.msk.bf16.mxu1 %vm415_vm0, %v2454_v35 }
 0x12a   :  { %1615 = vmatmul.mubr.bf16.gmra.mrb[104].mxu0 %v2453_v37 }
 0x12b   :  { %1622 = vmatprep.mubr.bf16.mxu0 %v1999_v38 }
 0x12d   :  { %v2051_v42 = vpop.f32.mrb[0].mxu0  ;;  %1703 = vmatmul.mubr.bf16.gmra.mrb[104].mxu1 %v2456_v40 }
 0x12e   :  { %v2052_v43 = vpop.f32.mrb[1].mxu0  ;;  %2008 = vmatprep.mubr.msk.bf16.mxu1 %vm415_vm0, %v2001_v41 }
 0x12f   :  { %v2053_v45 = vadd.f32 %v2052_v43, %v2051_v42  ;;  %v2054_v46 = vpop.f32.mrb[2].mxu0 }
 0x130   :  { %v2055_v47 = vpop.f32.mrb[3].mxu0  ;;  %v559_v48 = vpop.f32.mrb[0].mxu1 }
 0x131   :  { %v2056_v49 = vadd.f32 %v2055_v47, %v2054_v46  ;;  %v472_v50 = vadd.f32 %v2053_v45, %v2836_v1  ;;  %v561_v51 = vpop.f32.mrb[1].mxu1 }
 0x132   :  { %v562_v53 = vpop.f32.mrb[2].mxu1  ;;  %1623 = vmatmul.mubr.bf16.gmra.mrb[108].mxu0 %v1998_v44 }
 0x133   :  { %v2840_v54 = vadd.f32 %v559_v48, %v472_v50  ;;  %v475_v55 = vadd.f32 %v2056_v49, %v2836_v1  ;;  %v564_v3 = vpop.f32.mrb[3].mxu1 }
 0x135   :  { %v2843_v2 = vadd.f32 %v562_v53, %v475_v55  ;;  %v2057_v4 = vpop.f32.mrb[4].mxu0  ;;  %1711 = vmatmul.mubr.bf16.gmra.mrb[108].mxu1 %v2000_v52 }
 0x136   :  { %v2058_v5 = vpop.f32.mrb[5].mxu0 }
 0x137   :  { %v2059_v6 = vadd.f32 %v2058_v5, %v2057_v4  ;;  %v2060_v7 = vpop.f32.mrb[6].mxu0 }
 0x138   :  { %v2061_v8 = vpop.f32.mrb[7].mxu0  ;;  %v567_v9 = vpop.f32.mrb[4].mxu1 }
 0x139   :  { %v2062_v10 = vadd.f32 %v2061_v8, %v2060_v7  ;;  %v480_v11 = vadd.f32 %v2059_v6, %v2836_v1  ;;  %v569_v12 = vpop.f32.mrb[5].mxu1 }
 0x13a   :  { %v570_v13 = vpop.f32.mrb[6].mxu1 }
 0x13b   :  { %v2846_v14 = vadd.f32 %v567_v9, %v480_v11  ;;  %v483_v15 = vadd.f32 %v2062_v10, %v2836_v1  ;;  %v572_v16 = vpop.f32.mrb[7].mxu1 }
 0x13d   :  { %v2849_v17 = vadd.f32 %v570_v13, %v483_v15  ;;  %v2063_v18 = vpop.f32.mrb[8].mxu0 }
 0x13e   :  { %v2064_v19 = vpop.f32.mrb[9].mxu0 }
 0x13f   :  { %v2065_v20 = vadd.f32 %v2064_v19, %v2063_v18  ;;  %v2066_v21 = vpop.f32.mrb[10].mxu0 }
 0x140   :  { %v2067_v22 = vpop.f32.mrb[11].mxu0  ;;  %v575_v24 = vpop.f32.mrb[8].mxu1 }
 0x141   :  { %v2068_v0 = vadd.f32 %v2067_v22, %v2066_v21  ;;  %v488_v26 = vadd.f32 %v2065_v20, %v2836_v1  ;;  %v577_v28 = vpop.f32.mrb[9].mxu1 }
 0x142   :  { %v578_v56 = vpop.f32.mrb[10].mxu1 }
 0x143   :  { %v2852_v57 = vadd.f32 %v575_v24, %v488_v26  ;;  %v491_v58 = vadd.f32 %v2068_v0, %v2836_v1  ;;  %v580_v59 = vpop.f32.mrb[11].mxu1 }
 0x145   :  { %v2855_v60 = vadd.f32 %v578_v56, %v491_v58  ;;  %v2069_v61 = vpop.f32.mrb[12].mxu0 }
 0x146   :  { %v2070_v62 = vpop.f32.mrb[13].mxu0 }
 0x147   :  { %v2071_v63 = vadd.f32 %v2070_v62, %v2069_v61  ;;  %v2072_v23 = vpop.f32.mrb[14].mxu0 }
 0x148   :  { %v2073_v25 = vpop.f32.mrb[15].mxu0  ;;  %v583_v27 = vpop.f32.mrb[12].mxu1 }
 0x149   :  { %v2074_v29 = vadd.f32 %v2073_v25, %v2072_v23  ;;  %v496_v30 = vadd.f32 %v2071_v63, %v2836_v1  ;;  %v585_v31 = vpop.f32.mrb[13].mxu1 }
 0x14a   :  { %v586_v32 = vpop.f32.mrb[14].mxu1 }
 0x14b   :  { %v2858_v33 = vadd.f32 %v583_v27, %v496_v30  ;;  %v499_v34 = vadd.f32 %v2074_v29, %v2836_v1  ;;  %v588_v35 = vpop.f32.mrb[15].mxu1 }
 0x14d   :  { %v2861_v36 = vadd.f32 %v586_v32, %v499_v34  ;;  %v2075_v37 = vpop.f32.mrb[16].mxu0  ;;  %v613_v32 = vmax.f32 %v2840_v54, 0.0 }
 0x14e   :  { %v2076_v38 = vpop.f32.mrb[17].mxu0 }
 0x14f   :  { %v2077_v39 = vadd.f32 %v2076_v38, %v2075_v37  ;;  %v2078_v40 = vpop.f32.mrb[18].mxu0 }
 0x150   :  { %v2079_v41 = vpop.f32.mrb[19].mxu0  ;;  %v591_v42 = vpop.f32.mrb[16].mxu1 }
 0x151   :  { %v2080_v43 = vadd.f32 %v2079_v41, %v2078_v40  ;;  %v504_v44 = vadd.f32 %v2077_v39, %v2836_v1  ;;  %v593_v45 = vpop.f32.mrb[17].mxu1  ;;  %v614_v39 = vmax.f32 %v2843_v2, 0.0  ;;  %v615_v2 = vmax.f32 %v2846_v14, 0.0 }
 0x152   :  { %v594_v46 = vpop.f32.mrb[18].mxu1 }
 0x153   :  { %v2864_v47 = vadd.f32 %v591_v42, %v504_v44  ;;  %v507_v48 = vadd.f32 %v2080_v43, %v2836_v1  ;;  %v596_v49 = vpop.f32.mrb[19].mxu1 }
 0x155   :  { %v2867_v50 = vadd.f32 %v594_v46, %v507_v48  ;;  %v2081_v51 = vpop.f32.mrb[20].mxu0 }
 0x156   :  { %v2082_v52 = vpop.f32.mrb[21].mxu0 }
 0x157   :  { %v2083_v53 = vadd.f32 %v2082_v52, %v2081_v51  ;;  %v2084_v55 = vpop.f32.mrb[22].mxu0 }
 0x158   :  { %v2085_v3 = vpop.f32.mrb[23].mxu0  ;;  %v599_v4 = vpop.f32.mrb[20].mxu1 }
 0x159   :  { %v2086_v5 = vadd.f32 %v2085_v3, %v2084_v55  ;;  %v512_v6 = vadd.f32 %v2083_v53, %v2836_v1  ;;  %v601_v7 = vpop.f32.mrb[21].mxu1 }
 0x15a   :  { %v602_v8 = vpop.f32.mrb[22].mxu1  ;;  %v616_v7 = vmax.f32 %v2849_v17, 0.0  ;;  %v617_v17 = vmax.f32 %v2852_v57, 0.0 }
 0x15b   :  { %v2870_v9 = vadd.f32 %v599_v4, %v512_v6  ;;  %v515_v10 = vadd.f32 %v2086_v5, %v2836_v1  ;;  %v604_v11 = vpop.f32.mrb[23].mxu1 }
 0x15d   :  { %v2873_v12 = vadd.f32 %v602_v8, %v515_v10  ;;  %v2087_v13 = vpop.f32.mrb[24].mxu0 }
 0x15e   :  { %v2088_v15 = vpop.f32.mrb[25].mxu0 }
 0x15f   :  { %v2089_v16 = vadd.f32 %v2088_v15, %v2087_v13  ;;  %v2090_v18 = vpop.f32.mrb[26].mxu0 }
 0x160   :  { %v2091_v19 = vpop.f32.mrb[27].mxu0  ;;  %v607_v20 = vpop.f32.mrb[24].mxu1 }
 0x161   :  { %v520_v21 = vadd.f32 %v2089_v16, %v2836_v1  ;;  %v609_v22 = vpop.f32.mrb[25].mxu1 }
 0x162   :  { %v610_v24 = vpop.f32.mrb[26].mxu1 }
 0x163   :  { %v2876_v0 = vadd.f32 %v607_v20, %v520_v21  ;;  %v611_v26 = vpop.f32.mrb[27].mxu1 }
 0x165   :  { %v2109_v28 = vpop.f32.mrb[28].mxu0 }
 0x166   :  { %v2110_v56 = vpop.f32.mrb[29].mxu0 }
 0x167   :  { %v2111_v58 = vadd.f32 %v2110_v56, %v2109_v28  ;;  %v2112_v59 = vpop.f32.mrb[30].mxu0 }
 0x168   :  { %v2113_v61 = vpop.f32.mrb[31].mxu0  ;;  %v923_v62 = vpop.f32.mrb[28].mxu1 }
 0x169   :  { %v2114_v63 = vadd.f32 %v2113_v61, %v2112_v59  ;;  %v836_v23 = vadd.f32 %v2111_v58, %v2836_v1  ;;  %v925_v25 = vpop.f32.mrb[29].mxu1  ;;  %v618_v61 = vmax.f32 %v2855_v60, 0.0  ;;  %v619_v60 = vmax.f32 %v2858_v33, 0.0 }
 0x16a   :  { %v926_v27 = vpop.f32.mrb[30].mxu1 }
 0x16b   :  { %v924_v29 = vadd.f32 %v923_v62, %v836_v23  ;;  %v839_v30 = vadd.f32 %v2114_v63, %v2836_v1  ;;  %v928_v31 = vpop.f32.mrb[31].mxu1 }
 0x16d   :  { %v977_v34 = vmax.f32 %v924_v29, 0.0  ;;  %v927_v35 = vadd.f32 %v926_v27, %v839_v30  ;;  %v2115_v37 = vpop.f32.mrb[32].mxu0 }
 0x16e   :  { %v2116_v38 = vpop.f32.mrb[33].mxu0 }
 0x16f   :  { %v2882_v40 = vmax.f32 %v613_v32, %v977_v34  ;;  %v978_v41 = vmax.f32 %v927_v35, 0.0  ;;  %v2117_v42 = vadd.f32 %v2116_v38, %v2115_v37  ;;  %v2118_v43 = vpop.f32.mrb[34].mxu0 }
 0x170   :  { %v2119_v44 = vpop.f32.mrb[35].mxu0  ;;  %v931_v45 = vpop.f32.mrb[32].mxu1 }
 0x171   :  { %v2884_v46 = vmax.f32 %v614_v39, %v978_v41  ;;  %v2120_v48 = vadd.f32 %v2119_v44, %v2118_v43  ;;  %v844_v49 = vadd.f32 %v2117_v42, %v2836_v1  ;;  %v933_v51 = vpop.f32.mrb[33].mxu1  ;;  %v620_v44 = vmax.f32 %v2861_v36, 0.0 }
 0x172   :  { %v934_v54 = vpop.f32.mrb[34].mxu1  ;;  %v621_v36 = vmax.f32 %v2864_v47, 0.0 }
 0x173   :  { %v932_v52 = vadd.f32 %v931_v45, %v844_v49  ;;  %v847_v53 = vadd.f32 %v2120_v48, %v2836_v1  ;;  %v936_v55 = vpop.f32.mrb[35].mxu1 }
 0x175   :  { %v979_v3 = vmax.f32 %v932_v52, 0.0  ;;  %v935_v4 = vadd.f32 %v934_v54, %v847_v53  ;;  %v2121_v5 = vpop.f32.mrb[36].mxu0 }
 0x176   :  { %v2122_v6 = vpop.f32.mrb[37].mxu0 }
 0x177   :  { %v2890_v8 = vmax.f32 %v615_v2, %v979_v3  ;;  %v980_v10 = vmax.f32 %v935_v4, 0.0  ;;  %v2123_v11 = vadd.f32 %v2122_v6, %v2121_v5  ;;  %v2124_v13 = vpop.f32.mrb[38].mxu0 }
 0x178   :  { %v2125_v15 = vpop.f32.mrb[39].mxu0  ;;  %v939_v16 = vpop.f32.mrb[36].mxu1 }
 0x179   :  { %v2892_v18 = vmax.f32 %v616_v7, %v980_v10  ;;  %v2126_v19 = vadd.f32 %v2125_v15, %v2124_v13  ;;  %v852_v20 = vadd.f32 %v2123_v11, %v2836_v1  ;;  %v941_v21 = vpop.f32.mrb[37].mxu1  ;;  %v622_v15 = vmax.f32 %v2867_v50, 0.0 }
 0x17a   :  { %v942_v14 = vpop.f32.mrb[38].mxu1  ;;  %v623_v50 = vmax.f32 %v2870_v9, 0.0 }
 0x17b   :  { %v940_v22 = vadd.f32 %v939_v16, %v852_v20  ;;  %v855_v24 = vadd.f32 %v2126_v19, %v2836_v1  ;;  %v944_v26 = vpop.f32.mrb[39].mxu1 }
 0x17d   :  { %v981_v28 = vmax.f32 %v940_v22, 0.0  ;;  %v943_v56 = vadd.f32 %v942_v14, %v855_v24  ;;  %v2127_v58 = vpop.f32.mrb[40].mxu0 }
 0x17e   :  { %v2128_v59 = vpop.f32.mrb[41].mxu0 }
 0x17f   :  { %v2898_v62 = vmax.f32 %v617_v17, %v981_v28  ;;  %v982_v63 = vmax.f32 %v943_v56, 0.0  ;;  %v2129_v23 = vadd.f32 %v2128_v59, %v2127_v58  ;;  %v2130_v25 = vpop.f32.mrb[42].mxu0 }
 0x180   :  { %v2131_v27 = vpop.f32.mrb[43].mxu0  ;;  %v947_v29 = vpop.f32.mrb[40].mxu1 }
 0x181   :  { %v2900_v30 = vmax.f32 %v618_v61, %v982_v63  ;;  %v2132_v31 = vadd.f32 %v2131_v27, %v2130_v25  ;;  %v860_v32 = vadd.f32 %v2129_v23, %v2836_v1  ;;  %v949_v34 = vpop.f32.mrb[41].mxu1  ;;  %v624_v27 = vmax.f32 %v2873_v12, 0.0 }
 0x182   :  { %v950_v57 = vpop.f32.mrb[42].mxu1 }
 0x183   :  { %v948_v35 = vadd.f32 %v947_v29, %v860_v32  ;;  %v863_v37 = vadd.f32 %v2132_v31, %v2836_v1  ;;  %v952_v38 = vpop.f32.mrb[43].mxu1 }
 0x185   :  { %v983_v39 = vmax.f32 %v948_v35, 0.0  ;;  %v951_v41 = vadd.f32 %v950_v57, %v863_v37  ;;  %v2133_v42 = vpop.f32.mrb[44].mxu0 }
 0x186   :  { %v2134_v43 = vpop.f32.mrb[45].mxu0 }
 0x187   :  { %v2906_v45 = vmax.f32 %v619_v60, %v983_v39  ;;  %v984_v48 = vmax.f32 %v951_v41, 0.0  ;;  %v2135_v49 = vadd.f32 %v2134_v43, %v2133_v42  ;;  %v2136_v51 = vpop.f32.mrb[46].mxu0  ;;  %v625_v42 = vmax.f32 %v2876_v0, 0.0 }
 0x188   :  { %v2137_v54 = vpop.f32.mrb[47].mxu0  ;;  %v955_v52 = vpop.f32.mrb[44].mxu1 }
 0x189   :  { %v2908_v53 = vmax.f32 %v620_v44, %v984_v48  ;;  %v2138_v55 = vadd.f32 %v2137_v54, %v2136_v51  ;;  %v868_v2 = vadd.f32 %v2135_v49, %v2836_v1  ;;  %v957_v3 = vpop.f32.mrb[45].mxu1 }
 0x18a   :  { %v958_v33 = vpop.f32.mrb[46].mxu1 }
 0x18b   :  { %v956_v4 = vadd.f32 %v955_v52, %v868_v2  ;;  %v871_v5 = vadd.f32 %v2138_v55, %v2836_v1  ;;  %v960_v6 = vpop.f32.mrb[47].mxu1 }
 0x18d   :  { %v985_v7 = vmax.f32 %v956_v4, 0.0  ;;  %v959_v10 = vadd.f32 %v958_v33, %v871_v5  ;;  %v2139_v11 = vpop.f32.mrb[48].mxu0 }
 0x18e   :  { %v2140_v13 = vpop.f32.mrb[49].mxu0 }
 0x18f   :  { %v2914_v16 = vmax.f32 %v621_v36, %v985_v7  ;;  %v986_v19 = vmax.f32 %v959_v10, 0.0  ;;  %v2141_v20 = vadd.f32 %v2140_v13, %v2139_v11  ;;  %v2142_v21 = vpop.f32.mrb[50].mxu0 }
 0x190   :  { %v2143_v14 = vpop.f32.mrb[51].mxu0  ;;  %v963_v22 = vpop.f32.mrb[48].mxu1 }
 0x191   :  { %v2916_v24 = vmax.f32 %v622_v15, %v986_v19  ;;  %v2144_v26 = vadd.f32 %v2143_v14, %v2142_v21  ;;  %v876_v17 = vadd.f32 %v2141_v20, %v2836_v1  ;;  %v965_v28 = vpop.f32.mrb[49].mxu1 }
 0x192   :  { %v966_v47 = vpop.f32.mrb[50].mxu1 }
 0x193   :  { %v964_v56 = vadd.f32 %v963_v22, %v876_v17  ;;  %v879_v58 = vadd.f32 %v2144_v26, %v2836_v1  ;;  %v968_v59 = vpop.f32.mrb[51].mxu1 }
 0x195   :  { %v987_v61 = vmax.f32 %v964_v56, 0.0  ;;  %v967_v63 = vadd.f32 %v966_v47, %v879_v58  ;;  %v2145_v23 = vpop.f32.mrb[52].mxu0 }
 0x196   :  { %v2146_v25 = vpop.f32.mrb[53].mxu0 }
 0x197   :  { %v2922_v29 = vmax.f32 %v623_v50, %v987_v61  ;;  %v988_v31 = vmax.f32 %v967_v63, 0.0  ;;  %v2147_v32 = vadd.f32 %v2146_v25, %v2145_v23  ;;  %v2148_v34 = vpop.f32.mrb[54].mxu0 }
 0x198   :  { %v2149_v57 = vpop.f32.mrb[55].mxu0  ;;  %v971_v35 = vpop.f32.mrb[52].mxu1 }
 0x199   :  { %v2924_v37 = vmax.f32 %v624_v27, %v988_v31  ;;  %v884_v38 = vadd.f32 %v2147_v32, %v2836_v1  ;;  %v973_v60 = vpop.f32.mrb[53].mxu1 }
 0x19a   :  { %v974_v39 = vpop.f32.mrb[54].mxu1 }
 0x19b   :  { %v972_v9 = vadd.f32 %v971_v35, %v884_v38  ;;  %v975_v41 = vpop.f32.mrb[55].mxu1 }
 0x19d   :  { %v989_v43 = vmax.f32 %v972_v9, 0.0  ;;  %v2167_v44 = vpop.f32.mrb[56].mxu0 }
 0x19e   :  { %v2168_v12 = vpop.f32.mrb[57].mxu0 }
 0x19f   :  { %v2928_v48 = vmax.f32 %v625_v42, %v989_v43  ;;  %v2169_v49 = vadd.f32 %v2168_v12, %v2167_v44  ;;  %v2170_v51 = vpop.f32.mrb[58].mxu0 }
 0x1a0   :  { %v2171_v54 = vpop.f32.mrb[59].mxu0  ;;  %v1300_v52 = vpop.f32.mrb[56].mxu1 }
 0x1a1   :  { %v2172_v55 = vadd.f32 %v2171_v54, %v2170_v51  ;;  %v1213_v2 = vadd.f32 %v2169_v49, %v2836_v1  ;;  %v1302_v3 = vpop.f32.mrb[57].mxu1 }
 0x1a2   :  { %v1303_v33 = vpop.f32.mrb[58].mxu1 }
 0x1a3   :  { %v2931_v4 = vadd.f32 %v1300_v52, %v1213_v2  ;;  %v1216_v5 = vadd.f32 %v2172_v55, %v2836_v1  ;;  %v1305_v6 = vpop.f32.mrb[59].mxu1 }
 0x1a5   :  { %v2934_v0 = vadd.f32 %v1303_v33, %v1216_v5  ;;  %v2173_v36 = vpop.f32.mrb[60].mxu0 }
 0x1a6   :  { %v2174_v7 = vpop.f32.mrb[61].mxu0 }
 0x1a7   :  { %v2175_v10 = vadd.f32 %v2174_v7, %v2173_v36  ;;  %v2176_v11 = vpop.f32.mrb[62].mxu0 }
 0x1a8   :  { %v2177_v13 = vpop.f32.mrb[63].mxu0  ;;  %v1308_v15 = vpop.f32.mrb[60].mxu1 }
 0x1a9   :  { %v2178_v19 = vadd.f32 %v2177_v13, %v2176_v11  ;;  %v1221_v20 = vadd.f32 %v2175_v10, %v2836_v1  ;;  %v1310_v21 = vpop.f32.mrb[61].mxu1 }
 0x1aa   :  { %v1311_v14 = vpop.f32.mrb[62].mxu1 }
 0x1ab   :  { %v2937_v22 = vadd.f32 %v1308_v15, %v1221_v20  ;;  %v1224_v26 = vadd.f32 %v2178_v19, %v2836_v1  ;;  %v1313_v17 = vpop.f32.mrb[63].mxu1 }
 0x1ad   :  { %v2940_v28 = vadd.f32 %v1311_v14, %v1224_v26  ;;  %v2179_v47 = vpop.f32.mrb[64].mxu0 }
 0x1ae   :  { %v2180_v56 = vpop.f32.mrb[65].mxu0 }
 0x1af   :  { %v2181_v58 = vadd.f32 %v2180_v56, %v2179_v47  ;;  %v2182_v59 = vpop.f32.mrb[66].mxu0 }
 0x1b0   :  { %v2183_v50 = vpop.f32.mrb[67].mxu0  ;;  %v1316_v61 = vpop.f32.mrb[64].mxu1 }
 0x1b1   :  { %v2184_v63 = vadd.f32 %v2183_v50, %v2182_v59  ;;  %v1229_v23 = vadd.f32 %v2181_v58, %v2836_v1  ;;  %v1318_v25 = vpop.f32.mrb[65].mxu1 }
 0x1b2   :  { %v1319_v27 = vpop.f32.mrb[66].mxu1 }
 0x1b3   :  { %v2943_v31 = vadd.f32 %v1316_v61, %v1229_v23  ;;  %v1232_v32 = vadd.f32 %v2184_v63, %v2836_v1  ;;  %v1321_v34 = vpop.f32.mrb[67].mxu1 }
 0x1b5   :  { %v2946_v57 = vadd.f32 %v1319_v27, %v1232_v32  ;;  %v2185_v35 = vpop.f32.mrb[68].mxu0 }
 0x1b6   :  { %v2186_v38 = vpop.f32.mrb[69].mxu0 }
 0x1b7   :  { %v2187_v60 = vadd.f32 %v2186_v38, %v2185_v35  ;;  %v2188_v39 = vpop.f32.mrb[70].mxu0 }
 0x1b8   :  { %v2189_v9 = vpop.f32.mrb[71].mxu0  ;;  %v1324_v41 = vpop.f32.mrb[68].mxu1 }
 0x1b9   :  { %v2190_v42 = vadd.f32 %v2189_v9, %v2188_v39  ;;  %v1237_v43 = vadd.f32 %v2187_v60, %v2836_v1  ;;  %v1326_v44 = vpop.f32.mrb[69].mxu1 }
 0x1ba   :  { %v1327_v12 = vpop.f32.mrb[70].mxu1 }
 0x1bb   :  { %v2949_v49 = vadd.f32 %v1324_v41, %v1237_v43  ;;  %v1240_v51 = vadd.f32 %v2190_v42, %v2836_v1  ;;  %v1329_v54 = vpop.f32.mrb[71].mxu1 }
 0x1bd   :  { %v2952_v52 = vadd.f32 %v1327_v12, %v1240_v51  ;;  %v2191_v55 = vpop.f32.mrb[72].mxu0 }
 0x1be   :  { %v2192_v2 = vpop.f32.mrb[73].mxu0 }
 0x1bf   :  { %v2193_v3 = vadd.f32 %v2192_v2, %v2191_v55  ;;  %v2194_v33 = vpop.f32.mrb[74].mxu0 }
 0x1c0   :  { %v2195_v5 = vpop.f32.mrb[75].mxu0  ;;  %v1332_v6 = vpop.f32.mrb[72].mxu1 }
 0x1c1   :  { %v2196_v36 = vadd.f32 %v2195_v5, %v2194_v33  ;;  %v1245_v7 = vadd.f32 %v2193_v3, %v2836_v1  ;;  %v1334_v10 = vpop.f32.mrb[73].mxu1 }
 0x1c2   :  { %v1335_v11 = vpop.f32.mrb[74].mxu1 }
 0x1c3   :  { %v2955_v13 = vadd.f32 %v1332_v6, %v1245_v7  ;;  %v1248_v15 = vadd.f32 %v2196_v36, %v2836_v1  ;;  %v1337_v19 = vpop.f32.mrb[75].mxu1 }
 0x1c5   :  { %v2958_v20 = vadd.f32 %v1335_v11, %v1248_v15  ;;  %v2197_v21 = vpop.f32.mrb[76].mxu0  ;;  %v1354_v15 = vmax.f32 %v2931_v4, 0.0 }
 0x1c6   :  { %v2198_v14 = vpop.f32.mrb[77].mxu0 }
 0x1c7   :  { %v2199_v26 = vadd.f32 %v2198_v14, %v2197_v21  ;;  %v2200_v17 = vpop.f32.mrb[78].mxu0 }
 0x1c8   :  { %v2201_v47 = vpop.f32.mrb[79].mxu0  ;;  %v1340_v56 = vpop.f32.mrb[76].mxu1 }
 0x1c9   :  { %v2202_v58 = vadd.f32 %v2201_v47, %v2200_v17  ;;  %v1253_v59 = vadd.f32 %v2199_v26, %v2836_v1  ;;  %v1342_v50 = vpop.f32.mrb[77].mxu1  ;;  %v1355_v17 = vmax.f32 %v2934_v0, 0.0 }
 0x1ca   :  { %v1343_v61 = vpop.f32.mrb[78].mxu1 }
 0x1cb   :  { %v2961_v63 = vadd.f32 %v1340_v56, %v1253_v59  ;;  %v1256_v23 = vadd.f32 %v2202_v58, %v2836_v1  ;;  %v1345_v25 = vpop.f32.mrb[79].mxu1 }
 0x1cd   :  { %v2964_v27 = vadd.f32 %v1343_v61, %v1256_v23  ;;  %v2203_v32 = vpop.f32.mrb[80].mxu0 }
 0x1ce   :  { %v2204_v34 = vpop.f32.mrb[81].mxu0 }
 0x1cf   :  { %v2205_v35 = vadd.f32 %v2204_v34, %v2203_v32  ;;  %v2206_v38 = vpop.f32.mrb[82].mxu0 }
 0x1d0   :  { %v2207_v60 = vpop.f32.mrb[83].mxu0  ;;  %v1348_v39 = vpop.f32.mrb[80].mxu1 }
 0x1d1   :  { %v1261_v9 = vadd.f32 %v2205_v35, %v2836_v1  ;;  %v1350_v41 = vpop.f32.mrb[81].mxu1 }
 0x1d2   :  { %v1351_v42 = vpop.f32.mrb[82].mxu1  ;;  %v1356_v41 = vmax.f32 %v2937_v22, 0.0 }
 0x1d3   :  { %v2967_v43 = vadd.f32 %v1348_v39, %v1261_v9  ;;  %v1352_v44 = vpop.f32.mrb[83].mxu1 }
 0x1d5   :  { %v2225_v12 = vpop.f32.mrb[84].mxu0 }
 0x1d6   :  { %v2226_v51 = vpop.f32.mrb[85].mxu0 }
 0x1d7   :  { %v2227_v54 = vadd.f32 %v2226_v51, %v2225_v12  ;;  %v2228_v55 = vpop.f32.mrb[86].mxu0 }
 0x1d8   :  { %v2229_v2 = vpop.f32.mrb[87].mxu0  ;;  %v1664_v3 = vpop.f32.mrb[84].mxu1 }
 0x1d9   :  { %v2230_v33 = vadd.f32 %v2229_v2, %v2228_v55  ;;  %v1577_v5 = vadd.f32 %v2227_v54, %v2836_v1  ;;  %v1666_v6 = vpop.f32.mrb[85].mxu1  ;;  %v1357_v54 = vmax.f32 %v2940_v28, 0.0 }
 0x1da   :  { %v1667_v36 = vpop.f32.mrb[86].mxu1 }
 0x1db   :  { %v1665_v7 = vadd.f32 %v1664_v3, %v1577_v5  ;;  %v1580_v10 = vadd.f32 %v2230_v33, %v2836_v1  ;;  %v1669_v11 = vpop.f32.mrb[87].mxu1 }
 0x1dd   :  { %v1718_v19 = vmax.f32 %v1665_v7, 0.0  ;;  %v1668_v21 = vadd.f32 %v1667_v36, %v1580_v10  ;;  %v2231_v14 = vpop.f32.mrb[88].mxu0 }
 0x1de   :  { %v2232_v26 = vpop.f32.mrb[89].mxu0 }
 0x1df   :  { %v1731_v47 = vmax.f32 %v1354_v15, %v1718_v19  ;;  %v1719_v56 = vmax.f32 %v1668_v21, 0.0  ;;  %v2233_v58 = vadd.f32 %v2232_v26, %v2231_v14  ;;  %v2234_v59 = vpop.f32.mrb[90].mxu0  ;;  %v1358_v26 = vmax.f32 %v2943_v31, 0.0 }
 0x1e0   :  { %v2235_v50 = vpop.f32.mrb[91].mxu0  ;;  %v1672_v61 = vpop.f32.mrb[88].mxu1 }
 0x1e1   :  { %v1744_v23 = vmax.f32 %v2882_v40, %v1731_v47  ;;  %v1732_v25 = vmax.f32 %v1355_v17, %v1719_v56  ;;  %v2236_v32 = vadd.f32 %v2235_v50, %v2234_v59  ;;  %v1585_v34 = vadd.f32 %v2233_v58, %v2836_v1  ;;  %v1674_v35 = vpop.f32.mrb[89].mxu1 }
 0x1e2   :  { %v1675_v4 = vpop.f32.mrb[90].mxu1  ;;  %v1359_v59 = vmax.f32 %v2946_v57, 0.0 }
 0x1e3   :  { %v2022_v38 = vpack.c.bf16 %v1744_v23, %v1744_v23  ;;  %v1745_v60 = vmax.f32 %v2884_v46, %v1732_v25  ;;  %v1673_v39 = vadd.f32 %v1672_v61, %v1585_v34  ;;  %v1588_v0 = vadd.f32 %v2236_v32, %v2836_v1  ;;  %v1677_v9 = vpop.f32.mrb[91].mxu1 }
 0x1e5   :  { %1811 = vst.msk [vmem:[#allocation8] sm:$0xf] %vm1810_vm1, %v2022_v38  ;;  %v2023_v42 = vpack.c.bf16 %v1745_v60, %v1745_v60  ;;  %v1720_v40 = vmax.f32 %v1673_v39, 0.0  ;;  %v1676_v44 = vadd.f32 %v1675_v4, %v1588_v0  ;;  %v2237_v12 = vpop.f32.mrb[92].mxu0 }
 0x1e6   :  { %v2238_v51 = vpop.f32.mrb[93].mxu0 }
 0x1e7   :  { %1812 = vst.msk [vmem:[#allocation8 + $0x4] sm:$0xf] %vm1810_vm1, %v2023_v42  ;;  %v1733_v55 = vmax.f32 %v1356_v41, %v1720_v40  ;;  %v1721_v2 = vmax.f32 %v1676_v44, 0.0  ;;  %v2239_v46 = vadd.f32 %v2238_v51, %v2237_v12  ;;  %v2240_v3 = vpop.f32.mrb[94].mxu0  ;;  %v1360_v42 = vmax.f32 %v2949_v49, 0.0 }
 0x1e8   :  { %v2241_v33 = vpop.f32.mrb[95].mxu0  ;;  %v1680_v5 = vpop.f32.mrb[92].mxu1 }
 0x1e9   :  { %v1746_v6 = vmax.f32 %v2890_v8, %v1733_v55  ;;  %v1734_v22 = vmax.f32 %v1357_v54, %v1721_v2  ;;  %v2242_v36 = vadd.f32 %v2241_v33, %v2240_v3  ;;  %v1593_v7 = vadd.f32 %v2239_v46, %v2836_v1  ;;  %v1682_v10 = vpop.f32.mrb[93].mxu1 }
 0x1ea   :  { %v1683_v11 = vpop.f32.mrb[94].mxu1  ;;  %v1361_v54 = vmax.f32 %v2952_v52, 0.0 }
 0x1eb   :  { %v2024_v15 = vpack.c.bf16 %v1746_v6, %v1746_v6  ;;  %v1747_v19 = vmax.f32 %v2892_v18, %v1734_v22  ;;  %v1681_v28 = vadd.f32 %v1680_v5, %v1593_v7  ;;  %v1596_v21 = vadd.f32 %v2242_v36, %v2836_v1  ;;  %v1685_v14 = vpop.f32.mrb[95].mxu1 }
 0x1ed   :  { %1813 = vst.msk [vmem:[#allocation8 + $0x8] sm:$0xf] %vm1810_vm1, %v2024_v15  ;;  %v2025_v17 = vpack.c.bf16 %v1747_v19, %v1747_v19  ;;  %v1722_v47 = vmax.f32 %v1681_v28, 0.0  ;;  %v1684_v8 = vadd.f32 %v1683_v11, %v1596_v21  ;;  %v2243_v56 = vpop.f32.mrb[96].mxu0  ;;  %v1362_v28 = vmax.f32 %v2955_v13, 0.0 }
 0x1ee   :  { %v2244_v58 = vpop.f32.mrb[97].mxu0 }
 0x1ef   :  { %1814 = vst.msk [vmem:[#allocation8 + $0xc] sm:$0xf] %vm1810_vm1, %v2025_v17  ;;  %v1735_v50 = vmax.f32 %v1358_v26, %v1722_v47  ;;  %v1723_v61 = vmax.f32 %v1684_v8, 0.0  ;;  %v2245_v18 = vadd.f32 %v2244_v58, %v2243_v56  ;;  %v2246_v23 = vpop.f32.mrb[98].mxu0  ;;  %v1363_v47 = vmax.f32 %v2958_v20, 0.0 }
 0x1f0   :  { %v2247_v25 = vpop.f32.mrb[99].mxu0  ;;  %v1688_v32 = vpop.f32.mrb[96].mxu1 }
 0x1f1   :  { %v1748_v34 = vmax.f32 %v2898_v62, %v1735_v50  ;;  %v1736_v31 = vmax.f32 %v1359_v59, %v1723_v61  ;;  %v2248_v35 = vadd.f32 %v2247_v25, %v2246_v23  ;;  %v1601_v4 = vadd.f32 %v2245_v18, %v2836_v1  ;;  %v1690_v38 = vpop.f32.mrb[97].mxu1 }
 0x1f2   :  { %v1691_v60 = vpop.f32.mrb[98].mxu1  ;;  %v1364_v38 = vmax.f32 %v2961_v63, 0.0 }
 0x1f3   :  { %v2026_v39 = vpack.c.bf16 %v1748_v34, %v1748_v34  ;;  %v1749_v0 = vmax.f32 %v2900_v30, %v1736_v31  ;;  %v1689_v57 = vadd.f32 %v1688_v32, %v1601_v4  ;;  %v1604_v9 = vadd.f32 %v2248_v35, %v2836_v1  ;;  %v1693_v41 = vpop.f32.mrb[99].mxu1 }
 0x1f5   :  { %1815 = vst.msk [vmem:[#allocation8 + $0x10] sm:$0xf] %vm1810_vm1, %v2026_v39  ;;  %v2027_v40 = vpack.c.bf16 %v1749_v0, %v1749_v0  ;;  %v1724_v44 = vmax.f32 %v1689_v57, 0.0  ;;  %v1692_v62 = vadd.f32 %v1691_v60, %v1604_v9  ;;  %v2249_v12 = vpop.f32.mrb[100].mxu0  ;;  %v1365_v9 = vmax.f32 %v2964_v27, 0.0 }
 0x1f6   :  { %v2250_v51 = vpop.f32.mrb[101].mxu0 }
 0x1f7   :  { %1816 = vst.msk [vmem:[#allocation8 + $0x14] sm:$0xf] %vm1810_vm1, %v2027_v40  ;;  %v1737_v55 = vmax.f32 %v1360_v42, %v1724_v44  ;;  %v1725_v2 = vmax.f32 %v1692_v62, 0.0  ;;  %v2251_v30 = vadd.f32 %v2250_v51, %v2249_v12  ;;  %v2252_v46 = vpop.f32.mrb[102].mxu0 }
 0x1f8   :  { %v2253_v3 = vpop.f32.mrb[103].mxu0  ;;  %v1696_v33 = vpop.f32.mrb[100].mxu1 }
 0x1f9   :  { %v1750_v5 = vmax.f32 %v2906_v45, %v1737_v55  ;;  %v1738_v49 = vmax.f32 %v1361_v54, %v1725_v2  ;;  %v2254_v6 = vadd.f32 %v2253_v3, %v2252_v46  ;;  %v1609_v22 = vadd.f32 %v2251_v30, %v2836_v1  ;;  %v1698_v36 = vpop.f32.mrb[101].mxu1 }
 0x1fa   :  { %v1699_v7 = vpop.f32.mrb[102].mxu1  ;;  %v1366_v3 = vmax.f32 %v2967_v43, 0.0 }
 0x1fb   :  { %v2028_v10 = vpack.c.bf16 %v1750_v5, %v1750_v5  ;;  %v1751_v11 = vmax.f32 %v2908_v53, %v1738_v49  ;;  %v1697_v52 = vadd.f32 %v1696_v33, %v1609_v22  ;;  %v1612_v15 = vadd.f32 %v2254_v6, %v2836_v1  ;;  %v1701_v19 = vpop.f32.mrb[103].mxu1 }
 0x1fd   :  { %1817 = vst.msk [vmem:[#allocation8 + $0x18] sm:$0xf] %vm1810_vm1, %v2028_v10  ;;  %v2029_v21 = vpack.c.bf16 %v1751_v11, %v1751_v11  ;;  %v1726_v14 = vmax.f32 %v1697_v52, 0.0  ;;  %v1700_v45 = vadd.f32 %v1699_v7, %v1612_v15  ;;  %v2255_v26 = vpop.f32.mrb[104].mxu0 }
 0x1fe   :  { %v2256_v17 = vpop.f32.mrb[105].mxu0 }
 0x1ff   :  { %1818 = vst.msk [vmem:[#allocation8 + $0x1c] sm:$0xf] %vm1810_vm1, %v2029_v21  ;;  %v1739_v8 = vmax.f32 %v1362_v28, %v1726_v14  ;;  %v1727_v56 = vmax.f32 %v1700_v45, 0.0  ;;  %v2257_v53 = vadd.f32 %v2256_v17, %v2255_v26  ;;  %v2258_v58 = vpop.f32.mrb[106].mxu0 }
 0x200   :  { %v2259_v59 = vpop.f32.mrb[107].mxu0  ;;  %v1704_v50 = vpop.f32.mrb[104].mxu1 }
 0x201   :  { %v1752_v61 = vmax.f32 %v2914_v16, %v1739_v8  ;;  %v1740_v13 = vmax.f32 %v1363_v47, %v1727_v56  ;;  %v2260_v18 = vadd.f32 %v2259_v59, %v2258_v58  ;;  %v1617_v23 = vadd.f32 %v2257_v53, %v2836_v1  ;;  %v1706_v25 = vpop.f32.mrb[105].mxu1 }
 0x202   :  { %v1707_v32 = vpop.f32.mrb[106].mxu1 }
 0x203   :  { %v2030_v34 = vpack.c.bf16 %v1752_v61, %v1752_v61  ;;  %v1753_v31 = vmax.f32 %v2916_v24, %v1740_v13  ;;  %v1705_v20 = vadd.f32 %v1704_v50, %v1617_v23  ;;  %v1620_v35 = vadd.f32 %v2260_v18, %v2836_v1  ;;  %v1709_v4 = vpop.f32.mrb[107].mxu1 }
 0x205   :  { %1819 = vst.msk [vmem:[#allocation8 + $0x20] sm:$0xf] %vm1810_vm1, %v2030_v34  ;;  %v2031_v60 = vpack.c.bf16 %v1753_v31, %v1753_v31  ;;  %v1728_v39 = vmax.f32 %v1705_v20, 0.0  ;;  %v1708_v16 = vadd.f32 %v1707_v32, %v1620_v35  ;;  %v2261_v0 = vpop.f32.mrb[108].mxu0 }
 0x206   :  { %v2262_v57 = vpop.f32.mrb[109].mxu0 }
 0x207   :  { %1820 = vst.msk [vmem:[#allocation8 + $0x24] sm:$0xf] %vm1810_vm1, %v2031_v60  ;;  %v1741_v41 = vmax.f32 %v1364_v38, %v1728_v39  ;;  %v1729_v42 = vmax.f32 %v1708_v16, 0.0  ;;  %v2263_v24 = vadd.f32 %v2262_v57, %v2261_v0  ;;  %v2264_v40 = vpop.f32.mrb[110].mxu0 }
 0x208   :  { %v2265_v44 = vpop.f32.mrb[111].mxu0  ;;  %v1712_v62 = vpop.f32.mrb[108].mxu1 }
 0x209   :  { %v1754_v12 = vmax.f32 %v2922_v29, %v1741_v41  ;;  %v1742_v63 = vmax.f32 %v1365_v9, %v1729_v42  ;;  %v1625_v51 = vadd.f32 %v2263_v24, %v2836_v1  ;;  %v1714_v54 = vpop.f32.mrb[109].mxu1 }
 0x20a   :  { %v1715_v55 = vpop.f32.mrb[110].mxu1 }
 0x20b   :  { %v2032_v2 = vpack.c.bf16 %v1754_v12, %v1754_v12  ;;  %v1755_v30 = vmax.f32 %v2924_v37, %v1742_v63  ;;  %v1713_v46 = vadd.f32 %v1712_v62, %v1625_v51  ;;  %v1716_v27 = vpop.f32.mrb[111].mxu1 }
 0x20d   :  { %1821 = vst.msk [vmem:[#allocation8 + $0x28] sm:$0xf] %vm1810_vm1, %v2032_v2  ;;  %v2033_v33 = vpack.c.bf16 %v1755_v30, %v1755_v30  ;;  %v1730_v5 = vmax.f32 %v1713_v46, 0.0 }
 0x20f   :  { %1822 = vst.msk [vmem:[#allocation8 + $0x2c] sm:$0xf] %vm1810_vm1, %v2033_v33  ;;  %v1743_v49 = vmax.f32 %v1366_v3, %v1730_v5 }
 0x211   :  { %v1756_v1 = vmax.f32 %v2928_v48, %v1743_v49 }
 0x213   :  { %v2034_v29 = vpack.c.bf16 %v1756_v1, %v1756_v1 }
 0x215   :  { %1824 = vst.msk [vmem:[#allocation8 + $0x30] sm:$0x1] %vm1823_vm2, %v2034_v29 }
 0x216   :  { %2538 = shalt.err (!%p2535_p0)
}
 0x217   :  { %s2539_s30 = scalar_lea.hbm %s3038_s3, 832 }
 0x218   :  { %p2540_p1 = scmp.ne.s32.totalorder %s3038_s3, %s2539_s30  ;;  %p2543_p2 = scmp.lt.u32.totalorder %s2539_s30, %s3038_s3 }
 0x21a   :  { %p2545_p3 = pnand %p2543_p2, %p2540_p1 }
 0x21c   :  { %2548 = shalt.err (!%p2545_p3)
}
 0x21d   :  { %1836 = dma.vmem_to_hbm [thread:$0]  %s1831_s26, 832, %s3038_s3, [#allocation4], %s2556_s22, %s2556_s22, %s2557_s23  }
 0x21e   :  { %2553 = dma.done.wait [#allocation4], 832  }
 0x21f   :  { %2554 = vsyncadd [#allocation4], 4294966464 }
 0x220   :  { %1840 = vsyncpa [#allocation3], 1 }
 0x221   :  { %1841 = vsyncpa [#allocation6], 1 }
 0x222   :  { %1842 = vsyncpa [#allocation4], 1 }

// kernel: model_forward.5
= control target key start
LH: loop header
LB: loop body
LE: loop exit
PB: predicated region body
PF: predicated region fallthrough
CT: control target
= control target key end

     0   :  { %8 = vsyncpa [#allocation3], 0  ;;  %s1791_s0 = inlined_call_operand.hbm [shape: bf16[2,1568], index: 0, kind: input, shape index: {}]   ;;  %s1792_s1 = inlined_call_operand.hbm [shape: bf16[1568,10], index: 1, kind: input, shape index: {}]   ;;  %s1793_s2 = inlined_call_operand.hbm [shape: f32[1,10], index: 2, kind: input, shape index: {}]   ;;  %s1794_s3 = inlined_call_operand.hbm [shape: f32[2,10], index: 3, kind: output, shape index: {}]  }
   0x1   :  { %9 = vsyncpa [#allocation6], 0 }
   0x2   :  { %10 = vsyncpa [#allocation4], 0  ;;  %s1696_s12 = smov [#allocation5]   ;;  %s1602_s16 = scalar_lea.hbm %s1792_s1, 12544 }
   0x3   :  { %s26_s13 = sshll.u32 %s1696_s12, 4  ;;  %p1603_p0 = scmp.ne.s32.totalorder %s1792_s1, %s1602_s16  ;;  %s27_s13 = int_to_ptr.vmem [resolvable:$true] %s26_s13 }
   0x4   :  { %p1606_p1 = scmp.lt.u32.totalorder %s1602_s16, %s1792_s1 }
   0x6   :  { %p1608_p2 = pnand %p1606_p1, %p1603_p0 }
   0x8   :  { %1611 = shalt.err (!%p1608_p2)
}
   0x9   :  { %s1612_s21 = scalar_lea.vmem %s27_s13, 12544  ;;  %p1617_p4 = scmp.lt.s32.totalorder %s27_s13, %s27_s13 }
   0xa   :  { %p1613_p3 = scmp.ne.s32.totalorder %s27_s13, %s1612_s21  ;;  %p1618_p5 = scmp.lt.s32.totalorder %s1612_s21, %s1612_s21 }
   0xc   :  { %p1619_p6 = por %p1618_p5, %p1617_p4 }
   0xe   :  { %p1620_p7 = pnand %p1619_p6, %p1613_p3 }
  0x10   :  { %1623 = shalt.err (!%p1620_p7)
}
  0x11   :  { %s1697_s22 = smov 64   ;;  %s1698_s23 = smov 4  }
  0x12   :  { %32 = dma.hbm_to_vmem [thread:$0]  %s1792_s1, 12544, %s27_s13, [#allocation6], %s1697_s22, %s1697_s22, %s1698_s23  }
  0x13   :  { %s1699_s26 = smov [#allocation2]   ;;  %s1700_s28 = smov [#allocation7]  }
  0x14   :  { %s17_s27 = sshll.u32 %s1699_s26, 4  ;;  %s39_s29 = sshll.u32 %s1700_s28, 4  ;;  %s18_s27 = int_to_ptr.vmem [resolvable:$true] %s17_s27  ;;  %s40_s29 = int_to_ptr.vmem [resolvable:$true] %s39_s29 }
  0x15   :  { %s1624_s5 = scalar_lea.hbm %s1791_s0, 208 }
  0x16   :  { %p1625_p8 = scmp.ne.s32.totalorder %s1791_s0, %s1624_s5  ;;  %p1628_p9 = scmp.lt.u32.totalorder %s1624_s5, %s1791_s0 }
  0x18   :  { %p1630_p10 = pnand %p1628_p9, %p1625_p8 }
  0x1a   :  { %1633 = shalt.err (!%p1630_p10)
}
  0x1b   :  { %s1634_s1 = scalar_lea.vmem %s18_s27, 208  ;;  %s1638_s10 = scalar_lea.vmem %s18_s27, 224 }
  0x1c   :  { %p1635_p11 = scmp.ne.s32.totalorder %s18_s27, %s1634_s1  ;;  %p1639_p12 = scmp.lt.s32.totalorder %s18_s27, %s18_s27 }
  0x1d   :  { %p1640_p13 = scmp.lt.s32.totalorder %s1638_s10, %s1634_s1 }
  0x1f   :  { %p1641_p0 = por %p1640_p13, %p1639_p12 }
  0x21   :  { %p1642_p1 = pnand %p1641_p0, %p1635_p11 }
  0x23   :  { %1645 = shalt.err (!%p1642_p1)
}
  0x24   :  { %20 = dma.hbm_to_vmem [thread:$0]  %s1791_s0, 208, %s18_s27, [#allocation3]  }
  0x25   :  { %s1646_s15 = scalar_lea.hbm %s1793_s2, 16 }
  0x26   :  { %p1647_p2 = scmp.ne.s32.totalorder %s1793_s2, %s1646_s15  ;;  %p1650_p3 = scmp.lt.u32.totalorder %s1646_s15, %s1793_s2 }
  0x28   :  { %p1652_p4 = pnand %p1650_p3, %p1647_p2 }
  0x2a   :  { %1655 = shalt.err (!%p1652_p4)
}
  0x2b   :  { %s1656_s20 = scalar_lea.vmem %s40_s29, 16  ;;  %s1660_s21 = scalar_lea.vmem %s40_s29, 32 }
  0x2c   :  { %p1657_p5 = scmp.ne.s32.totalorder %s40_s29, %s1656_s20  ;;  %p1661_p6 = scmp.lt.s32.totalorder %s40_s29, %s40_s29 }
  0x2d   :  { %p1662_p7 = scmp.lt.s32.totalorder %s1660_s21, %s1656_s20 }
  0x2f   :  { %p1663_p8 = por %p1662_p7, %p1661_p6 }
  0x31   :  { %p1664_p9 = pnand %p1663_p8, %p1657_p5 }
  0x33   :  { %1667 = shalt.err (!%p1664_p9)
}
  0x34   :  { %42 = dma.hbm_to_vmem [thread:$0]  %s1793_s2, 16, %s40_s29, [#allocation6]  }
  0x35   :  { %1690 = dma.done.wait [#allocation3], 208  }
  0x36   :  { %1691 = vsyncadd [#allocation3], 4294967088 }
  0x37   :  { %1692 = dma.done.wait [#allocation6], 12560  }
  0x38   :  { %1693 = vsyncadd [#allocation6], 4294954736  ;;  %v1502_v0 = vld [vmem:[#allocation5 + $0x40] sm:$0xff]   ;;  %v1506_v4 = vld [vmem:[#allocation5 + $0x48] sm:$0xff]   ;;  %v1701_v22 = vmov 1966171168   ;;  %v264_v24 = vlaneseq }
  0x39   :  { %v1503_v1 = vld [vmem:[#allocation5] sm:$0xff]   ;;  %1350 = vmatprep.subr.bf16.mxu0 %v1502_v0  ;;  %v1507_v5 = vld [vmem:[#allocation5 + $0x8] sm:$0xff]   ;;  %v1510_v8 = vld [vmem:[#allocation5 + $0x50] sm:$0xff]   ;;  %v262_v23 = vunpack.c.l.s4 %v1701_v22  ;;  %vm1703_vm0 = vmmov 0   ;;  %vm948_vm1 = vcmask 261120   ;;  %s1704_s2 = smov [#allocation8]  }
  0x3a   :  { %v1504_v2 = vld [vmem:[#allocation5 + $0xc0] sm:$0xff]   ;;  %1351 = vmatpush3.bf16.msra.mxu0 %v1503_v1  ;;  %v1508_v6 = vld [vmem:[#allocation5 + $0xc8] sm:$0xff]   ;;  %v1511_v9 = vld [vmem:[#allocation5 + $0x10] sm:$0xff]   ;;  %v265_v30 = vshrl.u32 %v264_v24, 7  ;;  %s1240_s23 = sshll.u32 %s1704_s2, 4  ;;  %vm1232_vm2 = vcmask 74752   ;;  %s1241_s23 = int_to_ptr.vmem [resolvable:$true] %s1240_s23 }
  0x3b   :  { %v1505_v3 = vld [vmem:[#allocation5 + $0x80] sm:$0xff]   ;;  %1372 = vmatprep.subr.bf16.mxu1 %v1504_v2  ;;  %1352 = vmatprep.subr.bf16.mxu0 %v1506_v4  ;;  %v1509_v7 = vld [vmem:[#allocation5 + $0x88] sm:$0xff]   ;;  %v1512_v10 = vld [vmem:[#allocation5 + $0xd0] sm:$0xff]   ;;  %v263_v29 = vunpack.c.0.s8 %v262_v23  ;;  %s1668_s24 = scalar_lea.vmem %s1241_s23, 32  ;;  %p1673_p11 = scmp.lt.s32.totalorder %s1241_s23, %s1241_s23 }
  0x3c   :  { %1373 = vmatpush3.bf16.msra.mxu1 %v1505_v3  ;;  %v1513_v11 = vld [vmem:[#allocation5 + $0x90] sm:$0xff]   ;;  %v1514_v12 = vld [vmem:[#allocation5 + $0x58] sm:$0xff]   ;;  %v1518_v16 = vld [vmem:[#allocation5 + $0x60] sm:$0xff]   ;;  %p1669_p10 = scmp.ne.s32.totalorder %s1241_s23, %s1668_s24  ;;  %p1674_p12 = scmp.lt.s32.totalorder %s1668_s24, %s1668_s24 }
  0x3d   :  { %1374 = vmatprep.subr.bf16.mxu1 %v1508_v6  ;;  %v1515_v13 = vld [vmem:[#allocation5 + $0x18] sm:$0xff]   ;;  %v1519_v17 = vld [vmem:[#allocation5 + $0x20] sm:$0xff]   ;;  %v1522_v20 = vld [vmem:[#allocation5 + $0x68] sm:$0xff]   ;;  %v1761_v35 = vsub.s32 %v263_v29, %v265_v30 }
  0x3e   :  { %1353 = vmatpush3.bf16.msra.mxu0 %v1507_v5  ;;  %v1516_v14 = vld [vmem:[#allocation5 + $0xd8] sm:$0xff]   ;;  %v1520_v18 = vld [vmem:[#allocation5 + $0xe0] sm:$0xff]   ;;  %v1523_v21 = vld [vmem:[#allocation5 + $0x28] sm:$0xff]   ;;  %p1675_p13 = por %p1674_p12, %p1673_p11 }
  0x3f   :  { %1354 = vmatprep.subr.bf16.mxu0 %v1510_v8  ;;  %v1517_v15 = vld [vmem:[#allocation5 + $0x98] sm:$0xff]   ;;  %v1521_v19 = vld [vmem:[#allocation5 + $0xa0] sm:$0xff]   ;;  %v1524_v25 = vld [vmem:[#allocation5 + $0xe8] sm:$0xff]  }
  0x40   :  { %1375 = vmatpush3.bf16.msra.mxu1 %v1509_v7  ;;  %v1525_v26 = vld [vmem:[#allocation5 + $0xa8] sm:$0xff]   ;;  %v1526_v27 = vld [vmem:[#allocation5 + $0x70] sm:$0xff]   ;;  %v1530_v33 = vld [vmem:[#allocation5 + $0x78] sm:$0xff]   ;;  %p1676_p0 = pnand %p1675_p13, %p1669_p10 }
  0x41   :  { %1376 = vmatprep.subr.bf16.mxu1 %v1512_v10  ;;  %v1527_v28 = vld [vmem:[#allocation5 + $0x30] sm:$0xff]   ;;  %v1531_v34 = vld [vmem:[#allocation5 + $0x38] sm:$0xff]   ;;  %v1535_v41 = vld [vmem:[#allocation5 + $0x140] sm:$0xff]  }
  0x42   :  { %1355 = vmatpush3.bf16.msra.mxu0 %v1511_v9  ;;  %v1528_v31 = vld [vmem:[#allocation5 + $0xf0] sm:$0xff]   ;;  %v1532_v36 = vld [vmem:[#allocation5 + $0xf8] sm:$0xff]   ;;  %v1537_v44 = vld [vmem:[#allocation5 + $0x1c0] sm:$0xff]  }
  0x43   :  { %1356 = vmatprep.subr.bf16.mxu0 %v1514_v12  ;;  %v1529_v32 = vld [vmem:[#allocation5 + $0xb0] sm:$0xff]   ;;  %v1533_v37 = vld [vmem:[#allocation5 + $0xb8] sm:$0xff]   ;;  %v1536_v47 = vld [vmem:[#allocation5 + $0x100] sm:$0xff]  }
  0x44   :  { %1377 = vmatpush3.bf16.msra.mxu1 %v1513_v11  ;;  %v53_v38 = vld [vmem:[#allocation2] sm:$0xff]  ;;  %v1539_v50 = vld [vmem:[#allocation5 + $0x148] sm:$0xff]   ;;  %v1538_v52 = vld [vmem:[#allocation5 + $0x180] sm:$0xff]  }
  0x45   :  { %1378 = vmatprep.subr.bf16.mxu1 %v1516_v14  ;;  %v260_v39 = vcombine.high %v53_v38, %v53_v38  ;;  %v267_v40 = vrot.slane %v53_v38, %v1761_v35  ;;  %v1541_v54 = vld [vmem:[#allocation5 + $0x1c8] sm:$0xff]   ;;  %v1543_v57 = vld [vmem:[#allocation5 + $0x150] sm:$0xff]   ;;  %v1547_v61 = vld [vmem:[#allocation5 + $0x158] sm:$0xff]  }
  0x46   :  { %1357 = vmatpush3.bf16.msra.mxu0 %v1515_v13  ;;  %v1540_v55 = vld [vmem:[#allocation5 + $0x108] sm:$0xff]   ;;  %v1545_v59 = vld [vmem:[#allocation5 + $0x1d0] sm:$0xff]   ;;  %v1549_v63 = vld [vmem:[#allocation5 + $0x1d8] sm:$0xff]  }
  0x47   :  { %1358 = vmatprep.subr.bf16.mxu0 %v1518_v16  ;;  %v275_v42 = vcombine.high %v267_v40, %v267_v40  ;;  %v283_v43 = vrot.slane %v267_v40, %v1761_v35  ;;  %v1766_v45 = vrot.slane %v260_v39, %v1761_v35  ;;  %v1542_v58 = vld [vmem:[#allocation5 + $0x188] sm:$0xff]   ;;  %v1544_v60 = vld [vmem:[#allocation5 + $0x110] sm:$0xff]   ;;  %v1548_v0 = vld [vmem:[#allocation5 + $0x118] sm:$0xff]  }
  0x48   :  { %1379 = vmatpush3.bf16.msra.mxu1 %v1517_v15  ;;  %v1546_v62 = vld [vmem:[#allocation5 + $0x190] sm:$0xff]   ;;  %v1551_v1 = vld [vmem:[#allocation5 + $0x160] sm:$0xff]   ;;  %v1550_v2 = vld [vmem:[#allocation5 + $0x198] sm:$0xff]  }
  0x49   :  { %1380 = vmatprep.subr.bf16.mxu1 %v1520_v18  ;;  %v297_v46 = vrot.slane %v275_v42, %v1761_v35  ;;  %v276_v48 = vcombine.high %v1766_v45, %v1766_v45  ;;  %v305_v49 = vcombine.high %v283_v43, %v283_v43  ;;  %v1553_v3 = vld [vmem:[#allocation5 + $0x1e0] sm:$0xff]   ;;  %v1555_v5 = vld [vmem:[#allocation5 + $0x168] sm:$0xff]   ;;  %v1559_v9 = vld [vmem:[#allocation5 + $0x170] sm:$0xff]  }
  0x4a   :  { %1359 = vmatpush3.bf16.msra.mxu0 %v1519_v17  ;;  %v1552_v4 = vld [vmem:[#allocation5 + $0x120] sm:$0xff]   ;;  %v1557_v7 = vld [vmem:[#allocation5 + $0x1e8] sm:$0xff]   ;;  %v1561_v11 = vld [vmem:[#allocation5 + $0x1f0] sm:$0xff]   ;;  %v290_v17 = vrot.slane %v1766_v45, %v1761_v35 }
  0x4b   :  { %1360 = vmatprep.subr.bf16.mxu0 %v1522_v20  ;;  %984 = vmatprep.mubr.bf16.mxu0 %v297_v46  ;;  %v307_v51 = vcombine.high %v297_v46, %v297_v46  ;;  %v304_v53 = vrot.slane %v276_v48, %v1761_v35  ;;  %v1554_v6 = vld [vmem:[#allocation5 + $0x1a0] sm:$0xff]   ;;  %v1556_v8 = vld [vmem:[#allocation5 + $0x128] sm:$0xff]   ;;  %v1560_v12 = vld [vmem:[#allocation5 + $0x130] sm:$0xff]  }
  0x4c   :  { %1381 = vmatpush3.bf16.msra.mxu1 %v1521_v19  ;;  %v1558_v10 = vld [vmem:[#allocation5 + $0x1a8] sm:$0xff]   ;;  %v1563_v13 = vld [vmem:[#allocation5 + $0x178] sm:$0xff]   ;;  %v1562_v14 = vld [vmem:[#allocation5 + $0x1b0] sm:$0xff]   ;;  %v306_v22 = vcombine.high %v290_v17, %v290_v17 }
  0x4d   :  { %1382 = vmatprep.subr.bf16.mxu1 %v1524_v25  ;;  %1024 = vmatprep.mubr.bf16.mxu1 %v307_v51  ;;  %v308_v56 = vcombine.high %v304_v53, %v304_v53  ;;  %v1565_v15 = vld [vmem:[#allocation5 + $0x1f8] sm:$0xff]   ;;  %v1567_v18 = vld [vmem:[#allocation5 + $0x240] sm:$0xff]   ;;  %v1571_v23 = vld [vmem:[#allocation5 + $0x248] sm:$0xff]  }
  0x4e   :  { %1361 = vmatpush3.bf16.msra.mxu0 %v1523_v21  ;;  %v1564_v16 = vld [vmem:[#allocation5 + $0x138] sm:$0xff]   ;;  %v1569_v20 = vld [vmem:[#allocation5 + $0x2c0] sm:$0xff]   ;;  %v1573_v25 = vld [vmem:[#allocation5 + $0x2c8] sm:$0xff]  }
  0x4f   :  { %1362 = vmatprep.subr.bf16.mxu0 %v1526_v27  ;;  %v1566_v19 = vld [vmem:[#allocation5 + $0x1b8] sm:$0xff]   ;;  %v1568_v21 = vld [vmem:[#allocation5 + $0x200] sm:$0xff]   ;;  %v1575_v27 = vld [vmem:[#allocation5 + $0x250] sm:$0xff]  }
  0x50   :  { %1383 = vmatpush3.bf16.msra.mxu1 %v1525_v26  ;;  %v1570_v24 = vld [vmem:[#allocation5 + $0x280] sm:$0xff]   ;;  %v1572_v26 = vld [vmem:[#allocation5 + $0x208] sm:$0xff]   ;;  %v1577_v29 = vld [vmem:[#allocation5 + $0x2d0] sm:$0xff]  }
  0x51   :  { %1384 = vmatprep.subr.bf16.mxu1 %v1528_v31  ;;  %v1576_v30 = vld [vmem:[#allocation5 + $0x210] sm:$0xff]   ;;  %v1579_v31 = vld [vmem:[#allocation5 + $0x258] sm:$0xff]   ;;  %v1585_v38 = vld [vmem:[#allocation5 + $0x2e0] sm:$0xff]  }
  0x52   :  { %1363 = vmatpush3.bf16.msra.mxu0 %v1527_v28  ;;  %v1574_v28 = vld [vmem:[#allocation5 + $0x288] sm:$0xff]   ;;  %v1584_v39 = vld [vmem:[#allocation5 + $0x220] sm:$0xff]   ;;  %v1593_v46 = vld [vmem:[#allocation5 + $0x2f0] sm:$0xff]  }
  0x53   :  { %1364 = vmatprep.subr.bf16.mxu0 %v1530_v33  ;;  %v1581_v33 = vld [vmem:[#allocation5 + $0x2d8] sm:$0xff]   ;;  %v1587_v40 = vld [vmem:[#allocation5 + $0x268] sm:$0xff]  }
  0x54   :  { %1385 = vmatpush3.bf16.msra.mxu1 %v1529_v32  ;;  %v1578_v32 = vld [vmem:[#allocation5 + $0x290] sm:$0xff]   ;;  %v1589_v42 = vld [vmem:[#allocation5 + $0x2e8] sm:$0xff]   ;;  %v1595_v48 = vld [vmem:[#allocation5 + $0x278] sm:$0xff]  }
  0x55   :  { %1386 = vmatprep.subr.bf16.mxu1 %v1532_v36  ;;  %v1583_v36 = vld [vmem:[#allocation5 + $0x260] sm:$0xff]   ;;  %v1590_v45 = vld [vmem:[#allocation5 + $0x2a8] sm:$0xff]   ;;  %v54_v51 = vld [vmem:[#allocation2 + $0x8] sm:$0x1f] }
  0x56   :  { %1365 = vmatpush3.bf16.msra.mxu0 %v1531_v34  ;;  %v1580_v34 = vld [vmem:[#allocation5 + $0x218] sm:$0xff]  }
  0x57   :  { %1394 = vmatprep.subr.bf16.mxu0 %v1535_v41  ;;  %v1586_v41 = vld [vmem:[#allocation5 + $0x2a0] sm:$0xff]  }
  0x58   :  { %1387 = vmatpush3.bf16.msra.mxu1 %v1533_v37  ;;  %v1582_v37 = vld [vmem:[#allocation5 + $0x298] sm:$0xff]  }
  0x59   :  { %1416 = vmatprep.subr.bf16.mxu1 %v1537_v44  ;;  %985 = vmatmul.mubr.bf16.vlgmr.msra.gmra.mrb[0].mxu0 %v283_v43  ;;  %v1588_v43 = vld [vmem:[#allocation5 + $0x228] sm:$0xff]   ;;  %v1591_v44 = vld [vmem:[#allocation5 + $0x270] sm:$0xff]  }
  0x5a   :  { %1395 = vmatpush3.bf16.msra.mxu0 %v1536_v47  ;;  %1064 = vmatprep.mubr.bf16.mxu0 %v304_v53  ;;  %v1592_v47 = vld [vmem:[#allocation5 + $0x230] sm:$0xff]   ;;  %v316_v53 = vrot.slane %v54_v51, %v1761_v35 }
  0x5b   :  { %1025 = vmatmul.mubr.bf16.vlgmr.msra.gmra.mrb[0].mxu1 %v305_v49  ;;  %1396 = vmatprep.subr.bf16.mxu0 %v1539_v50  ;;  %v1594_v49 = vld [vmem:[#allocation5 + $0x2b0] sm:$0xff]   ;;  %v1597_v50 = vld [vmem:[#allocation5 + $0x2f8] sm:$0xff]  }
  0x5c   :  { %1417 = vmatpush3.bf16.msra.mxu1 %v1538_v52  ;;  %1104 = vmatprep.mubr.bf16.mxu1 %v308_v56  ;;  %v1596_v52 = vld [vmem:[#allocation5 + $0x238] sm:$0xff]   ;;  %v331_v56 = vrot.slane %v316_v53, %v1761_v35 }
  0x5d   :  { %1418 = vmatprep.subr.bf16.mxu1 %v1541_v54  ;;  %v1598_v54 = vld [vmem:[#allocation5 + $0x2b8] sm:$0xff]  }
  0x5e   :  { %1397 = vmatpush3.bf16.msra.mxu0 %v1540_v55  ;;  %v324_v55 = vcombine.high %v316_v53, %v316_v53 }
  0x5f   :  { %1398 = vmatprep.subr.bf16.mxu0 %v1543_v57  ;;  %v309_v57 = vcombine.high %v54_v51, %v54_v51 }
  0x60   :  { %1419 = vmatpush3.bf16.msra.mxu1 %v1542_v58  ;;  %v345_v58 = vrot.slane %v324_v55, %v1761_v35 }
  0x61   :  { %1420 = vmatprep.subr.bf16.mxu1 %v1545_v59  ;;  %v1600_v59 = vld [vmem:[#allocation5 + $0x300] sm:$0xff]  }
  0x62   :  { %1399 = vmatpush3.bf16.msra.mxu0 %v1544_v60  ;;  %v1702_v60 = vmov 0.0  }
  0x63   :  { %1400 = vmatprep.subr.bf16.mxu0 %v1547_v61  ;;  %v346_v61 = vcombine.high %v331_v56, %v331_v56 }
  0x64   :  { %1421 = vmatpush3.bf16.msra.mxu1 %v1546_v62  ;;  %v347_v62 = vcombine.high %v345_v58, %v345_v58 }
  0x65   :  { %1422 = vmatprep.subr.bf16.mxu1 %v1549_v63  ;;  %v323_v63 = vrot.slane %v309_v57, %v1761_v35 }
  0x66   :  { %1401 = vmatpush3.bf16.msra.mxu0 %v1548_v0  ;;  %v1601_v0 = vld [vmem:[#allocation5 + $0x308] sm:$0xff]  }
  0x67   :  { %1402 = vmatprep.subr.bf16.mxu0 %v1551_v1  ;;  %v338_v1 = vrot.slane %v323_v63, %v1761_v35 }
  0x68   :  { %1423 = vmatpush3.bf16.msra.mxu1 %v1550_v2 }
  0x69   :  { %1424 = vmatprep.subr.bf16.mxu1 %v1553_v3  ;;  %v1250_v3 = vld [vmem:[#allocation7] ss:$0 sm:$0xff] }
  0x6a   :  { %1403 = vmatpush3.bf16.msra.mxu0 %v1552_v4 }
  0x6b   :  { %1404 = vmatprep.subr.bf16.mxu0 %v1555_v5 }
  0x6c   :  { %1425 = vmatpush3.bf16.msra.mxu1 %v1554_v6 }
  0x6d   :  { %1426 = vmatprep.subr.bf16.mxu1 %v1557_v7 }
  0x6e   :  { %1405 = vmatpush3.bf16.msra.mxu0 %v1556_v8 }
  0x6f   :  { %1406 = vmatprep.subr.bf16.mxu0 %v1559_v9 }
  0x70   :  { %1427 = vmatpush3.bf16.msra.mxu1 %v1558_v10 }
  0x71   :  { %1428 = vmatprep.subr.bf16.mxu1 %v1561_v11 }
  0x72   :  { %1407 = vmatpush3.bf16.msra.mxu0 %v1560_v12 }
  0x73   :  { %1408 = vmatprep.subr.bf16.mxu0 %v1563_v13 }
  0x74   :  { %1429 = vmatpush3.bf16.msra.mxu1 %v1562_v14 }
  0x75   :  { %1430 = vmatprep.subr.bf16.mxu1 %v1565_v15 }
  0x76   :  { %1409 = vmatpush3.bf16.msra.mxu0 %v1564_v16 }
  0x77   :  { %1438 = vmatprep.subr.bf16.mxu0 %v1567_v18 }
  0x78   :  { %1431 = vmatpush3.bf16.msra.mxu1 %v1566_v19 }
  0x79   :  { %1065 = vmatmul.mubr.bf16.vlgmr.msra.gmra.mrb[4].mxu0 %v290_v17  ;;  %1460 = vmatprep.subr.bf16.mxu1 %v1569_v20 }
  0x7a   :  { %1439 = vmatpush3.bf16.msra.mxu0 %v1568_v21  ;;  %1144 = vmatprep.mubr.bf16.mxu0 %v345_v58 }
  0x7b   :  { %1105 = vmatmul.mubr.bf16.vlgmr.msra.gmra.mrb[4].mxu1 %v306_v22  ;;  %1440 = vmatprep.subr.bf16.mxu0 %v1571_v23 }
  0x7c   :  { %1461 = vmatpush3.bf16.msra.mxu1 %v1570_v24  ;;  %1184 = vmatprep.mubr.bf16.mxu1 %v347_v62 }
  0x7d   :  { %1462 = vmatprep.subr.bf16.mxu1 %v1573_v25 }
  0x7e   :  { %1441 = vmatpush3.bf16.msra.mxu0 %v1572_v26 }
  0x7f   :  { %1442 = vmatprep.subr.bf16.mxu0 %v1575_v27 }
  0x80   :  { %1463 = vmatpush3.bf16.msra.mxu1 %v1574_v28 }
  0x81   :  { %1464 = vmatprep.subr.bf16.mxu1 %v1577_v29 }
  0x82   :  { %1443 = vmatpush3.bf16.msra.mxu0 %v1576_v30 }
  0x83   :  { %1444 = vmatprep.subr.bf16.mxu0 %v1579_v31 }
  0x84   :  { %1465 = vmatpush3.bf16.msra.mxu1 %v1578_v32 }
  0x85   :  { %1466 = vmatprep.subr.bf16.mxu1 %v1581_v33 }
  0x86   :  { %1445 = vmatpush3.bf16.msra.mxu0 %v1580_v34 }
  0x87   :  { %1446 = vmatprep.subr.bf16.mxu0 %v1583_v36 }
  0x88   :  { %1467 = vmatpush3.bf16.msra.mxu1 %v1582_v37 }
  0x89   :  { %1468 = vmatprep.subr.bf16.mxu1 %v1585_v38 }
  0x8a   :  { %1447 = vmatpush3.bf16.msra.mxu0 %v1584_v39 }
  0x8b   :  { %1448 = vmatprep.subr.bf16.mxu0 %v1587_v40 }
  0x8c   :  { %1469 = vmatpush3.bf16.msra.mxu1 %v1586_v41 }
  0x8d   :  { %1470 = vmatprep.subr.bf16.mxu1 %v1589_v42 }
  0x8e   :  { %1449 = vmatpush3.bf16.msra.mxu0 %v1588_v43 }
  0x8f   :  { %1450 = vmatprep.subr.bf16.mxu0 %v1591_v44 }
  0x90   :  { %1471 = vmatpush3.bf16.msra.mxu1 %v1590_v45 }
  0x91   :  { %1472 = vmatprep.subr.bf16.mxu1 %v1593_v46 }
  0x92   :  { %1451 = vmatpush3.bf16.msra.mxu0 %v1592_v47 }
  0x93   :  { %1452 = vmatprep.subr.bf16.mxu0 %v1595_v48 }
  0x94   :  { %1473 = vmatpush3.bf16.msra.mxu1 %v1594_v49 }
  0x95   :  { %1474 = vmatprep.subr.bf16.mxu1 %v1597_v50 }
  0x96   :  { %1453 = vmatpush3.bf16.msra.mxu0 %v1596_v52 }
  0x97   :  { %1485 = vmatprep.subr.bf16.mxu0 %v1702_v60 }
  0x98   :  { %1475 = vmatpush3.bf16.msra.mxu1 %v1598_v54 }
  0x99   :  { %1145 = vmatmul.mubr.bf16.vlgmr.msra.gmra.mrb[8].mxu0 %v331_v56 }
  0x9a   :  { %1486 = vmatpush3.bf16.msra.mxu0 %v1600_v59  ;;  %1489 = vmatprep.mubr.msk.bf16.mxu0 %vm1703_vm0, %v1702_v60 }
  0x9b   :  { %1185 = vmatmul.mubr.bf16.vlgmr.msra.gmra.mrb[8].mxu1 %v346_v61  ;;  %1487 = vmatprep.subr.bf16.mxu0 %v1702_v60 }
  0x9e   :  { %1488 = vmatpush3.bf16.msra.mxu0 %v1601_v0 }
  0xa1   :  { %1490 = vmatmul.mubr.msk.bf16.vlgmr.msra.gmra.mrb[12].mxu0 %vm948_vm1, %v338_v1 }
 0x12c   :  { %v1366_v2 = vpop.f32.mrb[0].mxu0 }
 0x12d   :  { %v1367_v4 = vpop.f32.mrb[1].mxu0 }
 0x12e   :  { %v1368_v5 = vadd.f32 %v1367_v4, %v1366_v2  ;;  %v1369_v6 = vpop.f32.mrb[2].mxu0  ;;  %v1388_v7 = vpop.f32.mrb[0].mxu1 }
 0x12f   :  { %v1370_v8 = vpop.f32.mrb[3].mxu0  ;;  %v1389_v9 = vpop.f32.mrb[1].mxu1 }
 0x130   :  { %v987_v10 = vadd.f32 %v1368_v5, %v1250_v3  ;;  %v1390_v11 = vadd.f32 %v1389_v9, %v1388_v7  ;;  %v1391_v12 = vpop.f32.mrb[2].mxu1 }
 0x131   :  { %v1392_v13 = vpop.f32.mrb[3].mxu1 }
 0x132   :  { %v1027_v14 = vadd.f32 %v1390_v11, %v987_v10 }
 0x14c   :  { %v1410_v15 = vpop.f32.mrb[4].mxu0 }
 0x14d   :  { %v1411_v16 = vpop.f32.mrb[5].mxu0 }
 0x14e   :  { %v1412_v17 = vadd.f32 %v1411_v16, %v1410_v15  ;;  %v1413_v35 = vpop.f32.mrb[6].mxu0  ;;  %v1432_v18 = vpop.f32.mrb[4].mxu1 }
 0x14f   :  { %v1414_v19 = vpop.f32.mrb[7].mxu0  ;;  %v1433_v20 = vpop.f32.mrb[5].mxu1 }
 0x150   :  { %v1067_v21 = vadd.f32 %v1412_v17, %v1027_v14  ;;  %v1434_v22 = vadd.f32 %v1433_v20, %v1432_v18  ;;  %v1435_v23 = vpop.f32.mrb[6].mxu1 }
 0x151   :  { %v1436_v24 = vpop.f32.mrb[7].mxu1 }
 0x152   :  { %v1107_v25 = vadd.f32 %v1434_v22, %v1067_v21 }
 0x16c   :  { %v1454_v26 = vpop.f32.mrb[8].mxu0 }
 0x16d   :  { %v1455_v27 = vpop.f32.mrb[9].mxu0 }
 0x16e   :  { %v1456_v28 = vadd.f32 %v1455_v27, %v1454_v26  ;;  %v1476_v29 = vpop.f32.mrb[8].mxu1  ;;  %v1457_v30 = vpop.f32.mrb[10].mxu0 }
 0x16f   :  { %v1477_v31 = vpop.f32.mrb[9].mxu1  ;;  %v1458_v32 = vpop.f32.mrb[11].mxu0 }
 0x170   :  { %v1147_v33 = vadd.f32 %v1456_v28, %v1107_v25  ;;  %v1478_v34 = vadd.f32 %v1477_v31, %v1476_v29  ;;  %v1479_v36 = vpop.f32.mrb[10].mxu1 }
 0x171   :  { %v1480_v37 = vpop.f32.mrb[11].mxu1 }
 0x172   :  { %v1187_v38 = vadd.f32 %v1478_v34, %v1147_v33 }
 0x174   :  { %v1226_v39 = vpop.f32.mrb[12].mxu0 }
 0x175   :  { %v1227_v40 = vadd.f32 %v1226_v39, %v1187_v38  ;;  %v1491_v41 = vpop.f32.mrb[13].mxu0 }
 0x176   :  { %v1229_v42 = vpop.f32.mrb[14].mxu0 }
 0x177   :  { %v1492_v43 = vpop.f32.mrb[15].mxu0  ;;  %1233 = vst.msk [vmem:[#allocation8] sm:$0x3] %vm1232_vm2, %v1227_v40 }
 0x178   :  { %1679 = shalt.err (!%p1676_p0)
}
 0x179   :  { %s1680_s27 = scalar_lea.hbm %s1794_s3, 32 }
 0x17a   :  { %p1681_p1 = scmp.ne.s32.totalorder %s1794_s3, %s1680_s27  ;;  %p1684_p2 = scmp.lt.u32.totalorder %s1680_s27, %s1794_s3 }
 0x17c   :  { %p1686_p3 = pnand %p1684_p2, %p1681_p1 }
 0x17e   :  { %1689 = shalt.err (!%p1686_p3)
}
 0x17f   :  { %1243 = dma.vmem_to_hbm [thread:$0]  %s1241_s23, 32, %s1794_s3, [#allocation4]  }
 0x180   :  { %1694 = dma.done.wait [#allocation4], 32  }
 0x181   :  { %1695 = vsyncadd [#allocation4], 4294967264 }
 0x182   :  { %1247 = vsyncpa [#allocation3], 1 }
 0x183   :  { %1248 = vsyncpa [#allocation6], 1 }
 0x184   :  { %1249 = vsyncpa [#allocation4], 1 }

</bundles_post_ra>
